<compile_context>
chip_gen: v6e
topology: v6e:2x2x1
jax: 0.10.0
libtpu: 0.0.40
codegen_flags: <defaults>
</compile_context>

<pallas_src>
from collections import namedtuple

import numpy as np
import jax
import jax.numpy as jnp
from jax.experimental import pallas as pl
from jax.experimental.pallas import tpu as pltpu  # noqa: F401  (TPU backend)

ContState = namedtuple("ContState", ["mean", "std"])

# ----------------------------- hyper-params (small, consistent with module) ---
B, S = 2, 2                 # batch, seq_len
C_RGB = 3
INPUT_CHN = 4               # rgb(3) + depth(1)
H = W = 16
CHN = [8, 16, 16]
DIMS = [8, 4, 4]            # spatial dims after conv1 / conv2 / conv3
DIM_LATENT = 2              # spatial dim after mu / logvar heads
MIN_LOGVAR = -6.0
MIN_DPT, MAX_DPT = 0.01, 2.0
LN_EPS = 1e-5


# --------------------- trace-time constants (numpy -> jnp constants) ----------
def _tap_selectors(h_in, w_in, h_out, w_out, stride):
    """(9, P_out, P_in) 0/1 gather matrices, one per 3x3 tap (padding=1).

    sel[t, p_out, p_in] = 1 iff input position p_in is the tap-t neighbour of
    output position p_out (out-of-bounds taps -> all-zero row == zero padding).
    """
    sel = np.zeros((9, h_out * w_out, h_in * w_in), np.float32)
    for dh in range(3):
        for dw in range(3):
            t = dh * 3 + dw
            for i in range(h_out):
                r = stride * i + dh - 1
                if r < 0 or r >= h_in:
                    continue
                for j in range(w_out):
                    c = stride * j + dw - 1
                    if c < 0 or c >= w_in:
                        continue
                    sel[t, i * w_out + j, r * w_in + c] = 1.0
    return jnp.asarray(sel)


def _batch_maps(batch, chn, inv_n):
    """lane->sample one-hot map (B*C, B) and its (1/N)-scaled transpose (B, B*C).

    Folding 1/N into the scatter-back map removes all divisions from the kernel.
    """
    m = np.zeros((batch * chn, batch), np.float32)
    for b in range(batch):
        m[b * chn:(b + 1) * chn, b] = 1.0
    return jnp.asarray(m), jnp.asarray(m.T * inv_n)


# --------------------- param layout conversion (PyTorch -> kernel layout) -----
def _conv_tap_weights(w_oihw, batch):
    """PyTorch (Cout, Cin, 3, 3) -> (9, B*Cin, B*Cout) per-tap batch-block-diag."""
    eye = jnp.eye(batch, dtype=w_oihw.dtype)
    taps = []
    for dh in range(3):                         # same tap order as _tap_selectors
        for dw in range(3):
            taps.append(jnp.kron(eye, w_oihw[:, :, dh, dw].T))   # (B*Cin, B*Cout)
    return jnp.stack(taps, axis=0)


def _bias_row(bias, batch):
    return jnp.tile(bias, batch)[None, :]       # (1, B*Cout), lane = b*Cout + o


def _ln_affine(gamma_chw, beta_chw, batch):
    """PyTorch LayerNorm affine (C, H, W) -> kernel layout (H*W, B*C)."""
    def conv(a):
        hwc = jnp.transpose(a, (1, 2, 0)).reshape(-1, a.shape[0])   # (H*W, C)
        return jnp.tile(hwc, (1, batch))
    return conv(gamma_chw), conv(beta_chw)


def _head_ln_affine(gmu, bmu, glv, blv, batch):
    """Head LN affine -> (P_latent, 2*B) with lane order [mu, logvar] per sample."""
    g = jnp.tile(jnp.stack([gmu.reshape(-1), glv.reshape(-1)], axis=1), (1, batch))
    bt = jnp.tile(jnp.stack([bmu.reshape(-1), blv.reshape(-1)], axis=1), (1, batch))
    return g, bt


# ----------------------------------- fused Pallas kernel ----------------------
def _qnet_fused_kernel(
    x0_ref,
    sel1_ref, w1_ref, b1_ref, g1_ref, bb1_ref, bm1_ref, pm1_ref,
    sel2_ref, w2_ref, b2_ref, g2_ref, bb2_ref, bm2_ref, pm2_ref,
    sel3_ref, w3_ref, b3_ref, g3_ref, bb3_ref,
    selh_ref, wh_ref, bh_ref, gh_ref, bbh_ref, lvmask_ref,
    out_ref,
):
    f32 = jnp.float32

    def conv3x3(x, sel_ref, w_ref, bias_ref, relu):
        # x: (P_in, B*Cin); sel: (9, P_out, P_in); w: (9, B*Cin, B*Cout)
        acc = bias_ref[...]                                   # (1, B*Cout) broadcasts
        for t in range(9):                                    # unrolled 3x3 taps
            tap = jnp.dot(sel_ref[t], x, preferred_element_type=f32)   # spatial gather
            acc = acc + jnp.dot(tap, w_ref[t], preferred_element_type=f32)
        if relu:
            acc = jnp.maximum(acc, 0.0)
        return acc

    def layer_norm(x, g_ref, bt_ref, bm_ref, pm_ref):
        # Per-sample LN over all C*H*W elements (== nn.LayerNorm([C, H, W])).
        # bm: (B*C, B) one-hot gather; pm: (B, B*C) scatter-back pre-scaled by 1/N.
        colsum = jnp.sum(x, axis=0, keepdims=True)            # (1, B*C)
        mean = jnp.dot(jnp.dot(colsum, bm_ref[...], preferred_element_type=f32),
                       pm_ref[...], preferred_element_type=f32)
        xc = x - mean
        colsq = jnp.sum(xc * xc, axis=0, keepdims=True)
        var = jnp.dot(jnp.dot(colsq, bm_ref[...], preferred_element_type=f32),
                      pm_ref[...], preferred_element_type=f32)
        return xc * jax.lax.rsqrt(var + LN_EPS) * g_ref[...] + bt_ref[...]

    x = x0_ref[...]                                           # (256, B*8)
    x = conv3x3(x, sel1_ref, w1_ref, b1_ref, relu=True)       # (64, B*8)
    x = layer_norm(x, g1_ref, bb1_ref, bm1_ref, pm1_ref)
    x = conv3x3(x, sel2_ref, w2_ref, b2_ref, relu=True)       # (16, B*16)
    x = layer_norm(x, g2_ref, bb2_ref, bm2_ref, pm2_ref)
    x = conv3x3(x, sel3_ref, w3_ref, b3_ref, relu=True)       # (16, B*16)
    x = layer_norm(x, g3_ref, bb3_ref, bm2_ref, pm2_ref)      # LN3 shares B*16 maps

    # merged mu/logvar head; lane order per sample: [mu, logvar]
    y = conv3x3(x, selh_ref, wh_ref, bh_ref, relu=False)      # (4, 2*B)
    lv = lvmask_ref[...] > 0.5                                # True on logvar lanes
    y = jnp.where(lv, jnp.maximum(y, 0.0), y)                 # ReLU only on logvar head
    # per-(sample, head) LayerNorm over the dim_latent x dim_latent spatial map
    mean = jnp.mean(y, axis=0, keepdims=True)
    var = jnp.mean(jnp.square(y - mean), axis=0, keepdims=True)
    y = (y - mean) * jax.lax.rsqrt(var + LN_EPS) * gh_ref[...] + bbh_ref[...]
    # std = exp((logvar + min_logvar)/2) on logvar lanes; mu lanes pass through
    out_ref[...] = jnp.where(lv, jnp.exp((y + MIN_LOGVAR) * 0.5), y)


def _kernel_inputs(params):
    """Constant gather/reduction maps + parameters re-laid-out for the fused kernel."""
    sel1 = _tap_selectors(H, W, DIMS[0], DIMS[0], 2)
    sel2 = _tap_selectors(DIMS[0], DIMS[0], DIMS[1], DIMS[1], 2)
    sel3 = _tap_selectors(DIMS[1], DIMS[1], DIMS[2], DIMS[2], 1)
    selh = _tap_selectors(DIMS[2], DIMS[2], DIM_LATENT, DIM_LATENT, 2)
    bm1, pm1 = _batch_maps(B, CHN[0], 1.0 / float(CHN[0] * DIMS[0] * DIMS[0]))
    # CHN[1] == CHN[2] and DIMS[1] == DIMS[2]  ->  one map pair serves LN2 and LN3
    bm2, pm2 = _batch_maps(B, CHN[1], 1.0 / float(CHN[1] * DIMS[1] * DIMS[1]))

    w1 = _conv_tap_weights(params["w1"], B); b1 = _bias_row(params["b1"], B)
    w2 = _conv_tap_weights(params["w2"], B); b2 = _bias_row(params["b2"], B)
    w3 = _conv_tap_weights(params["w3"], B); b3 = _bias_row(params["b3"], B)
    wh = _conv_tap_weights(jnp.concatenate([params["wmu"], params["wlv"]], axis=0), B)
    bh = _bias_row(jnp.concatenate([params["bmu"], params["blv"]]), B)

    g1, bb1 = _ln_affine(params["ln1_w"], params["ln1_b"], B)
    g2, bb2 = _ln_affine(params["ln2_w"], params["ln2_b"], B)
    g3, bb3 = _ln_affine(params["ln3_w"], params["ln3_b"], B)
    gh, bbh = _head_ln_affine(params["lnmu_w"], params["lnmu_b"],
                              params["lnlv_w"], params["lnlv_b"], B)
    lvmask = jnp.tile(jnp.array([0.0, 1.0], jnp.float32), B)[None, :]    # (1, 2B)

    return (sel1, w1, b1, g1, bb1, bm1, pm1,
            sel2, w2, b2, g2, bb2, bm2, pm2,
            sel3, w3, b3, g3, bb3,
            selh, wh, bh, gh, bbh, lvmask)


# ----------------------------------- forward ----------------------------------
def make_qnet_forward(params):
    """Prepare all kernel operands ONCE (eagerly) and return a jitted forward.

    The selector / reduction-map constants and the relaid-out weights are captured
    by the closure, so the per-call jitted graph contains only the depth scaling,
    the channel concat, one layout transpose, the fused Pallas launch and the tiny
    output un-interleave -- no per-call parameter relayout ops.
    """
    ops = tuple(jax.device_put(jnp.asarray(o)) for o in _kernel_inputs(params))

    fused = pl.pallas_call(
        _qnet_fused_kernel,
        out_shape=jax.ShapeDtypeStruct((DIM_LATENT * DIM_LATENT, 2 * B), jnp.float32),
    )

    @jax.jit
    def forward(rgbs, dpts):
        """rgbs: (B, S, 3, H, W), dpts: (B, S, 1, H, W)  (PyTorch NCHW convention)."""
        dpt = (dpts - MIN_DPT) / (MAX_DPT - MIN_DPT)          # ScaleDepthTensor
        x = jnp.concatenate([rgbs, dpt], axis=2)              # (B, S, 4, H, W)
        b, s, c, h, w = x.shape
        x = x.reshape(b, s * c, h, w)                         # (B, S*C, H, W)
        # kernel layout: (P, B*C) -- spatial on sublanes, batch-major channels on lanes
        x0 = jnp.transpose(x, (2, 3, 0, 1)).reshape(h * w, b * s * c)

        head = fused(x0, *ops)                                # single fused launch

        # un-interleave [mu, std] lanes and restore the NCHW (B, 1, dl, dl) convention
        head = head.reshape(DIM_LATENT, DIM_LATENT, B, 2)
        mu = jnp.transpose(head[..., 0], (2, 0, 1))[:, None, :, :]
        std = jnp.transpose(head[..., 1], (2, 0, 1))[:, None, :, :]
        return ContState(mu, std)

    return forward


# ----------------------------------- pure-JAX reference -----------------------
def _reference_forward(params, rgbs, dpts):
    dpt = (dpts - MIN_DPT) / (MAX_DPT - MIN_DPT)
    x = jnp.concatenate([rgbs, dpt], axis=2)
    b, s, c, h, w = x.shape
    x = x.reshape(b, s * c, h, w)

    def conv(x, wgt, bias, stride, relu):
        y = jax.lax.conv_general_dilated(
            x, wgt, window_strides=(stride, stride), padding=((1, 1), (1, 1)),
            dimension_numbers=("NCHW", "OIHW", "NCHW"),
            precision=jax.lax.Precision.HIGHEST)
        y = y + bias[None, :, None, None]
        return jnp.maximum(y, 0.0) if relu else y

    def ln(x, g, bt):
        m = jnp.mean(x, axis=(1, 2, 3), keepdims=True)
        v = jnp.mean(jnp.square(x - m), axis=(1, 2, 3), keepdims=True)
        return (x - m) * jax.lax.rsqrt(v + LN_EPS) * g[None] + bt[None]

    x = ln(conv(x, params["w1"], params["b1"], 2, True), params["ln1_w"], params["ln1_b"])
    x = ln(conv(x, params["w2"], params["b2"], 2, True), params["ln2_w"], params["ln2_b"])
    x = ln(conv(x, params["w3"], params["b3"], 1, True), params["ln3_w"], params["ln3_b"])
    mu = ln(conv(x, params["wmu"], params["bmu"], 2, False), params["lnmu_w"], params["lnmu_b"])
    lv = ln(conv(x, params["wlv"], params["blv"], 2, True), params["lnlv_w"], params["lnlv_b"])
    std = jnp.exp((lv + MIN_LOGVAR) * 0.5)
    return ContState(mu, std)


# ----------------------------------- parameters -------------------------------
def init_params(key):
    """Parameters kept in PyTorch layouts: conv (Cout, Cin, 3, 3), LN affine (C, H, W)."""
    def conv_init(k, cin, cout):
        kw_, kb_ = jax.random.split(k)
        scale = 1.0 / jnp.sqrt(float(cin * 9))
        wgt = jax.random.uniform(kw_, (cout, cin, 3, 3), jnp.float32, -scale, scale)
        bias = jax.random.uniform(kb_, (cout,), jnp.float32, -scale, scale)
        return wgt, bias

    def ln_init(k, shape):
        kw_, kb_ = jax.random.split(k)
        # nn.LayerNorm defaults are ones/zeros; perturb so the test also exercises
        # the (C,H,W) -> kernel-layout conversion of the affine params.
        return (1.0 + 0.1 * jax.random.normal(kw_, shape, jnp.float32),
                0.1 * jax.random.normal(kb_, shape, jnp.float32))

    ks = jax.random.split(key, 10)
    p = {}
    p["w1"], p["b1"] = conv_init(ks[0], INPUT_CHN * S, CHN[0])
    p["w2"], p["b2"] = conv_init(ks[1], CHN[0], CHN[1])
    p["w3"], p["b3"] = conv_init(ks[2], CHN[1], CHN[2])
    p["wmu"], p["bmu"] = conv_init(ks[3], CHN[2], 1)
    p["wlv"], p["blv"] = conv_init(ks[4], CHN[2], 1)
    p["ln1_w"], p["ln1_b"] = ln_init(ks[5], (CHN[0], DIMS[0], DIMS[0]))
    p["ln2_w"], p["ln2_b"] = ln_init(ks[6], (CHN[1], DIMS[1], DIMS[1]))
    p["ln3_w"], p["ln3_b"] = ln_init(ks[7], (CHN[2], DIMS[2], DIMS[2]))
    p["lnmu_w"], p["lnmu_b"] = ln_init(ks[8], (1, DIM_LATENT, DIM_LATENT))
    p["lnlv_w"], p["lnlv_b"] = ln_init(ks[9], (1, DIM_LATENT, DIM_LATENT))
    return p


if __name__ == "__main__":
    key = jax.random.PRNGKey(0)
    k_par, k_rgb, k_dpt = jax.random.split(key, 3)
    params = init_params(k_par)
    rgbs = jax.random.normal(k_rgb, (B, S, C_RGB, H, W), jnp.float32)
    dpts = jax.random.uniform(k_dpt, (B, S, 1, H, W), jnp.float32, MIN_DPT, MAX_DPT)

    forward = make_qnet_forward(params)        # operand prep happens once, here
    state = forward(rgbs, dpts)
    jax.block_until_ready(state)

    assert state.mean.shape == (B, 1, DIM_LATENT, DIM_LATENT)
    assert state.std.shape == (B, 1, DIM_LATENT, DIM_LATENT)
    assert bool(jnp.all(jnp.isfinite(state.mean))) and bool(jnp.all(state.std > 0))

    # correctness check against a pure-JAX/XLA reference (loose tol: accumulation order differs)
    ref = jax.jit(_reference_forward)(params, rgbs, dpts)
    jax.block_until_ready(ref)
    assert bool(jnp.allclose(state.mean, ref.mean, rtol=5e-2, atol=1e-2))
    assert bool(jnp.allclose(state.std, ref.std, rtol=5e-2, atol=1e-2))

    print("KERNEL_OK")
</pallas_src>

<mosaic_0001>
module attributes {stable_mosaic.version = 11 : i64} {
  func.func @_qnet_fused_kernel(%arg0: memref<256x16xf32, #tpu.memory_space<vmem>>, %arg1: memref<9x64x256xf32, #tpu.memory_space<vmem>>, %arg2: memref<9x16x16xf32, #tpu.memory_space<vmem>>, %arg3: memref<1x16xf32, #tpu.memory_space<vmem>>, %arg4: memref<64x16xf32, #tpu.memory_space<vmem>>, %arg5: memref<64x16xf32, #tpu.memory_space<vmem>>, %arg6: memref<16x2xf32, #tpu.memory_space<vmem>>, %arg7: memref<2x16xf32, #tpu.memory_space<vmem>>, %arg8: memref<9x16x64xf32, #tpu.memory_space<vmem>>, %arg9: memref<9x16x32xf32, #tpu.memory_space<vmem>>, %arg10: memref<1x32xf32, #tpu.memory_space<vmem>>, %arg11: memref<16x32xf32, #tpu.memory_space<vmem>>, %arg12: memref<16x32xf32, #tpu.memory_space<vmem>>, %arg13: memref<32x2xf32, #tpu.memory_space<vmem>>, %arg14: memref<2x32xf32, #tpu.memory_space<vmem>>, %arg15: memref<9x16x16xf32, #tpu.memory_space<vmem>>, %arg16: memref<9x32x32xf32, #tpu.memory_space<vmem>>, %arg17: memref<1x32xf32, #tpu.memory_space<vmem>>, %arg18: memref<16x32xf32, #tpu.memory_space<vmem>>, %arg19: memref<16x32xf32, #tpu.memory_space<vmem>>, %arg20: memref<9x4x16xf32, #tpu.memory_space<vmem>>, %arg21: memref<9x32x4xf32, #tpu.memory_space<vmem>>, %arg22: memref<1x4xf32, #tpu.memory_space<vmem>>, %arg23: memref<4x4xf32, #tpu.memory_space<vmem>>, %arg24: memref<4x4xf32, #tpu.memory_space<vmem>>, %arg25: memref<1x4xf32, #tpu.memory_space<vmem>>, %arg26: memref<4x4xf32, #tpu.memory_space<vmem>>) attributes {dimension_semantics = [], scalar_prefetch = 0 : i64, scratch_operands = 0 : i64, tpu.core_type = #tpu.core_type<tc>} {
    %c0 = arith.constant 0 : index
    %c0_0 = arith.constant 0 : index
    %0 = vector.load %arg0[%c0, %c0_0] : memref<256x16xf32, #tpu.memory_space<vmem>>, vector<256x16xf32>
    %c0_1 = arith.constant 0 : index
    %c0_2 = arith.constant 0 : index
    %1 = vector.load %arg3[%c0_1, %c0_2] : memref<1x16xf32, #tpu.memory_space<vmem>>, vector<1x16xf32>
    %c0_3 = arith.constant 0 : index
    %c0_4 = arith.constant 0 : index
    %c0_5 = arith.constant 0 : index
    %2 = vector.load %arg1[%c0_3, %c0_4, %c0_5] : memref<9x64x256xf32, #tpu.memory_space<vmem>>, vector<1x64x256xf32>
    %3 = vector.shape_cast %2 : vector<1x64x256xf32> to vector<64x256xf32>
    %cst = arith.constant dense<0.000000e+00> : vector<64x16xf32>
    %4 = tpu.matmul %3, %0, %cst {dimension_numbers = #tpu.dot_dimension_numbers<[1], [0], [0], [1], [0, 0, 1, 1], [], []>} : vector<64x256xf32>, vector<256x16xf32>, vector<64x16xf32> -> vector<64x16xf32>
    %c0_6 = arith.constant 0 : index
    %c0_7 = arith.constant 0 : index
    %c0_8 = arith.constant 0 : index
    %5 = vector.load %arg2[%c0_6, %c0_7, %c0_8] : memref<9x16x16xf32, #tpu.memory_space<vmem>>, vector<1x16x16xf32>
    %6 = vector.shape_cast %5 : vector<1x16x16xf32> to vector<16x16xf32>
    %cst_9 = arith.constant dense<0.000000e+00> : vector<64x16xf32>
    %7 = tpu.matmul %4, %6, %cst_9 {dimension_numbers = #tpu.dot_dimension_numbers<[1], [0], [0], [1], [0, 0, 1, 1], [], []>} : vector<64x16xf32>, vector<16x16xf32>, vector<64x16xf32> -> vector<64x16xf32>
    %8 = vector.broadcast %1 : vector<1x16xf32> to vector<64x16xf32>
    %9 = arith.addf %8, %7 : vector<64x16xf32>
    %c1 = arith.constant 1 : index
    %c0_10 = arith.constant 0 : index
    %c0_11 = arith.constant 0 : index
    %10 = vector.load %arg1[%c1, %c0_10, %c0_11] : memref<9x64x256xf32, #tpu.memory_space<vmem>>, vector<1x64x256xf32>
    %11 = vector.shape_cast %10 : vector<1x64x256xf32> to vector<64x256xf32>
    %cst_12 = arith.constant dense<0.000000e+00> : vector<64x16xf32>
    %12 = tpu.matmul %11, %0, %cst_12 {dimension_numbers = #tpu.dot_dimension_numbers<[1], [0], [0], [1], [0, 0, 1, 1], [], []>} : vector<64x256xf32>, vector<256x16xf32>, vector<64x16xf32> -> vector<64x16xf32>
    %c1_13 = arith.constant 1 : index
    %c0_14 = arith.constant 0 : index
    %c0_15 = arith.constant 0 : index
    %13 = vector.load %arg2[%c1_13, %c0_14, %c0_15] : memref<9x16x16xf32, #tpu.memory_space<vmem>>, vector<1x16x16xf32>
    %14 = vector.shape_cast %13 : vector<1x16x16xf32> to vector<16x16xf32>
    %cst_16 = arith.constant dense<0.000000e+00> : vector<64x16xf32>
    %15 = tpu.matmul %12, %14, %cst_16 {dimension_numbers = #tpu.dot_dimension_numbers<[1], [0], [0], [1], [0, 0, 1, 1], [], []>} : vector<64x16xf32>, vector<16x16xf32>, vector<64x16xf32> -> vector<64x16xf32>
    %16 = arith.addf %9, %15 : vector<64x16xf32>
    %c2 = arith.constant 2 : index
    %c0_17 = arith.constant 0 : index
    %c0_18 = arith.constant 0 : index
    %17 = vector.load %arg1[%c2, %c0_17, %c0_18] : memref<9x64x256xf32, #tpu.memory_space<vmem>>, vector<1x64x256xf32>
    %18 = vector.shape_cast %17 : vector<1x64x256xf32> to vector<64x256xf32>
    %cst_19 = arith.constant dense<0.000000e+00> : vector<64x16xf32>
    %19 = tpu.matmul %18, %0, %cst_19 {dimension_numbers = #tpu.dot_dimension_numbers<[1], [0], [0], [1], [0, 0, 1, 1], [], []>} : vector<64x256xf32>, vector<256x16xf32>, vector<64x16xf32> -> vector<64x16xf32>
    %c2_20 = arith.constant 2 : index
    %c0_21 = arith.constant 0 : index
    %c0_22 = arith.constant 0 : index
    %20 = vector.load %arg2[%c2_20, %c0_21, %c0_22] : memref<9x16x16xf32, #tpu.memory_space<vmem>>, vector<1x16x16xf32>
    %21 = vector.shape_cast %20 : vector<1x16x16xf32> to vector<16x16xf32>
    %cst_23 = arith.constant dense<0.000000e+00> : vector<64x16xf32>
    %22 = tpu.matmul %19, %21, %cst_23 {dimension_numbers = #tpu.dot_dimension_numbers<[1], [0], [0], [1], [0, 0, 1, 1], [], []>} : vector<64x16xf32>, vector<16x16xf32>, vector<64x16xf32> -> vector<64x16xf32>
    %23 = arith.addf %16, %22 : vector<64x16xf32>
    %c3 = arith.constant 3 : index
    %c0_24 = arith.constant 0 : index
    %c0_25 = arith.constant 0 : index
    %24 = vector.load %arg1[%c3, %c0_24, %c0_25] : memref<9x64x256xf32, #tpu.memory_space<vmem>>, vector<1x64x256xf32>
    %25 = vector.shape_cast %24 : vector<1x64x256xf32> to vector<64x256xf32>
    %cst_26 = arith.constant dense<0.000000e+00> : vector<64x16xf32>
    %26 = tpu.matmul %25, %0, %cst_26 {dimension_numbers = #tpu.dot_dimension_numbers<[1], [0], [0], [1], [0, 0, 1, 1], [], []>} : vector<64x256xf32>, vector<256x16xf32>, vector<64x16xf32> -> vector<64x16xf32>
    %c3_27 = arith.constant 3 : index
    %c0_28 = arith.constant 0 : index
    %c0_29 = arith.constant 0 : index
    %27 = vector.load %arg2[%c3_27, %c0_28, %c0_29] : memref<9x16x16xf32, #tpu.memory_space<vmem>>, vector<1x16x16xf32>
    %28 = vector.shape_cast %27 : vector<1x16x16xf32> to vector<16x16xf32>
    %cst_30 = arith.constant dense<0.000000e+00> : vector<64x16xf32>
    %29 = tpu.matmul %26, %28, %cst_30 {dimension_numbers = #tpu.dot_dimension_numbers<[1], [0], [0], [1], [0, 0, 1, 1], [], []>} : vector<64x16xf32>, vector<16x16xf32>, vector<64x16xf32> -> vector<64x16xf32>
    %30 = arith.addf %23, %29 : vector<64x16xf32>
    %c4 = arith.constant 4 : index
    %c0_31 = arith.constant 0 : index
    %c0_32 = arith.constant 0 : index
    %31 = vector.load %arg1[%c4, %c0_31, %c0_32] : memref<9x64x256xf32, #tpu.memory_space<vmem>>, vector<1x64x256xf32>
    %32 = vector.shape_cast %31 : vector<1x64x256xf32> to vector<64x256xf32>
    %cst_33 = arith.constant dense<0.000000e+00> : vector<64x16xf32>
    %33 = tpu.matmul %32, %0, %cst_33 {dimension_numbers = #tpu.dot_dimension_numbers<[1], [0], [0], [1], [0, 0, 1, 1], [], []>} : vector<64x256xf32>, vector<256x16xf32>, vector<64x16xf32> -> vector<64x16xf32>
    %c4_34 = arith.constant 4 : index
    %c0_35 = arith.constant 0 : index
    %c0_36 = arith.constant 0 : index
    %34 = vector.load %arg2[%c4_34, %c0_35, %c0_36] : memref<9x16x16xf32, #tpu.memory_space<vmem>>, vector<1x16x16xf32>
    %35 = vector.shape_cast %34 : vector<1x16x16xf32> to vector<16x16xf32>
    %cst_37 = arith.constant dense<0.000000e+00> : vector<64x16xf32>
    %36 = tpu.matmul %33, %35, %cst_37 {dimension_numbers = #tpu.dot_dimension_numbers<[1], [0], [0], [1], [0, 0, 1, 1], [], []>} : vector<64x16xf32>, vector<16x16xf32>, vector<64x16xf32> -> vector<64x16xf32>
    %37 = arith.addf %30, %36 : vector<64x16xf32>
    %c5 = arith.constant 5 : index
    %c0_38 = arith.constant 0 : index
    %c0_39 = arith.constant 0 : index
    %38 = vector.load %arg1[%c5, %c0_38, %c0_39] : memref<9x64x256xf32, #tpu.memory_space<vmem>>, vector<1x64x256xf32>
    %39 = vector.shape_cast %38 : vector<1x64x256xf32> to vector<64x256xf32>
    %cst_40 = arith.constant dense<0.000000e+00> : vector<64x16xf32>
    %40 = tpu.matmul %39, %0, %cst_40 {dimension_numbers = #tpu.dot_dimension_numbers<[1], [0], [0], [1], [0, 0, 1, 1], [], []>} : vector<64x256xf32>, vector<256x16xf32>, vector<64x16xf32> -> vector<64x16xf32>
    %c5_41 = arith.constant 5 : index
    %c0_42 = arith.constant 0 : index
    %c0_43 = arith.constant 0 : index
    %41 = vector.load %arg2[%c5_41, %c0_42, %c0_43] : memref<9x16x16xf32, #tpu.memory_space<vmem>>, vector<1x16x16xf32>
    %42 = vector.shape_cast %41 : vector<1x16x16xf32> to vector<16x16xf32>
    %cst_44 = arith.constant dense<0.000000e+00> : vector<64x16xf32>
    %43 = tpu.matmul %40, %42, %cst_44 {dimension_numbers = #tpu.dot_dimension_numbers<[1], [0], [0], [1], [0, 0, 1, 1], [], []>} : vector<64x16xf32>, vector<16x16xf32>, vector<64x16xf32> -> vector<64x16xf32>
    %44 = arith.addf %37, %43 : vector<64x16xf32>
    %c6 = arith.constant 6 : index
    %c0_45 = arith.constant 0 : index
    %c0_46 = arith.constant 0 : index
    %45 = vector.load %arg1[%c6, %c0_45, %c0_46] : memref<9x64x256xf32, #tpu.memory_space<vmem>>, vector<1x64x256xf32>
    %46 = vector.shape_cast %45 : vector<1x64x256xf32> to vector<64x256xf32>
    %cst_47 = arith.constant dense<0.000000e+00> : vector<64x16xf32>
    %47 = tpu.matmul %46, %0, %cst_47 {dimension_numbers = #tpu.dot_dimension_numbers<[1], [0], [0], [1], [0, 0, 1, 1], [], []>} : vector<64x256xf32>, vector<256x16xf32>, vector<64x16xf32> -> vector<64x16xf32>
    %c6_48 = arith.constant 6 : index
    %c0_49 = arith.constant 0 : index
    %c0_50 = arith.constant 0 : index
    %48 = vector.load %arg2[%c6_48, %c0_49, %c0_50] : memref<9x16x16xf32, #tpu.memory_space<vmem>>, vector<1x16x16xf32>
    %49 = vector.shape_cast %48 : vector<1x16x16xf32> to vector<16x16xf32>
    %cst_51 = arith.constant dense<0.000000e+00> : vector<64x16xf32>
    %50 = tpu.matmul %47, %49, %cst_51 {dimension_numbers = #tpu.dot_dimension_numbers<[1], [0], [0], [1], [0, 0, 1, 1], [], []>} : vector<64x16xf32>, vector<16x16xf32>, vector<64x16xf32> -> vector<64x16xf32>
    %51 = arith.addf %44, %50 : vector<64x16xf32>
    %c7 = arith.constant 7 : index
    %c0_52 = arith.constant 0 : index
    %c0_53 = arith.constant 0 : index
    %52 = vector.load %arg1[%c7, %c0_52, %c0_53] : memref<9x64x256xf32, #tpu.memory_space<vmem>>, vector<1x64x256xf32>
    %53 = vector.shape_cast %52 : vector<1x64x256xf32> to vector<64x256xf32>
    %cst_54 = arith.constant dense<0.000000e+00> : vector<64x16xf32>
    %54 = tpu.matmul %53, %0, %cst_54 {dimension_numbers = #tpu.dot_dimension_numbers<[1], [0], [0], [1], [0, 0, 1, 1], [], []>} : vector<64x256xf32>, vector<256x16xf32>, vector<64x16xf32> -> vector<64x16xf32>
    %c7_55 = arith.constant 7 : index
    %c0_56 = arith.constant 0 : index
    %c0_57 = arith.constant 0 : index
    %55 = vector.load %arg2[%c7_55, %c0_56, %c0_57] : memref<9x16x16xf32, #tpu.memory_space<vmem>>, vector<1x16x16xf32>
    %56 = vector.shape_cast %55 : vector<1x16x16xf32> to vector<16x16xf32>
    %cst_58 = arith.constant dense<0.000000e+00> : vector<64x16xf32>
    %57 = tpu.matmul %54, %56, %cst_58 {dimension_numbers = #tpu.dot_dimension_numbers<[1], [0], [0], [1], [0, 0, 1, 1], [], []>} : vector<64x16xf32>, vector<16x16xf32>, vector<64x16xf32> -> vector<64x16xf32>
    %58 = arith.addf %51, %57 : vector<64x16xf32>
    %c8 = arith.constant 8 : index
    %c0_59 = arith.constant 0 : index
    %c0_60 = arith.constant 0 : index
    %59 = vector.load %arg1[%c8, %c0_59, %c0_60] : memref<9x64x256xf32, #tpu.memory_space<vmem>>, vector<1x64x256xf32>
    %60 = vector.shape_cast %59 : vector<1x64x256xf32> to vector<64x256xf32>
    %cst_61 = arith.constant dense<0.000000e+00> : vector<64x16xf32>
    %61 = tpu.matmul %60, %0, %cst_61 {dimension_numbers = #tpu.dot_dimension_numbers<[1], [0], [0], [1], [0, 0, 1, 1], [], []>} : vector<64x256xf32>, vector<256x16xf32>, vector<64x16xf32> -> vector<64x16xf32>
    %c8_62 = arith.constant 8 : index
    %c0_63 = arith.constant 0 : index
    %c0_64 = arith.constant 0 : index
    %62 = vector.load %arg2[%c8_62, %c0_63, %c0_64] : memref<9x16x16xf32, #tpu.memory_space<vmem>>, vector<1x16x16xf32>
    %63 = vector.shape_cast %62 : vector<1x16x16xf32> to vector<16x16xf32>
    %cst_65 = arith.constant dense<0.000000e+00> : vector<64x16xf32>
    %64 = tpu.matmul %61, %63, %cst_65 {dimension_numbers = #tpu.dot_dimension_numbers<[1], [0], [0], [1], [0, 0, 1, 1], [], []>} : vector<64x16xf32>, vector<16x16xf32>, vector<64x16xf32> -> vector<64x16xf32>
    %65 = arith.addf %58, %64 : vector<64x16xf32>
    %cst_66 = arith.constant 0.000000e+00 : f32
    %66 = vector.broadcast %cst_66 : f32 to vector<64x16xf32>
    %67 = arith.maximumf %65, %66 : vector<64x16xf32>
    %cst_67 = arith.constant dense<0.000000e+00> : vector<16xf32>
    %68 = vector.multi_reduction <add>, %67, %cst_67 [0] : vector<64x16xf32> to vector<16xf32>
    %69 = vector.shape_cast %68 : vector<16xf32> to vector<1x16xf32>
    %c0_68 = arith.constant 0 : index
    %c0_69 = arith.constant 0 : index
    %70 = vector.load %arg6[%c0_68, %c0_69] : memref<16x2xf32, #tpu.memory_space<vmem>>, vector<16x2xf32>
    %cst_70 = arith.constant dense<0.000000e+00> : vector<1x2xf32>
    %71 = tpu.matmul %69, %70, %cst_70 {dimension_numbers = #tpu.dot_dimension_numbers<[1], [0], [0], [1], [0, 0, 1, 1], [], []>} : vector<1x16xf32>, vector<16x2xf32>, vector<1x2xf32> -> vector<1x2xf32>
    %c0_71 = arith.constant 0 : index
    %c0_72 = arith.constant 0 : index
    %72 = vector.load %arg7[%c0_71, %c0_72] : memref<2x16xf32, #tpu.memory_space<vmem>>, vector<2x16xf32>
    %cst_73 = arith.constant dense<0.000000e+00> : vector<1x16xf32>
    %73 = tpu.matmul %71, %72, %cst_73 {dimension_numbers = #tpu.dot_dimension_numbers<[1], [0], [0], [1], [0, 0, 1, 1], [], []>} : vector<1x2xf32>, vector<2x16xf32>, vector<1x16xf32> -> vector<1x16xf32>
    %74 = vector.broadcast %73 : vector<1x16xf32> to vector<64x16xf32>
    %75 = arith.subf %67, %74 : vector<64x16xf32>
    %76 = arith.mulf %75, %75 : vector<64x16xf32>
    %cst_74 = arith.constant dense<0.000000e+00> : vector<16xf32>
    %77 = vector.multi_reduction <add>, %76, %cst_74 [0] : vector<64x16xf32> to vector<16xf32>
    %78 = vector.shape_cast %77 : vector<16xf32> to vector<1x16xf32>
    %c0_75 = arith.constant 0 : index
    %c0_76 = arith.constant 0 : index
    %79 = vector.load %arg6[%c0_75, %c0_76] : memref<16x2xf32, #tpu.memory_space<vmem>>, vector<16x2xf32>
    %cst_77 = arith.constant dense<0.000000e+00> : vector<1x2xf32>
    %80 = tpu.matmul %78, %79, %cst_77 {dimension_numbers = #tpu.dot_dimension_numbers<[1], [0], [0], [1], [0, 0, 1, 1], [], []>} : vector<1x16xf32>, vector<16x2xf32>, vector<1x2xf32> -> vector<1x2xf32>
    %c0_78 = arith.constant 0 : index
    %c0_79 = arith.constant 0 : index
    %81 = vector.load %arg7[%c0_78, %c0_79] : memref<2x16xf32, #tpu.memory_space<vmem>>, vector<2x16xf32>
    %cst_80 = arith.constant dense<0.000000e+00> : vector<1x16xf32>
    %82 = tpu.matmul %80, %81, %cst_80 {dimension_numbers = #tpu.dot_dimension_numbers<[1], [0], [0], [1], [0, 0, 1, 1], [], []>} : vector<1x2xf32>, vector<2x16xf32>, vector<1x16xf32> -> vector<1x16xf32>
    %cst_81 = arith.constant 9.99999974E-6 : f32
    %83 = vector.broadcast %cst_81 : f32 to vector<1x16xf32>
    %84 = arith.addf %82, %83 : vector<1x16xf32>
    %85 = math.rsqrt %84 : vector<1x16xf32>
    %86 = vector.broadcast %85 : vector<1x16xf32> to vector<64x16xf32>
    %87 = arith.mulf %75, %86 : vector<64x16xf32>
    %c0_82 = arith.constant 0 : index
    %c0_83 = arith.constant 0 : index
    %88 = vector.load %arg4[%c0_82, %c0_83] : memref<64x16xf32, #tpu.memory_space<vmem>>, vector<64x16xf32>
    %89 = arith.mulf %87, %88 : vector<64x16xf32>
    %c0_84 = arith.constant 0 : index
    %c0_85 = arith.constant 0 : index
    %90 = vector.load %arg5[%c0_84, %c0_85] : memref<64x16xf32, #tpu.memory_space<vmem>>, vector<64x16xf32>
    %91 = arith.addf %89, %90 : vector<64x16xf32>
    %c0_86 = arith.constant 0 : index
    %c0_87 = arith.constant 0 : index
    %92 = vector.load %arg10[%c0_86, %c0_87] : memref<1x32xf32, #tpu.memory_space<vmem>>, vector<1x32xf32>
    %c0_88 = arith.constant 0 : index
    %c0_89 = arith.constant 0 : index
    %c0_90 = arith.constant 0 : index
    %93 = vector.load %arg8[%c0_88, %c0_89, %c0_90] : memref<9x16x64xf32, #tpu.memory_space<vmem>>, vector<1x16x64xf32>
    %94 = vector.shape_cast %93 : vector<1x16x64xf32> to vector<16x64xf32>
    %cst_91 = arith.constant dense<0.000000e+00> : vector<16x16xf32>
    %95 = tpu.matmul %94, %91, %cst_91 {dimension_numbers = #tpu.dot_dimension_numbers<[1], [0], [0], [1], [0, 0, 1, 1], [], []>} : vector<16x64xf32>, vector<64x16xf32>, vector<16x16xf32> -> vector<16x16xf32>
    %c0_92 = arith.constant 0 : index
    %c0_93 = arith.constant 0 : index
    %c0_94 = arith.constant 0 : index
    %96 = vector.load %arg9[%c0_92, %c0_93, %c0_94] : memref<9x16x32xf32, #tpu.memory_space<vmem>>, vector<1x16x32xf32>
    %97 = vector.shape_cast %96 : vector<1x16x32xf32> to vector<16x32xf32>
    %cst_95 = arith.constant dense<0.000000e+00> : vector<16x32xf32>
    %98 = tpu.matmul %95, %97, %cst_95 {dimension_numbers = #tpu.dot_dimension_numbers<[1], [0], [0], [1], [0, 0, 1, 1], [], []>} : vector<16x16xf32>, vector<16x32xf32>, vector<16x32xf32> -> vector<16x32xf32>
    %99 = vector.broadcast %92 : vector<1x32xf32> to vector<16x32xf32>
    %100 = arith.addf %99, %98 : vector<16x32xf32>
    %c1_96 = arith.constant 1 : index
    %c0_97 = arith.constant 0 : index
    %c0_98 = arith.constant 0 : index
    %101 = vector.load %arg8[%c1_96, %c0_97, %c0_98] : memref<9x16x64xf32, #tpu.memory_space<vmem>>, vector<1x16x64xf32>
    %102 = vector.shape_cast %101 : vector<1x16x64xf32> to vector<16x64xf32>
    %cst_99 = arith.constant dense<0.000000e+00> : vector<16x16xf32>
    %103 = tpu.matmul %102, %91, %cst_99 {dimension_numbers = #tpu.dot_dimension_numbers<[1], [0], [0], [1], [0, 0, 1, 1], [], []>} : vector<16x64xf32>, vector<64x16xf32>, vector<16x16xf32> -> vector<16x16xf32>
    %c1_100 = arith.constant 1 : index
    %c0_101 = arith.constant 0 : index
    %c0_102 = arith.constant 0 : index
    %104 = vector.load %arg9[%c1_100, %c0_101, %c0_102] : memref<9x16x32xf32, #tpu.memory_space<vmem>>, vector<1x16x32xf32>
    %105 = vector.shape_cast %104 : vector<1x16x32xf32> to vector<16x32xf32>
    %cst_103 = arith.constant dense<0.000000e+00> : vector<16x32xf32>
    %106 = tpu.matmul %103, %105, %cst_103 {dimension_numbers = #tpu.dot_dimension_numbers<[1], [0], [0], [1], [0, 0, 1, 1], [], []>} : vector<16x16xf32>, vector<16x32xf32>, vector<16x32xf32> -> vector<16x32xf32>
    %107 = arith.addf %100, %106 : vector<16x32xf32>
    %c2_104 = arith.constant 2 : index
    %c0_105 = arith.constant 0 : index
    %c0_106 = arith.constant 0 : index
    %108 = vector.load %arg8[%c2_104, %c0_105, %c0_106] : memref<9x16x64xf32, #tpu.memory_space<vmem>>, vector<1x16x64xf32>
    %109 = vector.shape_cast %108 : vector<1x16x64xf32> to vector<16x64xf32>
    %cst_107 = arith.constant dense<0.000000e+00> : vector<16x16xf32>
    %110 = tpu.matmul %109, %91, %cst_107 {dimension_numbers = #tpu.dot_dimension_numbers<[1], [0], [0], [1], [0, 0, 1, 1], [], []>} : vector<16x64xf32>, vector<64x16xf32>, vector<16x16xf32> -> vector<16x16xf32>
    %c2_108 = arith.constant 2 : index
    %c0_109 = arith.constant 0 : index
    %c0_110 = arith.constant 0 : index
    %111 = vector.load %arg9[%c2_108, %c0_109, %c0_110] : memref<9x16x32xf32, #tpu.memory_space<vmem>>, vector<1x16x32xf32>
    %112 = vector.shape_cast %111 : vector<1x16x32xf32> to vector<16x32xf32>
    %cst_111 = arith.constant dense<0.000000e+00> : vector<16x32xf32>
    %113 = tpu.matmul %110, %112, %cst_111 {dimension_numbers = #tpu.dot_dimension_numbers<[1], [0], [0], [1], [0, 0, 1, 1], [], []>} : vector<16x16xf32>, vector<16x32xf32>, vector<16x32xf32> -> vector<16x32xf32>
    %114 = arith.addf %107, %113 : vector<16x32xf32>
    %c3_112 = arith.constant 3 : index
    %c0_113 = arith.constant 0 : index
    %c0_114 = arith.constant 0 : index
    %115 = vector.load %arg8[%c3_112, %c0_113, %c0_114] : memref<9x16x64xf32, #tpu.memory_space<vmem>>, vector<1x16x64xf32>
    %116 = vector.shape_cast %115 : vector<1x16x64xf32> to vector<16x64xf32>
    %cst_115 = arith.constant dense<0.000000e+00> : vector<16x16xf32>
    %117 = tpu.matmul %116, %91, %cst_115 {dimension_numbers = #tpu.dot_dimension_numbers<[1], [0], [0], [1], [0, 0, 1, 1], [], []>} : vector<16x64xf32>, vector<64x16xf32>, vector<16x16xf32> -> vector<16x16xf32>
    %c3_116 = arith.constant 3 : index
    %c0_117 = arith.constant 0 : index
    %c0_118 = arith.constant 0 : index
    %118 = vector.load %arg9[%c3_116, %c0_117, %c0_118] : memref<9x16x32xf32, #tpu.memory_space<vmem>>, vector<1x16x32xf32>
    %119 = vector.shape_cast %118 : vector<1x16x32xf32> to vector<16x32xf32>
    %cst_119 = arith.constant dense<0.000000e+00> : vector<16x32xf32>
    %120 = tpu.matmul %117, %119, %cst_119 {dimension_numbers = #tpu.dot_dimension_numbers<[1], [0], [0], [1], [0, 0, 1, 1], [], []>} : vector<16x16xf32>, vector<16x32xf32>, vector<16x32xf32> -> vector<16x32xf32>
    %121 = arith.addf %114, %120 : vector<16x32xf32>
    %c4_120 = arith.constant 4 : index
    %c0_121 = arith.constant 0 : index
    %c0_122 = arith.constant 0 : index
    %122 = vector.load %arg8[%c4_120, %c0_121, %c0_122] : memref<9x16x64xf32, #tpu.memory_space<vmem>>, vector<1x16x64xf32>
    %123 = vector.shape_cast %122 : vector<1x16x64xf32> to vector<16x64xf32>
    %cst_123 = arith.constant dense<0.000000e+00> : vector<16x16xf32>
    %124 = tpu.matmul %123, %91, %cst_123 {dimension_numbers = #tpu.dot_dimension_numbers<[1], [0], [0], [1], [0, 0, 1, 1], [], []>} : vector<16x64xf32>, vector<64x16xf32>, vector<16x16xf32> -> vector<16x16xf32>
    %c4_124 = arith.constant 4 : index
    %c0_125 = arith.constant 0 : index
    %c0_126 = arith.constant 0 : index
    %125 = vector.load %arg9[%c4_124, %c0_125, %c0_126] : memref<9x16x32xf32, #tpu.memory_space<vmem>>, vector<1x16x32xf32>
    %126 = vector.shape_cast %125 : vector<1x16x32xf32> to vector<16x32xf32>
    %cst_127 = arith.constant dense<0.000000e+00> : vector<16x32xf32>
    %127 = tpu.matmul %124, %126, %cst_127 {dimension_numbers = #tpu.dot_dimension_numbers<[1], [0], [0], [1], [0, 0, 1, 1], [], []>} : vector<16x16xf32>, vector<16x32xf32>, vector<16x32xf32> -> vector<16x32xf32>
    %128 = arith.addf %121, %127 : vector<16x32xf32>
    %c5_128 = arith.constant 5 : index
    %c0_129 = arith.constant 0 : index
    %c0_130 = arith.constant 0 : index
    %129 = vector.load %arg8[%c5_128, %c0_129, %c0_130] : memref<9x16x64xf32, #tpu.memory_space<vmem>>, vector<1x16x64xf32>
    %130 = vector.shape_cast %129 : vector<1x16x64xf32> to vector<16x64xf32>
    %cst_131 = arith.constant dense<0.000000e+00> : vector<16x16xf32>
    %131 = tpu.matmul %130, %91, %cst_131 {dimension_numbers = #tpu.dot_dimension_numbers<[1], [0], [0], [1], [0, 0, 1, 1], [], []>} : vector<16x64xf32>, vector<64x16xf32>, vector<16x16xf32> -> vector<16x16xf32>
    %c5_132 = arith.constant 5 : index
    %c0_133 = arith.constant 0 : index
    %c0_134 = arith.constant 0 : index
    %132 = vector.load %arg9[%c5_132, %c0_133, %c0_134] : memref<9x16x32xf32, #tpu.memory_space<vmem>>, vector<1x16x32xf32>
    %133 = vector.shape_cast %132 : vector<1x16x32xf32> to vector<16x32xf32>
    %cst_135 = arith.constant dense<0.000000e+00> : vector<16x32xf32>
    %134 = tpu.matmul %131, %133, %cst_135 {dimension_numbers = #tpu.dot_dimension_numbers<[1], [0], [0], [1], [0, 0, 1, 1], [], []>} : vector<16x16xf32>, vector<16x32xf32>, vector<16x32xf32> -> vector<16x32xf32>
    %135 = arith.addf %128, %134 : vector<16x32xf32>
    %c6_136 = arith.constant 6 : index
    %c0_137 = arith.constant 0 : index
    %c0_138 = arith.constant 0 : index
    %136 = vector.load %arg8[%c6_136, %c0_137, %c0_138] : memref<9x16x64xf32, #tpu.memory_space<vmem>>, vector<1x16x64xf32>
    %137 = vector.shape_cast %136 : vector<1x16x64xf32> to vector<16x64xf32>
    %cst_139 = arith.constant dense<0.000000e+00> : vector<16x16xf32>
    %138 = tpu.matmul %137, %91, %cst_139 {dimension_numbers = #tpu.dot_dimension_numbers<[1], [0], [0], [1], [0, 0, 1, 1], [], []>} : vector<16x64xf32>, vector<64x16xf32>, vector<16x16xf32> -> vector<16x16xf32>
    %c6_140 = arith.constant 6 : index
    %c0_141 = arith.constant 0 : index
    %c0_142 = arith.constant 0 : index
    %139 = vector.load %arg9[%c6_140, %c0_141, %c0_142] : memref<9x16x32xf32, #tpu.memory_space<vmem>>, vector<1x16x32xf32>
    %140 = vector.shape_cast %139 : vector<1x16x32xf32> to vector<16x32xf32>
    %cst_143 = arith.constant dense<0.000000e+00> : vector<16x32xf32>
    %141 = tpu.matmul %138, %140, %cst_143 {dimension_numbers = #tpu.dot_dimension_numbers<[1], [0], [0], [1], [0, 0, 1, 1], [], []>} : vector<16x16xf32>, vector<16x32xf32>, vector<16x32xf32> -> vector<16x32xf32>
    %142 = arith.addf %135, %141 : vector<16x32xf32>
    %c7_144 = arith.constant 7 : index
    %c0_145 = arith.constant 0 : index
    %c0_146 = arith.constant 0 : index
    %143 = vector.load %arg8[%c7_144, %c0_145, %c0_146] : memref<9x16x64xf32, #tpu.memory_space<vmem>>, vector<1x16x64xf32>
    %144 = vector.shape_cast %143 : vector<1x16x64xf32> to vector<16x64xf32>
    %cst_147 = arith.constant dense<0.000000e+00> : vector<16x16xf32>
    %145 = tpu.matmul %144, %91, %cst_147 {dimension_numbers = #tpu.dot_dimension_numbers<[1], [0], [0], [1], [0, 0, 1, 1], [], []>} : vector<16x64xf32>, vector<64x16xf32>, vector<16x16xf32> -> vector<16x16xf32>
    %c7_148 = arith.constant 7 : index
    %c0_149 = arith.constant 0 : index
    %c0_150 = arith.constant 0 : index
    %146 = vector.load %arg9[%c7_148, %c0_149, %c0_150] : memref<9x16x32xf32, #tpu.memory_space<vmem>>, vector<1x16x32xf32>
    %147 = vector.shape_cast %146 : vector<1x16x32xf32> to vector<16x32xf32>
    %cst_151 = arith.constant dense<0.000000e+00> : vector<16x32xf32>
    %148 = tpu.matmul %145, %147, %cst_151 {dimension_numbers = #tpu.dot_dimension_numbers<[1], [0], [0], [1], [0, 0, 1, 1], [], []>} : vector<16x16xf32>, vector<16x32xf32>, vector<16x32xf32> -> vector<16x32xf32>
    %149 = arith.addf %142, %148 : vector<16x32xf32>
    %c8_152 = arith.constant 8 : index
    %c0_153 = arith.constant 0 : index
    %c0_154 = arith.constant 0 : index
    %150 = vector.load %arg8[%c8_152, %c0_153, %c0_154] : memref<9x16x64xf32, #tpu.memory_space<vmem>>, vector<1x16x64xf32>
    %151 = vector.shape_cast %150 : vector<1x16x64xf32> to vector<16x64xf32>
    %cst_155 = arith.constant dense<0.000000e+00> : vector<16x16xf32>
    %152 = tpu.matmul %151, %91, %cst_155 {dimension_numbers = #tpu.dot_dimension_numbers<[1], [0], [0], [1], [0, 0, 1, 1], [], []>} : vector<16x64xf32>, vector<64x16xf32>, vector<16x16xf32> -> vector<16x16xf32>
    %c8_156 = arith.constant 8 : index
    %c0_157 = arith.constant 0 : index
    %c0_158 = arith.constant 0 : index
    %153 = vector.load %arg9[%c8_156, %c0_157, %c0_158] : memref<9x16x32xf32, #tpu.memory_space<vmem>>, vector<1x16x32xf32>
    %154 = vector.shape_cast %153 : vector<1x16x32xf32> to vector<16x32xf32>
    %cst_159 = arith.constant dense<0.000000e+00> : vector<16x32xf32>
    %155 = tpu.matmul %152, %154, %cst_159 {dimension_numbers = #tpu.dot_dimension_numbers<[1], [0], [0], [1], [0, 0, 1, 1], [], []>} : vector<16x16xf32>, vector<16x32xf32>, vector<16x32xf32> -> vector<16x32xf32>
    %156 = arith.addf %149, %155 : vector<16x32xf32>
    %cst_160 = arith.constant 0.000000e+00 : f32
    %157 = vector.broadcast %cst_160 : f32 to vector<16x32xf32>
    %158 = arith.maximumf %156, %157 : vector<16x32xf32>
    %cst_161 = arith.constant dense<0.000000e+00> : vector<32xf32>
    %159 = vector.multi_reduction <add>, %158, %cst_161 [0] : vector<16x32xf32> to vector<32xf32>
    %160 = vector.shape_cast %159 : vector<32xf32> to vector<1x32xf32>
    %c0_162 = arith.constant 0 : index
    %c0_163 = arith.constant 0 : index
    %161 = vector.load %arg13[%c0_162, %c0_163] : memref<32x2xf32, #tpu.memory_space<vmem>>, vector<32x2xf32>
    %cst_164 = arith.constant dense<0.000000e+00> : vector<1x2xf32>
    %162 = tpu.matmul %160, %161, %cst_164 {dimension_numbers = #tpu.dot_dimension_numbers<[1], [0], [0], [1], [0, 0, 1, 1], [], []>} : vector<1x32xf32>, vector<32x2xf32>, vector<1x2xf32> -> vector<1x2xf32>
    %c0_165 = arith.constant 0 : index
    %c0_166 = arith.constant 0 : index
    %163 = vector.load %arg14[%c0_165, %c0_166] : memref<2x32xf32, #tpu.memory_space<vmem>>, vector<2x32xf32>
    %cst_167 = arith.constant dense<0.000000e+00> : vector<1x32xf32>
    %164 = tpu.matmul %162, %163, %cst_167 {dimension_numbers = #tpu.dot_dimension_numbers<[1], [0], [0], [1], [0, 0, 1, 1], [], []>} : vector<1x2xf32>, vector<2x32xf32>, vector<1x32xf32> -> vector<1x32xf32>
    %165 = vector.broadcast %164 : vector<1x32xf32> to vector<16x32xf32>
    %166 = arith.subf %158, %165 : vector<16x32xf32>
    %167 = arith.mulf %166, %166 : vector<16x32xf32>
    %cst_168 = arith.constant dense<0.000000e+00> : vector<32xf32>
    %168 = vector.multi_reduction <add>, %167, %cst_168 [0] : vector<16x32xf32> to vector<32xf32>
    %169 = vector.shape_cast %168 : vector<32xf32> to vector<1x32xf32>
    %c0_169 = arith.constant 0 : index
    %c0_170 = arith.constant 0 : index
    %170 = vector.load %arg13[%c0_169, %c0_170] : memref<32x2xf32, #tpu.memory_space<vmem>>, vector<32x2xf32>
    %cst_171 = arith.constant dense<0.000000e+00> : vector<1x2xf32>
    %171 = tpu.matmul %169, %170, %cst_171 {dimension_numbers = #tpu.dot_dimension_numbers<[1], [0], [0], [1], [0, 0, 1, 1], [], []>} : vector<1x32xf32>, vector<32x2xf32>, vector<1x2xf32> -> vector<1x2xf32>
    %c0_172 = arith.constant 0 : index
    %c0_173 = arith.constant 0 : index
    %172 = vector.load %arg14[%c0_172, %c0_173] : memref<2x32xf32, #tpu.memory_space<vmem>>, vector<2x32xf32>
    %cst_174 = arith.constant dense<0.000000e+00> : vector<1x32xf32>
    %173 = tpu.matmul %171, %172, %cst_174 {dimension_numbers = #tpu.dot_dimension_numbers<[1], [0], [0], [1], [0, 0, 1, 1], [], []>} : vector<1x2xf32>, vector<2x32xf32>, vector<1x32xf32> -> vector<1x32xf32>
    %cst_175 = arith.constant 9.99999974E-6 : f32
    %174 = vector.broadcast %cst_175 : f32 to vector<1x32xf32>
    %175 = arith.addf %173, %174 : vector<1x32xf32>
    %176 = math.rsqrt %175 : vector<1x32xf32>
    %177 = vector.broadcast %176 : vector<1x32xf32> to vector<16x32xf32>
    %178 = arith.mulf %166, %177 : vector<16x32xf32>
    %c0_176 = arith.constant 0 : index
    %c0_177 = arith.constant 0 : index
    %179 = vector.load %arg11[%c0_176, %c0_177] : memref<16x32xf32, #tpu.memory_space<vmem>>, vector<16x32xf32>
    %180 = arith.mulf %178, %179 : vector<16x32xf32>
    %c0_178 = arith.constant 0 : index
    %c0_179 = arith.constant 0 : index
    %181 = vector.load %arg12[%c0_178, %c0_179] : memref<16x32xf32, #tpu.memory_space<vmem>>, vector<16x32xf32>
    %182 = arith.addf %180, %181 : vector<16x32xf32>
    %c0_180 = arith.constant 0 : index
    %c0_181 = arith.constant 0 : index
    %183 = vector.load %arg17[%c0_180, %c0_181] : memref<1x32xf32, #tpu.memory_space<vmem>>, vector<1x32xf32>
    %c0_182 = arith.constant 0 : index
    %c0_183 = arith.constant 0 : index
    %c0_184 = arith.constant 0 : index
    %184 = vector.load %arg15[%c0_182, %c0_183, %c0_184] : memref<9x16x16xf32, #tpu.memory_space<vmem>>, vector<1x16x16xf32>
    %185 = vector.shape_cast %184 : vector<1x16x16xf32> to vector<16x16xf32>
    %cst_185 = arith.constant dense<0.000000e+00> : vector<16x32xf32>
    %186 = tpu.matmul %185, %182, %cst_185 {dimension_numbers = #tpu.dot_dimension_numbers<[1], [0], [0], [1], [0, 0, 1, 1], [], []>} : vector<16x16xf32>, vector<16x32xf32>, vector<16x32xf32> -> vector<16x32xf32>
    %c0_186 = arith.constant 0 : index
    %c0_187 = arith.constant 0 : index
    %c0_188 = arith.constant 0 : index
    %187 = vector.load %arg16[%c0_186, %c0_187, %c0_188] : memref<9x32x32xf32, #tpu.memory_space<vmem>>, vector<1x32x32xf32>
    %188 = vector.shape_cast %187 : vector<1x32x32xf32> to vector<32x32xf32>
    %cst_189 = arith.constant dense<0.000000e+00> : vector<16x32xf32>
    %189 = tpu.matmul %186, %188, %cst_189 {dimension_numbers = #tpu.dot_dimension_numbers<[1], [0], [0], [1], [0, 0, 1, 1], [], []>} : vector<16x32xf32>, vector<32x32xf32>, vector<16x32xf32> -> vector<16x32xf32>
    %190 = vector.broadcast %183 : vector<1x32xf32> to vector<16x32xf32>
    %191 = arith.addf %190, %189 : vector<16x32xf32>
    %c1_190 = arith.constant 1 : index
    %c0_191 = arith.constant 0 : index
    %c0_192 = arith.constant 0 : index
    %192 = vector.load %arg15[%c1_190, %c0_191, %c0_192] : memref<9x16x16xf32, #tpu.memory_space<vmem>>, vector<1x16x16xf32>
    %193 = vector.shape_cast %192 : vector<1x16x16xf32> to vector<16x16xf32>
    %cst_193 = arith.constant dense<0.000000e+00> : vector<16x32xf32>
    %194 = tpu.matmul %193, %182, %cst_193 {dimension_numbers = #tpu.dot_dimension_numbers<[1], [0], [0], [1], [0, 0, 1, 1], [], []>} : vector<16x16xf32>, vector<16x32xf32>, vector<16x32xf32> -> vector<16x32xf32>
    %c1_194 = arith.constant 1 : index
    %c0_195 = arith.constant 0 : index
    %c0_196 = arith.constant 0 : index
    %195 = vector.load %arg16[%c1_194, %c0_195, %c0_196] : memref<9x32x32xf32, #tpu.memory_space<vmem>>, vector<1x32x32xf32>
    %196 = vector.shape_cast %195 : vector<1x32x32xf32> to vector<32x32xf32>
    %cst_197 = arith.constant dense<0.000000e+00> : vector<16x32xf32>
    %197 = tpu.matmul %194, %196, %cst_197 {dimension_numbers = #tpu.dot_dimension_numbers<[1], [0], [0], [1], [0, 0, 1, 1], [], []>} : vector<16x32xf32>, vector<32x32xf32>, vector<16x32xf32> -> vector<16x32xf32>
    %198 = arith.addf %191, %197 : vector<16x32xf32>
    %c2_198 = arith.constant 2 : index
    %c0_199 = arith.constant 0 : index
    %c0_200 = arith.constant 0 : index
    %199 = vector.load %arg15[%c2_198, %c0_199, %c0_200] : memref<9x16x16xf32, #tpu.memory_space<vmem>>, vector<1x16x16xf32>
    %200 = vector.shape_cast %199 : vector<1x16x16xf32> to vector<16x16xf32>
    %cst_201 = arith.constant dense<0.000000e+00> : vector<16x32xf32>
    %201 = tpu.matmul %200, %182, %cst_201 {dimension_numbers = #tpu.dot_dimension_numbers<[1], [0], [0], [1], [0, 0, 1, 1], [], []>} : vector<16x16xf32>, vector<16x32xf32>, vector<16x32xf32> -> vector<16x32xf32>
    %c2_202 = arith.constant 2 : index
    %c0_203 = arith.constant 0 : index
    %c0_204 = arith.constant 0 : index
    %202 = vector.load %arg16[%c2_202, %c0_203, %c0_204] : memref<9x32x32xf32, #tpu.memory_space<vmem>>, vector<1x32x32xf32>
    %203 = vector.shape_cast %202 : vector<1x32x32xf32> to vector<32x32xf32>
    %cst_205 = arith.constant dense<0.000000e+00> : vector<16x32xf32>
    %204 = tpu.matmul %201, %203, %cst_205 {dimension_numbers = #tpu.dot_dimension_numbers<[1], [0], [0], [1], [0, 0, 1, 1], [], []>} : vector<16x32xf32>, vector<32x32xf32>, vector<16x32xf32> -> vector<16x32xf32>
    %205 = arith.addf %198, %204 : vector<16x32xf32>
    %c3_206 = arith.constant 3 : index
    %c0_207 = arith.constant 0 : index
    %c0_208 = arith.constant 0 : index
    %206 = vector.load %arg15[%c3_206, %c0_207, %c0_208] : memref<9x16x16xf32, #tpu.memory_space<vmem>>, vector<1x16x16xf32>
    %207 = vector.shape_cast %206 : vector<1x16x16xf32> to vector<16x16xf32>
    %cst_209 = arith.constant dense<0.000000e+00> : vector<16x32xf32>
    %208 = tpu.matmul %207, %182, %cst_209 {dimension_numbers = #tpu.dot_dimension_numbers<[1], [0], [0], [1], [0, 0, 1, 1], [], []>} : vector<16x16xf32>, vector<16x32xf32>, vector<16x32xf32> -> vector<16x32xf32>
    %c3_210 = arith.constant 3 : index
    %c0_211 = arith.constant 0 : index
    %c0_212 = arith.constant 0 : index
    %209 = vector.load %arg16[%c3_210, %c0_211, %c0_212] : memref<9x32x32xf32, #tpu.memory_space<vmem>>, vector<1x32x32xf32>
    %210 = vector.shape_cast %209 : vector<1x32x32xf32> to vector<32x32xf32>
    %cst_213 = arith.constant dense<0.000000e+00> : vector<16x32xf32>
    %211 = tpu.matmul %208, %210, %cst_213 {dimension_numbers = #tpu.dot_dimension_numbers<[1], [0], [0], [1], [0, 0, 1, 1], [], []>} : vector<16x32xf32>, vector<32x32xf32>, vector<16x32xf32> -> vector<16x32xf32>
    %212 = arith.addf %205, %211 : vector<16x32xf32>
    %c4_214 = arith.constant 4 : index
    %c0_215 = arith.constant 0 : index
    %c0_216 = arith.constant 0 : index
    %213 = vector.load %arg15[%c4_214, %c0_215, %c0_216] : memref<9x16x16xf32, #tpu.memory_space<vmem>>, vector<1x16x16xf32>
    %214 = vector.shape_cast %213 : vector<1x16x16xf32> to vector<16x16xf32>
    %cst_217 = arith.constant dense<0.000000e+00> : vector<16x32xf32>
    %215 = tpu.matmul %214, %182, %cst_217 {dimension_numbers = #tpu.dot_dimension_numbers<[1], [0], [0], [1], [0, 0, 1, 1], [], []>} : vector<16x16xf32>, vector<16x32xf32>, vector<16x32xf32> -> vector<16x32xf32>
    %c4_218 = arith.constant 4 : index
    %c0_219 = arith.constant 0 : index
    %c0_220 = arith.constant 0 : index
    %216 = vector.load %arg16[%c4_218, %c0_219, %c0_220] : memref<9x32x32xf32, #tpu.memory_space<vmem>>, vector<1x32x32xf32>
    %217 = vector.shape_cast %216 : vector<1x32x32xf32> to vector<32x32xf32>
    %cst_221 = arith.constant dense<0.000000e+00> : vector<16x32xf32>
    %218 = tpu.matmul %215, %217, %cst_221 {dimension_numbers = #tpu.dot_dimension_numbers<[1], [0], [0], [1], [0, 0, 1, 1], [], []>} : vector<16x32xf32>, vector<32x32xf32>, vector<16x32xf32> -> vector<16x32xf32>
    %219 = arith.addf %212, %218 : vector<16x32xf32>
    %c5_222 = arith.constant 5 : index
    %c0_223 = arith.constant 0 : index
    %c0_224 = arith.constant 0 : index
    %220 = vector.load %arg15[%c5_222, %c0_223, %c0_224] : memref<9x16x16xf32, #tpu.memory_space<vmem>>, vector<1x16x16xf32>
    %221 = vector.shape_cast %220 : vector<1x16x16xf32> to vector<16x16xf32>
    %cst_225 = arith.constant dense<0.000000e+00> : vector<16x32xf32>
    %222 = tpu.matmul %221, %182, %cst_225 {dimension_numbers = #tpu.dot_dimension_numbers<[1], [0], [0], [1], [0, 0, 1, 1], [], []>} : vector<16x16xf32>, vector<16x32xf32>, vector<16x32xf32> -> vector<16x32xf32>
    %c5_226 = arith.constant 5 : index
    %c0_227 = arith.constant 0 : index
    %c0_228 = arith.constant 0 : index
    %223 = vector.load %arg16[%c5_226, %c0_227, %c0_228] : memref<9x32x32xf32, #tpu.memory_space<vmem>>, vector<1x32x32xf32>
    %224 = vector.shape_cast %223 : vector<1x32x32xf32> to vector<32x32xf32>
    %cst_229 = arith.constant dense<0.000000e+00> : vector<16x32xf32>
    %225 = tpu.matmul %222, %224, %cst_229 {dimension_numbers = #tpu.dot_dimension_numbers<[1], [0], [0], [1], [0, 0, 1, 1], [], []>} : vector<16x32xf32>, vector<32x32xf32>, vector<16x32xf32> -> vector<16x32xf32>
    %226 = arith.addf %219, %225 : vector<16x32xf32>
    %c6_230 = arith.constant 6 : index
    %c0_231 = arith.constant 0 : index
    %c0_232 = arith.constant 0 : index
    %227 = vector.load %arg15[%c6_230, %c0_231, %c0_232] : memref<9x16x16xf32, #tpu.memory_space<vmem>>, vector<1x16x16xf32>
    %228 = vector.shape_cast %227 : vector<1x16x16xf32> to vector<16x16xf32>
    %cst_233 = arith.constant dense<0.000000e+00> : vector<16x32xf32>
    %229 = tpu.matmul %228, %182, %cst_233 {dimension_numbers = #tpu.dot_dimension_numbers<[1], [0], [0], [1], [0, 0, 1, 1], [], []>} : vector<16x16xf32>, vector<16x32xf32>, vector<16x32xf32> -> vector<16x32xf32>
    %c6_234 = arith.constant 6 : index
    %c0_235 = arith.constant 0 : index
    %c0_236 = arith.constant 0 : index
    %230 = vector.load %arg16[%c6_234, %c0_235, %c0_236] : memref<9x32x32xf32, #tpu.memory_space<vmem>>, vector<1x32x32xf32>
    %231 = vector.shape_cast %230 : vector<1x32x32xf32> to vector<32x32xf32>
    %cst_237 = arith.constant dense<0.000000e+00> : vector<16x32xf32>
    %232 = tpu.matmul %229, %231, %cst_237 {dimension_numbers = #tpu.dot_dimension_numbers<[1], [0], [0], [1], [0, 0, 1, 1], [], []>} : vector<16x32xf32>, vector<32x32xf32>, vector<16x32xf32> -> vector<16x32xf32>
    %233 = arith.addf %226, %232 : vector<16x32xf32>
    %c7_238 = arith.constant 7 : index
    %c0_239 = arith.constant 0 : index
    %c0_240 = arith.constant 0 : index
    %234 = vector.load %arg15[%c7_238, %c0_239, %c0_240] : memref<9x16x16xf32, #tpu.memory_space<vmem>>, vector<1x16x16xf32>
    %235 = vector.shape_cast %234 : vector<1x16x16xf32> to vector<16x16xf32>
    %cst_241 = arith.constant dense<0.000000e+00> : vector<16x32xf32>
    %236 = tpu.matmul %235, %182, %cst_241 {dimension_numbers = #tpu.dot_dimension_numbers<[1], [0], [0], [1], [0, 0, 1, 1], [], []>} : vector<16x16xf32>, vector<16x32xf32>, vector<16x32xf32> -> vector<16x32xf32>
    %c7_242 = arith.constant 7 : index
    %c0_243 = arith.constant 0 : index
    %c0_244 = arith.constant 0 : index
    %237 = vector.load %arg16[%c7_242, %c0_243, %c0_244] : memref<9x32x32xf32, #tpu.memory_space<vmem>>, vector<1x32x32xf32>
    %238 = vector.shape_cast %237 : vector<1x32x32xf32> to vector<32x32xf32>
    %cst_245 = arith.constant dense<0.000000e+00> : vector<16x32xf32>
    %239 = tpu.matmul %236, %238, %cst_245 {dimension_numbers = #tpu.dot_dimension_numbers<[1], [0], [0], [1], [0, 0, 1, 1], [], []>} : vector<16x32xf32>, vector<32x32xf32>, vector<16x32xf32> -> vector<16x32xf32>
    %240 = arith.addf %233, %239 : vector<16x32xf32>
    %c8_246 = arith.constant 8 : index
    %c0_247 = arith.constant 0 : index
    %c0_248 = arith.constant 0 : index
    %241 = vector.load %arg15[%c8_246, %c0_247, %c0_248] : memref<9x16x16xf32, #tpu.memory_space<vmem>>, vector<1x16x16xf32>
    %242 = vector.shape_cast %241 : vector<1x16x16xf32> to vector<16x16xf32>
    %cst_249 = arith.constant dense<0.000000e+00> : vector<16x32xf32>
    %243 = tpu.matmul %242, %182, %cst_249 {dimension_numbers = #tpu.dot_dimension_numbers<[1], [0], [0], [1], [0, 0, 1, 1], [], []>} : vector<16x16xf32>, vector<16x32xf32>, vector<16x32xf32> -> vector<16x32xf32>
    %c8_250 = arith.constant 8 : index
    %c0_251 = arith.constant 0 : index
    %c0_252 = arith.constant 0 : index
    %244 = vector.load %arg16[%c8_250, %c0_251, %c0_252] : memref<9x32x32xf32, #tpu.memory_space<vmem>>, vector<1x32x32xf32>
    %245 = vector.shape_cast %244 : vector<1x32x32xf32> to vector<32x32xf32>
    %cst_253 = arith.constant dense<0.000000e+00> : vector<16x32xf32>
    %246 = tpu.matmul %243, %245, %cst_253 {dimension_numbers = #tpu.dot_dimension_numbers<[1], [0], [0], [1], [0, 0, 1, 1], [], []>} : vector<16x32xf32>, vector<32x32xf32>, vector<16x32xf32> -> vector<16x32xf32>
    %247 = arith.addf %240, %246 : vector<16x32xf32>
    %cst_254 = arith.constant 0.000000e+00 : f32
    %248 = vector.broadcast %cst_254 : f32 to vector<16x32xf32>
    %249 = arith.maximumf %247, %248 : vector<16x32xf32>
    %cst_255 = arith.constant dense<0.000000e+00> : vector<32xf32>
    %250 = vector.multi_reduction <add>, %249, %cst_255 [0] : vector<16x32xf32> to vector<32xf32>
    %251 = vector.shape_cast %250 : vector<32xf32> to vector<1x32xf32>
    %c0_256 = arith.constant 0 : index
    %c0_257 = arith.constant 0 : index
    %252 = vector.load %arg13[%c0_256, %c0_257] : memref<32x2xf32, #tpu.memory_space<vmem>>, vector<32x2xf32>
    %cst_258 = arith.constant dense<0.000000e+00> : vector<1x2xf32>
    %253 = tpu.matmul %251, %252, %cst_258 {dimension_numbers = #tpu.dot_dimension_numbers<[1], [0], [0], [1], [0, 0, 1, 1], [], []>} : vector<1x32xf32>, vector<32x2xf32>, vector<1x2xf32> -> vector<1x2xf32>
    %c0_259 = arith.constant 0 : index
    %c0_260 = arith.constant 0 : index
    %254 = vector.load %arg14[%c0_259, %c0_260] : memref<2x32xf32, #tpu.memory_space<vmem>>, vector<2x32xf32>
    %cst_261 = arith.constant dense<0.000000e+00> : vector<1x32xf32>
    %255 = tpu.matmul %253, %254, %cst_261 {dimension_numbers = #tpu.dot_dimension_numbers<[1], [0], [0], [1], [0, 0, 1, 1], [], []>} : vector<1x2xf32>, vector<2x32xf32>, vector<1x32xf32> -> vector<1x32xf32>
    %256 = vector.broadcast %255 : vector<1x32xf32> to vector<16x32xf32>
    %257 = arith.subf %249, %256 : vector<16x32xf32>
    %258 = arith.mulf %257, %257 : vector<16x32xf32>
    %cst_262 = arith.constant dense<0.000000e+00> : vector<32xf32>
    %259 = vector.multi_reduction <add>, %258, %cst_262 [0] : vector<16x32xf32> to vector<32xf32>
    %260 = vector.shape_cast %259 : vector<32xf32> to vector<1x32xf32>
    %c0_263 = arith.constant 0 : index
    %c0_264 = arith.constant 0 : index
    %261 = vector.load %arg13[%c0_263, %c0_264] : memref<32x2xf32, #tpu.memory_space<vmem>>, vector<32x2xf32>
    %cst_265 = arith.constant dense<0.000000e+00> : vector<1x2xf32>
    %262 = tpu.matmul %260, %261, %cst_265 {dimension_numbers = #tpu.dot_dimension_numbers<[1], [0], [0], [1], [0, 0, 1, 1], [], []>} : vector<1x32xf32>, vector<32x2xf32>, vector<1x2xf32> -> vector<1x2xf32>
    %c0_266 = arith.constant 0 : index
    %c0_267 = arith.constant 0 : index
    %263 = vector.load %arg14[%c0_266, %c0_267] : memref<2x32xf32, #tpu.memory_space<vmem>>, vector<2x32xf32>
    %cst_268 = arith.constant dense<0.000000e+00> : vector<1x32xf32>
    %264 = tpu.matmul %262, %263, %cst_268 {dimension_numbers = #tpu.dot_dimension_numbers<[1], [0], [0], [1], [0, 0, 1, 1], [], []>} : vector<1x2xf32>, vector<2x32xf32>, vector<1x32xf32> -> vector<1x32xf32>
    %cst_269 = arith.constant 9.99999974E-6 : f32
    %265 = vector.broadcast %cst_269 : f32 to vector<1x32xf32>
    %266 = arith.addf %264, %265 : vector<1x32xf32>
    %267 = math.rsqrt %266 : vector<1x32xf32>
    %268 = vector.broadcast %267 : vector<1x32xf32> to vector<16x32xf32>
    %269 = arith.mulf %257, %268 : vector<16x32xf32>
    %c0_270 = arith.constant 0 : index
    %c0_271 = arith.constant 0 : index
    %270 = vector.load %arg18[%c0_270, %c0_271] : memref<16x32xf32, #tpu.memory_space<vmem>>, vector<16x32xf32>
    %271 = arith.mulf %269, %270 : vector<16x32xf32>
    %c0_272 = arith.constant 0 : index
    %c0_273 = arith.constant 0 : index
    %272 = vector.load %arg19[%c0_272, %c0_273] : memref<16x32xf32, #tpu.memory_space<vmem>>, vector<16x32xf32>
    %273 = arith.addf %271, %272 : vector<16x32xf32>
    %c0_274 = arith.constant 0 : index
    %c0_275 = arith.constant 0 : index
    %274 = vector.load %arg22[%c0_274, %c0_275] : memref<1x4xf32, #tpu.memory_space<vmem>>, vector<1x4xf32>
    %c0_276 = arith.constant 0 : index
    %c0_277 = arith.constant 0 : index
    %c0_278 = arith.constant 0 : index
    %275 = vector.load %arg20[%c0_276, %c0_277, %c0_278] : memref<9x4x16xf32, #tpu.memory_space<vmem>>, vector<1x4x16xf32>
    %276 = vector.shape_cast %275 : vector<1x4x16xf32> to vector<4x16xf32>
    %cst_279 = arith.constant dense<0.000000e+00> : vector<4x32xf32>
    %277 = tpu.matmul %276, %273, %cst_279 {dimension_numbers = #tpu.dot_dimension_numbers<[1], [0], [0], [1], [0, 0, 1, 1], [], []>} : vector<4x16xf32>, vector<16x32xf32>, vector<4x32xf32> -> vector<4x32xf32>
    %c0_280 = arith.constant 0 : index
    %c0_281 = arith.constant 0 : index
    %c0_282 = arith.constant 0 : index
    %278 = vector.load %arg21[%c0_280, %c0_281, %c0_282] : memref<9x32x4xf32, #tpu.memory_space<vmem>>, vector<1x32x4xf32>
    %279 = vector.shape_cast %278 : vector<1x32x4xf32> to vector<32x4xf32>
    %cst_283 = arith.constant dense<0.000000e+00> : vector<4x4xf32>
    %280 = tpu.matmul %277, %279, %cst_283 {dimension_numbers = #tpu.dot_dimension_numbers<[1], [0], [0], [1], [0, 0, 1, 1], [], []>} : vector<4x32xf32>, vector<32x4xf32>, vector<4x4xf32> -> vector<4x4xf32>
    %281 = vector.broadcast %274 : vector<1x4xf32> to vector<4x4xf32>
    %282 = arith.addf %281, %280 : vector<4x4xf32>
    %c1_284 = arith.constant 1 : index
    %c0_285 = arith.constant 0 : index
    %c0_286 = arith.constant 0 : index
    %283 = vector.load %arg20[%c1_284, %c0_285, %c0_286] : memref<9x4x16xf32, #tpu.memory_space<vmem>>, vector<1x4x16xf32>
    %284 = vector.shape_cast %283 : vector<1x4x16xf32> to vector<4x16xf32>
    %cst_287 = arith.constant dense<0.000000e+00> : vector<4x32xf32>
    %285 = tpu.matmul %284, %273, %cst_287 {dimension_numbers = #tpu.dot_dimension_numbers<[1], [0], [0], [1], [0, 0, 1, 1], [], []>} : vector<4x16xf32>, vector<16x32xf32>, vector<4x32xf32> -> vector<4x32xf32>
    %c1_288 = arith.constant 1 : index
    %c0_289 = arith.constant 0 : index
    %c0_290 = arith.constant 0 : index
    %286 = vector.load %arg21[%c1_288, %c0_289, %c0_290] : memref<9x32x4xf32, #tpu.memory_space<vmem>>, vector<1x32x4xf32>
    %287 = vector.shape_cast %286 : vector<1x32x4xf32> to vector<32x4xf32>
    %cst_291 = arith.constant dense<0.000000e+00> : vector<4x4xf32>
    %288 = tpu.matmul %285, %287, %cst_291 {dimension_numbers = #tpu.dot_dimension_numbers<[1], [0], [0], [1], [0, 0, 1, 1], [], []>} : vector<4x32xf32>, vector<32x4xf32>, vector<4x4xf32> -> vector<4x4xf32>
    %289 = arith.addf %282, %288 : vector<4x4xf32>
    %c2_292 = arith.constant 2 : index
    %c0_293 = arith.constant 0 : index
    %c0_294 = arith.constant 0 : index
    %290 = vector.load %arg20[%c2_292, %c0_293, %c0_294] : memref<9x4x16xf32, #tpu.memory_space<vmem>>, vector<1x4x16xf32>
    %291 = vector.shape_cast %290 : vector<1x4x16xf32> to vector<4x16xf32>
    %cst_295 = arith.constant dense<0.000000e+00> : vector<4x32xf32>
    %292 = tpu.matmul %291, %273, %cst_295 {dimension_numbers = #tpu.dot_dimension_numbers<[1], [0], [0], [1], [0, 0, 1, 1], [], []>} : vector<4x16xf32>, vector<16x32xf32>, vector<4x32xf32> -> vector<4x32xf32>
    %c2_296 = arith.constant 2 : index
    %c0_297 = arith.constant 0 : index
    %c0_298 = arith.constant 0 : index
    %293 = vector.load %arg21[%c2_296, %c0_297, %c0_298] : memref<9x32x4xf32, #tpu.memory_space<vmem>>, vector<1x32x4xf32>
    %294 = vector.shape_cast %293 : vector<1x32x4xf32> to vector<32x4xf32>
    %cst_299 = arith.constant dense<0.000000e+00> : vector<4x4xf32>
    %295 = tpu.matmul %292, %294, %cst_299 {dimension_numbers = #tpu.dot_dimension_numbers<[1], [0], [0], [1], [0, 0, 1, 1], [], []>} : vector<4x32xf32>, vector<32x4xf32>, vector<4x4xf32> -> vector<4x4xf32>
    %296 = arith.addf %289, %295 : vector<4x4xf32>
    %c3_300 = arith.constant 3 : index
    %c0_301 = arith.constant 0 : index
    %c0_302 = arith.constant 0 : index
    %297 = vector.load %arg20[%c3_300, %c0_301, %c0_302] : memref<9x4x16xf32, #tpu.memory_space<vmem>>, vector<1x4x16xf32>
    %298 = vector.shape_cast %297 : vector<1x4x16xf32> to vector<4x16xf32>
    %cst_303 = arith.constant dense<0.000000e+00> : vector<4x32xf32>
    %299 = tpu.matmul %298, %273, %cst_303 {dimension_numbers = #tpu.dot_dimension_numbers<[1], [0], [0], [1], [0, 0, 1, 1], [], []>} : vector<4x16xf32>, vector<16x32xf32>, vector<4x32xf32> -> vector<4x32xf32>
    %c3_304 = arith.constant 3 : index
    %c0_305 = arith.constant 0 : index
    %c0_306 = arith.constant 0 : index
    %300 = vector.load %arg21[%c3_304, %c0_305, %c0_306] : memref<9x32x4xf32, #tpu.memory_space<vmem>>, vector<1x32x4xf32>
    %301 = vector.shape_cast %300 : vector<1x32x4xf32> to vector<32x4xf32>
    %cst_307 = arith.constant dense<0.000000e+00> : vector<4x4xf32>
    %302 = tpu.matmul %299, %301, %cst_307 {dimension_numbers = #tpu.dot_dimension_numbers<[1], [0], [0], [1], [0, 0, 1, 1], [], []>} : vector<4x32xf32>, vector<32x4xf32>, vector<4x4xf32> -> vector<4x4xf32>
    %303 = arith.addf %296, %302 : vector<4x4xf32>
    %c4_308 = arith.constant 4 : index
    %c0_309 = arith.constant 0 : index
    %c0_310 = arith.constant 0 : index
    %304 = vector.load %arg20[%c4_308, %c0_309, %c0_310] : memref<9x4x16xf32, #tpu.memory_space<vmem>>, vector<1x4x16xf32>
    %305 = vector.shape_cast %304 : vector<1x4x16xf32> to vector<4x16xf32>
    %cst_311 = arith.constant dense<0.000000e+00> : vector<4x32xf32>
    %306 = tpu.matmul %305, %273, %cst_311 {dimension_numbers = #tpu.dot_dimension_numbers<[1], [0], [0], [1], [0, 0, 1, 1], [], []>} : vector<4x16xf32>, vector<16x32xf32>, vector<4x32xf32> -> vector<4x32xf32>
    %c4_312 = arith.constant 4 : index
    %c0_313 = arith.constant 0 : index
    %c0_314 = arith.constant 0 : index
    %307 = vector.load %arg21[%c4_312, %c0_313, %c0_314] : memref<9x32x4xf32, #tpu.memory_space<vmem>>, vector<1x32x4xf32>
    %308 = vector.shape_cast %307 : vector<1x32x4xf32> to vector<32x4xf32>
    %cst_315 = arith.constant dense<0.000000e+00> : vector<4x4xf32>
    %309 = tpu.matmul %306, %308, %cst_315 {dimension_numbers = #tpu.dot_dimension_numbers<[1], [0], [0], [1], [0, 0, 1, 1], [], []>} : vector<4x32xf32>, vector<32x4xf32>, vector<4x4xf32> -> vector<4x4xf32>
    %310 = arith.addf %303, %309 : vector<4x4xf32>
    %c5_316 = arith.constant 5 : index
    %c0_317 = arith.constant 0 : index
    %c0_318 = arith.constant 0 : index
    %311 = vector.load %arg20[%c5_316, %c0_317, %c0_318] : memref<9x4x16xf32, #tpu.memory_space<vmem>>, vector<1x4x16xf32>
    %312 = vector.shape_cast %311 : vector<1x4x16xf32> to vector<4x16xf32>
    %cst_319 = arith.constant dense<0.000000e+00> : vector<4x32xf32>
    %313 = tpu.matmul %312, %273, %cst_319 {dimension_numbers = #tpu.dot_dimension_numbers<[1], [0], [0], [1], [0, 0, 1, 1], [], []>} : vector<4x16xf32>, vector<16x32xf32>, vector<4x32xf32> -> vector<4x32xf32>
    %c5_320 = arith.constant 5 : index
    %c0_321 = arith.constant 0 : index
    %c0_322 = arith.constant 0 : index
    %314 = vector.load %arg21[%c5_320, %c0_321, %c0_322] : memref<9x32x4xf32, #tpu.memory_space<vmem>>, vector<1x32x4xf32>
    %315 = vector.shape_cast %314 : vector<1x32x4xf32> to vector<32x4xf32>
    %cst_323 = arith.constant dense<0.000000e+00> : vector<4x4xf32>
    %316 = tpu.matmul %313, %315, %cst_323 {dimension_numbers = #tpu.dot_dimension_numbers<[1], [0], [0], [1], [0, 0, 1, 1], [], []>} : vector<4x32xf32>, vector<32x4xf32>, vector<4x4xf32> -> vector<4x4xf32>
    %317 = arith.addf %310, %316 : vector<4x4xf32>
    %c6_324 = arith.constant 6 : index
    %c0_325 = arith.constant 0 : index
    %c0_326 = arith.constant 0 : index
    %318 = vector.load %arg20[%c6_324, %c0_325, %c0_326] : memref<9x4x16xf32, #tpu.memory_space<vmem>>, vector<1x4x16xf32>
    %319 = vector.shape_cast %318 : vector<1x4x16xf32> to vector<4x16xf32>
    %cst_327 = arith.constant dense<0.000000e+00> : vector<4x32xf32>
    %320 = tpu.matmul %319, %273, %cst_327 {dimension_numbers = #tpu.dot_dimension_numbers<[1], [0], [0], [1], [0, 0, 1, 1], [], []>} : vector<4x16xf32>, vector<16x32xf32>, vector<4x32xf32> -> vector<4x32xf32>
    %c6_328 = arith.constant 6 : index
    %c0_329 = arith.constant 0 : index
    %c0_330 = arith.constant 0 : index
    %321 = vector.load %arg21[%c6_328, %c0_329, %c0_330] : memref<9x32x4xf32, #tpu.memory_space<vmem>>, vector<1x32x4xf32>
    %322 = vector.shape_cast %321 : vector<1x32x4xf32> to vector<32x4xf32>
    %cst_331 = arith.constant dense<0.000000e+00> : vector<4x4xf32>
    %323 = tpu.matmul %320, %322, %cst_331 {dimension_numbers = #tpu.dot_dimension_numbers<[1], [0], [0], [1], [0, 0, 1, 1], [], []>} : vector<4x32xf32>, vector<32x4xf32>, vector<4x4xf32> -> vector<4x4xf32>
    %324 = arith.addf %317, %323 : vector<4x4xf32>
    %c7_332 = arith.constant 7 : index
    %c0_333 = arith.constant 0 : index
    %c0_334 = arith.constant 0 : index
    %325 = vector.load %arg20[%c7_332, %c0_333, %c0_334] : memref<9x4x16xf32, #tpu.memory_space<vmem>>, vector<1x4x16xf32>
    %326 = vector.shape_cast %325 : vector<1x4x16xf32> to vector<4x16xf32>
    %cst_335 = arith.constant dense<0.000000e+00> : vector<4x32xf32>
    %327 = tpu.matmul %326, %273, %cst_335 {dimension_numbers = #tpu.dot_dimension_numbers<[1], [0], [0], [1], [0, 0, 1, 1], [], []>} : vector<4x16xf32>, vector<16x32xf32>, vector<4x32xf32> -> vector<4x32xf32>
    %c7_336 = arith.constant 7 : index
    %c0_337 = arith.constant 0 : index
    %c0_338 = arith.constant 0 : index
    %328 = vector.load %arg21[%c7_336, %c0_337, %c0_338] : memref<9x32x4xf32, #tpu.memory_space<vmem>>, vector<1x32x4xf32>
    %329 = vector.shape_cast %328 : vector<1x32x4xf32> to vector<32x4xf32>
    %cst_339 = arith.constant dense<0.000000e+00> : vector<4x4xf32>
    %330 = tpu.matmul %327, %329, %cst_339 {dimension_numbers = #tpu.dot_dimension_numbers<[1], [0], [0], [1], [0, 0, 1, 1], [], []>} : vector<4x32xf32>, vector<32x4xf32>, vector<4x4xf32> -> vector<4x4xf32>
    %331 = arith.addf %324, %330 : vector<4x4xf32>
    %c8_340 = arith.constant 8 : index
    %c0_341 = arith.constant 0 : index
    %c0_342 = arith.constant 0 : index
    %332 = vector.load %arg20[%c8_340, %c0_341, %c0_342] : memref<9x4x16xf32, #tpu.memory_space<vmem>>, vector<1x4x16xf32>
    %333 = vector.shape_cast %332 : vector<1x4x16xf32> to vector<4x16xf32>
    %cst_343 = arith.constant dense<0.000000e+00> : vector<4x32xf32>
    %334 = tpu.matmul %333, %273, %cst_343 {dimension_numbers = #tpu.dot_dimension_numbers<[1], [0], [0], [1], [0, 0, 1, 1], [], []>} : vector<4x16xf32>, vector<16x32xf32>, vector<4x32xf32> -> vector<4x32xf32>
    %c8_344 = arith.constant 8 : index
    %c0_345 = arith.constant 0 : index
    %c0_346 = arith.constant 0 : index
    %335 = vector.load %arg21[%c8_344, %c0_345, %c0_346] : memref<9x32x4xf32, #tpu.memory_space<vmem>>, vector<1x32x4xf32>
    %336 = vector.shape_cast %335 : vector<1x32x4xf32> to vector<32x4xf32>
    %cst_347 = arith.constant dense<0.000000e+00> : vector<4x4xf32>
    %337 = tpu.matmul %334, %336, %cst_347 {dimension_numbers = #tpu.dot_dimension_numbers<[1], [0], [0], [1], [0, 0, 1, 1], [], []>} : vector<4x32xf32>, vector<32x4xf32>, vector<4x4xf32> -> vector<4x4xf32>
    %338 = arith.addf %331, %337 : vector<4x4xf32>
    %c0_348 = arith.constant 0 : index
    %c0_349 = arith.constant 0 : index
    %339 = vector.load %arg25[%c0_348, %c0_349] : memref<1x4xf32, #tpu.memory_space<vmem>>, vector<1x4xf32>
    %cst_350 = arith.constant 5.000000e-01 : f32
    %340 = vector.broadcast %cst_350 : f32 to vector<1x4xf32>
    %341 = arith.cmpf ogt, %339, %340 : vector<1x4xf32>
    %cst_351 = arith.constant 0.000000e+00 : f32
    %342 = vector.broadcast %cst_351 : f32 to vector<4x4xf32>
    %343 = arith.maximumf %338, %342 : vector<4x4xf32>
    %344 = vector.shape_cast %341 : vector<1x4xi1> to vector<1x4xi1>
    %345 = vector.broadcast %344 : vector<1x4xi1> to vector<4x4xi1>
    %346 = arith.select %345, %343, %338 : vector<4x4xi1>, vector<4x4xf32>
    %cst_352 = arith.constant dense<0.000000e+00> : vector<4xf32>
    %347 = vector.multi_reduction <add>, %346, %cst_352 [0] : vector<4x4xf32> to vector<4xf32>
    %348 = vector.shape_cast %347 : vector<4xf32> to vector<1x4xf32>
    %cst_353 = arith.constant 4.000000e+00 : f32
    %349 = vector.broadcast %cst_353 : f32 to vector<1x4xf32>
    %350 = arith.divf %348, %349 : vector<1x4xf32>
    %351 = vector.broadcast %350 : vector<1x4xf32> to vector<4x4xf32>
    %352 = arith.subf %346, %351 : vector<4x4xf32>
    %353 = arith.mulf %352, %352 : vector<4x4xf32>
    %cst_354 = arith.constant dense<0.000000e+00> : vector<4xf32>
    %354 = vector.multi_reduction <add>, %353, %cst_354 [0] : vector<4x4xf32> to vector<4xf32>
    %355 = vector.shape_cast %354 : vector<4xf32> to vector<1x4xf32>
    %cst_355 = arith.constant 4.000000e+00 : f32
    %356 = vector.broadcast %cst_355 : f32 to vector<1x4xf32>
    %357 = arith.divf %355, %356 : vector<1x4xf32>
    %358 = vector.broadcast %350 : vector<1x4xf32> to vector<4x4xf32>
    %359 = arith.subf %346, %358 : vector<4x4xf32>
    %cst_356 = arith.constant 9.99999974E-6 : f32
    %360 = vector.broadcast %cst_356 : f32 to vector<1x4xf32>
    %361 = arith.addf %357, %360 : vector<1x4xf32>
    %362 = math.rsqrt %361 : vector<1x4xf32>
    %363 = vector.broadcast %362 : vector<1x4xf32> to vector<4x4xf32>
    %364 = arith.mulf %359, %363 : vector<4x4xf32>
    %c0_357 = arith.constant 0 : index
    %c0_358 = arith.constant 0 : index
    %365 = vector.load %arg23[%c0_357, %c0_358] : memref<4x4xf32, #tpu.memory_space<vmem>>, vector<4x4xf32>
    %366 = arith.mulf %364, %365 : vector<4x4xf32>
    %c0_359 = arith.constant 0 : index
    %c0_360 = arith.constant 0 : index
    %367 = vector.load %arg24[%c0_359, %c0_360] : memref<4x4xf32, #tpu.memory_space<vmem>>, vector<4x4xf32>
    %368 = arith.addf %366, %367 : vector<4x4xf32>
    %cst_361 = arith.constant -6.000000e+00 : f32
    %369 = vector.broadcast %cst_361 : f32 to vector<4x4xf32>
    %370 = arith.addf %368, %369 : vector<4x4xf32>
    %cst_362 = arith.constant 5.000000e-01 : f32
    %371 = vector.broadcast %cst_362 : f32 to vector<4x4xf32>
    %372 = arith.mulf %370, %371 : vector<4x4xf32>
    %373 = math.exp %372 : vector<4x4xf32>
    %374 = vector.shape_cast %341 : vector<1x4xi1> to vector<1x4xi1>
    %375 = vector.broadcast %374 : vector<1x4xi1> to vector<4x4xi1>
    %376 = arith.select %375, %373, %368 : vector<4x4xi1>, vector<4x4xf32>
    %c0_363 = arith.constant 0 : index
    %c0_364 = arith.constant 0 : index
    %377 = vector.load %arg26[%c0_363, %c0_364] : memref<4x4xf32, #tpu.memory_space<vmem>>, vector<4x4xf32>
    tpu.vector_store %arg26[%c0_363, %c0_364], %376 {strides = array<i32>} : memref<4x4xf32, #tpu.memory_space<vmem>>, vector<4x4xf32>,
    return
  }
}

</mosaic_0001>

<bundles_post_ra>
// kernel: forward.1
= control target key start
LH: loop header
LB: loop body
LE: loop exit
PB: predicated region body
PF: predicated region fallthrough
CT: control target
= control target key end

     0   :  { %s13129_s0 = inlined_call_operand.vmem [shape: f32[256,16], index: 0, kind: input, shape index: {}]   ;;  %s13130_s1 = inlined_call_operand.vmem [shape: f32[9,64,256], index: 1, kind: input, shape index: {}]   ;;  %s13131_s2 = inlined_call_operand.hbm [shape: f32[9,16,16], index: 2, kind: input, shape index: {}]   ;;  %s13132_s3 = inlined_call_operand.hbm [shape: f32[1,16], index: 3, kind: input, shape index: {}]   ;;  %s13133_s4 = inlined_call_operand.hbm [shape: f32[64,16], index: 4, kind: input, shape index: {}]   ;;  %s13134_s5 = inlined_call_operand.vmem [shape: f32[64,16], index: 5, kind: input, shape index: {}]   ;;  %s13135_s6 = inlined_call_operand.hbm [shape: f32[16,2], index: 6, kind: input, shape index: {}]   ;;  %s13136_s7 = inlined_call_operand.hbm [shape: f32[2,16], index: 7, kind: input, shape index: {}]   ;;  %s13137_s8 = inlined_call_operand.hbm [shape: f32[9,16,64], index: 8, kind: input, shape index: {}]   ;;  %s13138_s9 = inlined_call_operand.hbm [shape: f32[9,16,32], index: 9, kind: input, shape index: {}]   ;;  %s13139_s10 = inlined_call_operand.hbm [shape: f32[1,32], index: 10, kind: input, shape index: {}]   ;;  %s13140_s11 = inlined_call_operand.hbm [shape: f32[16,32], index: 11, kind: input, shape index: {}]   ;;  %s13141_s12 = inlined_call_operand.hbm [shape: f32[16,32], index: 12, kind: input, shape index: {}]   ;;  %s13142_s13 = inlined_call_operand.hbm [shape: f32[32,2], index: 13, kind: input, shape index: {}]   ;;  %s13143_s14 = inlined_call_operand.hbm [shape: f32[2,32], index: 14, kind: input, shape index: {}]   ;;  %s13144_s15 = inlined_call_operand.hbm [shape: f32[9,16,16], index: 15, kind: input, shape index: {}]   ;;  %s13145_s16 = inlined_call_operand.hbm [shape: f32[9,32,32], index: 16, kind: input, shape index: {}]   ;;  %s13146_s17 = inlined_call_operand.hbm [shape: f32[1,32], index: 17, kind: input, shape index: {}]   ;;  %s13147_s18 = inlined_call_operand.hbm [shape: f32[16,32], index: 18, kind: input, shape index: {}]   ;;  %s13148_s19 = inlined_call_operand.hbm [shape: f32[16,32], index: 19, kind: input, shape index: {}]   ;;  %s13149_s20 = inlined_call_operand.vmem [shape: f32[9,4,16], index: 20, kind: input, shape index: {}]   ;;  %s13150_s21 = inlined_call_operand.hbm [shape: f32[9,32,4], index: 21, kind: input, shape index: {}]   ;;  %s13151_s22 = inlined_call_operand.hbm [shape: f32[1,4], index: 22, kind: input, shape index: {}]   ;;  %s13152_s23 = inlined_call_operand.hbm [shape: f32[4,4], index: 23, kind: input, shape index: {}]   ;;  %s13153_s24 = inlined_call_operand.vmem [shape: f32[4,4], index: 24, kind: input, shape index: {}]   ;;  %s13154_s25 = inlined_call_operand.hbm [shape: f32[1,4], index: 25, kind: input, shape index: {}]   ;;  %s13155_s26 = inlined_call_operand.vmem [shape: f32[4,4], index: 26, kind: output, shape index: {}]  }
   0x1   :  { %13159 = sst [smem:[#allocation55_spill]] %s13129_s0 }
   0x2   :  { %13160 = sst [smem:[#allocation56_spill]] %s13130_s1 }
   0x3   :  { %13161 = sst [smem:[#allocation57_spill]] %s13131_s2 }
   0x4   :  { %13162 = sst [smem:[#allocation58_spill]] %s13132_s3 }
   0x5   :  { %13163 = sst [smem:[#allocation59_spill]] %s13133_s4 }
   0x6   :  { %13164 = sst [smem:[#allocation60_spill]] %s13134_s5 }
   0x7   :  { %13165 = sst [smem:[#allocation61_spill]] %s13135_s6 }
   0x8   :  { %13166 = sst [smem:[#allocation62_spill]] %s13136_s7 }
   0x9   :  { %13167 = sst [smem:[#allocation63_spill]] %s13137_s8 }
   0xa   :  { %13168 = sst [smem:[#allocation64_spill]] %s13138_s9 }
   0xb   :  { %13169 = sst [smem:[#allocation65_spill]] %s13139_s10 }
   0xc   :  { %31 = vsyncpa [#allocation3], 0 }
   0xd   :  { %32 = vsyncpa [#allocation5], 0 }
   0xe   :  { %33 = vsyncpa [#allocation8], 0 }
   0xf   :  { %34 = vsyncpa [#allocation11], 0 }
  0x10   :  { %35 = vsyncpa [#allocation14], 0 }
  0x11   :  { %36 = vsyncpa [#allocation17], 0 }
  0x12   :  { %37 = vsyncpa [#allocation20], 0 }
  0x13   :  { %38 = vsyncpa [#allocation23], 0 }
  0x14   :  { %39 = vsyncpa [#allocation26], 0 }
  0x15   :  { %40 = vsyncpa [#allocation29], 0 }
  0x16   :  { %41 = vsyncpa [#allocation32], 0  ;;  %s10951_s27 = smov [#allocation4]  }
  0x17   :  { %s64_s3 = sshll.u32 %s10951_s27, 4  ;;  %s65_s3 = int_to_ptr.vmem [resolvable:$true] %s64_s3 }
  0x18   :  { %s10517_s7 = scalar_lea.vmem %s65_s3, 16  ;;  %s10521_s28 = scalar_lea.vmem %s65_s3, 32 }
  0x19   :  { %p10518_p0 = scmp.ne.s32.totalorder %s65_s3, %s10517_s7  ;;  %p10522_p1 = scmp.lt.s32.totalorder %s65_s3, %s65_s3 }
  0x1a   :  { %p10523_p2 = scmp.lt.s32.totalorder %s10521_s28, %s10517_s7 }
  0x1c   :  { %p10524_p3 = por %p10523_p2, %p10522_p1 }
  0x1e   :  { %p10525_p4 = pnand %p10524_p3, %p10518_p0 }
  0x20   :  { %10528 = shalt.err (!%p10525_p4)
}
  0x21   :  { %s13170_s29 = sld [smem:[#allocation58_spill]]  ;;  %s10952_s0 = smov [#allocation7]  }
  0x22   :  { %s87_s9 = sshll.u32 %s10952_s0, 4  ;;  %s10953_s30 = smov [#allocation10]   ;;  %s88_s9 = int_to_ptr.vmem [resolvable:$true] %s87_s9 }
  0x23   :  { %s109_s2 = sshll.u32 %s10953_s30, 4  ;;  %s10537_s5 = scalar_lea.vmem %s88_s9, 256  ;;  %s110_s2 = int_to_ptr.vmem [resolvable:$true] %s109_s2 }
  0x24   :  { %p10538_p5 = scmp.ne.s32.totalorder %s88_s9, %s10537_s5  ;;  %p10542_p6 = scmp.lt.s32.totalorder %s88_s9, %s88_s9 }
  0x25   :  { %p10543_p7 = scmp.lt.s32.totalorder %s10537_s5, %s10537_s5 }
  0x27   :  { %67 = dma.hbm_to_vmem [thread:$0]  %s13170_s29, 16, %s65_s3, [#allocation5]  }
  0x28   :  { %p10544_p8 = por %p10543_p7, %p10542_p6 }
  0x2a   :  { %p10545_p9 = pnand %p10544_p8, %p10538_p5 }
  0x2c   :  { %10548 = shalt.err (!%p10545_p9)
}
  0x2d   :  { %s10954_s10 = smov 128   ;;  %s10955_s6 = smov 8  }
  0x2e   :  { %s13171_s3 = sld [smem:[#allocation61_spill]]  ;;  %s10557_s7 = scalar_lea.vmem %s110_s2, 2304 }
  0x2f   :  { %p10558_p10 = scmp.ne.s32.totalorder %s110_s2, %s10557_s7  ;;  %p10562_p11 = scmp.lt.s32.totalorder %s110_s2, %s110_s2 }
  0x30   :  { %p10563_p12 = scmp.lt.s32.totalorder %s10557_s7, %s10557_s7 }
  0x32   :  { %p10564_p13 = por %p10563_p12, %p10562_p11 }
  0x34   :  { %93 = dma.hbm_to_vmem [thread:$0]  %s13171_s3, 256, %s88_s9, [#allocation8], %s10954_s10, %s10954_s10, %s10955_s6  }
  0x35   :  { %p10565_p0 = pnand %p10564_p13, %p10558_p10 }
  0x37   :  { %10568 = shalt.err (!%p10565_p0)
}
  0x38   :  { %s13172_s4 = sld [smem:[#allocation63_spill]]  ;;  %s10956_s29 = smov [#allocation13]  }
  0x39   :  { %s134_s0 = sshll.u32 %s10956_s29, 4  ;;  %s10957_s30 = smov [#allocation16]   ;;  %s135_s0 = int_to_ptr.vmem [resolvable:$true] %s134_s0 }
  0x3a   :  { %s155_s9 = sshll.u32 %s10957_s30, 4  ;;  %s10577_s5 = scalar_lea.vmem %s135_s0, 16  ;;  %s156_s9 = int_to_ptr.vmem [resolvable:$true] %s155_s9 }
  0x3b   :  { %p10578_p1 = scmp.ne.s32.totalorder %s135_s0, %s10577_s5  ;;  %s10581_s1 = scalar_lea.vmem %s135_s0, 32 }
  0x3c   :  { %p10582_p2 = scmp.lt.s32.totalorder %s135_s0, %s135_s0  ;;  %p10583_p3 = scmp.lt.s32.totalorder %s10581_s1, %s10577_s5 }
  0x3e   :  { %115 = dma.hbm_to_vmem [thread:$0]  %s13172_s4, 2304, %s110_s2, [#allocation11], %s10954_s10, %s10954_s10, %s10955_s6  }
  0x3f   :  { %p10584_p4 = por %p10583_p3, %p10582_p2 }
  0x41   :  { %p10585_p5 = pnand %p10584_p4, %p10578_p1 }
  0x43   :  { %10588 = shalt.err (!%p10585_p5)
}
  0x44   :  { %s13173_s7 = sld [smem:[#allocation65_spill]]  ;;  %s10597_s28 = scalar_lea.vmem %s156_s9, 256 }
  0x45   :  { %p10598_p6 = scmp.ne.s32.totalorder %s156_s9, %s10597_s28  ;;  %p10602_p7 = scmp.lt.s32.totalorder %s156_s9, %s156_s9 }
  0x46   :  { %p10603_p8 = scmp.lt.s32.totalorder %s10597_s28, %s10597_s28 }
  0x48   :  { %p10604_p9 = por %p10603_p8, %p10602_p7 }
  0x4a   :  { %137 = dma.hbm_to_vmem [thread:$0]  %s13173_s7, 16, %s135_s0, [#allocation14]  }
  0x4b   :  { %p10605_p10 = pnand %p10604_p9, %p10598_p6 }
  0x4d   :  { %10608 = shalt.err (!%p10605_p10)
}
  0x4e   :  { %161 = dma.hbm_to_vmem [thread:$0]  %s13141_s12, 256, %s156_s9, [#allocation17], %s10954_s10, %s10954_s10, %s10955_s6  }
  0x4f   :  { %s10958_s4 = smov [#allocation19]   ;;  %s10959_s30 = smov [#allocation22]  }
  0x50   :  { %s180_s29 = sshll.u32 %s10958_s4, 4  ;;  %s201_s0 = sshll.u32 %s10959_s30, 4  ;;  %s181_s29 = int_to_ptr.vmem [resolvable:$true] %s180_s29  ;;  %s202_s0 = int_to_ptr.vmem [resolvable:$true] %s201_s0 }
  0x51   :  { %s10617_s5 = scalar_lea.vmem %s181_s29, 32  ;;  %p10622_p12 = scmp.lt.s32.totalorder %s181_s29, %s181_s29 }
  0x52   :  { %p10618_p11 = scmp.ne.s32.totalorder %s181_s29, %s10617_s5  ;;  %p10623_p13 = scmp.lt.s32.totalorder %s10617_s5, %s10617_s5 }
  0x54   :  { %p10624_p0 = por %p10623_p13, %p10622_p12 }
  0x56   :  { %p10625_p1 = pnand %p10624_p0, %p10618_p11 }
  0x58   :  { %10628 = shalt.err (!%p10625_p1)
}
  0x59   :  { %183 = dma.hbm_to_vmem [thread:$0]  %s13143_s14, 32, %s181_s29, [#allocation20]  }
  0x5a   :  { %s10637_s3 = scalar_lea.vmem %s202_s0, 4608  ;;  %p10642_p3 = scmp.lt.s32.totalorder %s202_s0, %s202_s0 }
  0x5b   :  { %p10638_p2 = scmp.ne.s32.totalorder %s202_s0, %s10637_s3  ;;  %p10643_p4 = scmp.lt.s32.totalorder %s10637_s3, %s10637_s3 }
  0x5d   :  { %p10644_p5 = por %p10643_p4, %p10642_p3 }
  0x5f   :  { %p10645_p6 = pnand %p10644_p5, %p10638_p2 }
  0x61   :  { %10648 = shalt.err (!%p10645_p6)
}
  0x62   :  { %207 = dma.hbm_to_vmem [thread:$0]  %s13145_s16, 4608, %s202_s0, [#allocation23], %s10954_s10, %s10954_s10, %s10955_s6  }
  0x63   :  { %s10960_s7 = smov [#allocation25]   ;;  %s10961_s2 = smov [#allocation28]  }
  0x64   :  { %s223_s28 = sshll.u32 %s10960_s7, 4  ;;  %s249_s14 = sshll.u32 %s10961_s2, 4  ;;  %s224_s28 = int_to_ptr.vmem [resolvable:$true] %s223_s28  ;;  %s250_s14 = int_to_ptr.vmem [resolvable:$true] %s249_s14 }
  0x65   :  { %s10657_s8 = scalar_lea.vmem %s224_s28, 256  ;;  %p10662_p8 = scmp.lt.s32.totalorder %s224_s28, %s224_s28 }
  0x66   :  { %p10658_p7 = scmp.ne.s32.totalorder %s224_s28, %s10657_s8  ;;  %p10663_p9 = scmp.lt.s32.totalorder %s10657_s8, %s10657_s8 }
  0x68   :  { %p10664_p10 = por %p10663_p9, %p10662_p8 }
  0x6a   :  { %p10665_p11 = pnand %p10664_p10, %p10658_p7 }
  0x6c   :  { %10668 = shalt.err (!%p10665_p11)
}
  0x6d   :  { %229 = dma.hbm_to_vmem [thread:$0]  %s13147_s18, 256, %s224_s28, [#allocation26], %s10954_s10, %s10954_s10, %s10955_s6  }
  0x6e   :  { %s10677_s16 = scalar_lea.vmem %s250_s14, 4608  ;;  %p10682_p13 = scmp.lt.s32.totalorder %s250_s14, %s250_s14 }
  0x6f   :  { %p10678_p12 = scmp.ne.s32.totalorder %s250_s14, %s10677_s16  ;;  %p10683_p0 = scmp.lt.s32.totalorder %s10677_s16, %s10677_s16 }
  0x71   :  { %p10684_p1 = por %p10683_p0, %p10682_p13 }
  0x73   :  { %p10685_p2 = pnand %p10684_p1, %p10678_p12 }
  0x75   :  { %10688 = shalt.err (!%p10685_p2)
}
  0x76   :  { %255 = dma.hbm_to_vmem [thread:$0]  %s13150_s21, 4608, %s250_s14, [#allocation29], %s10954_s10, %s10954_s10, %s10955_s6  }
  0x77   :  { %s10962_s5 = smov [#allocation31]   ;;  %s10963_s27 = smov [#allocation2]  }
  0x78   :  { %s272_s1 = sshll.u32 %s10962_s5, 4  ;;  %s51_s18 = sshll.u32 %s10963_s27, 4  ;;  %s273_s1 = int_to_ptr.vmem [resolvable:$true] %s272_s1  ;;  %s52_s18 = int_to_ptr.vmem [resolvable:$true] %s51_s18 }
  0x79   :  { %s10697_s3 = scalar_lea.vmem %s273_s1, 64  ;;  %p10702_p4 = scmp.lt.s32.totalorder %s273_s1, %s273_s1 }
  0x7a   :  { %p10698_p3 = scmp.ne.s32.totalorder %s273_s1, %s10697_s3  ;;  %p10703_p5 = scmp.lt.s32.totalorder %s10697_s3, %s10697_s3 }
  0x7c   :  { %p10704_p6 = por %p10703_p5, %p10702_p4 }
  0x7e   :  { %p10705_p7 = pnand %p10704_p6, %p10698_p3 }
  0x80   :  { %10708 = shalt.err (!%p10705_p7)
}
  0x81   :  { %275 = dma.hbm_to_vmem [thread:$0]  %s13152_s23, 64, %s273_s1, [#allocation32]  }
  0x82   :  { %s10717_s7 = scalar_lea.vmem %s52_s18, 2304  ;;  %p10722_p9 = scmp.lt.s32.totalorder %s52_s18, %s52_s18 }
  0x83   :  { %p10718_p8 = scmp.ne.s32.totalorder %s52_s18, %s10717_s7  ;;  %p10723_p10 = scmp.lt.s32.totalorder %s10717_s7, %s10717_s7 }
  0x85   :  { %p10724_p11 = por %p10723_p10, %p10722_p9 }
  0x87   :  { %p10725_p12 = pnand %p10724_p11, %p10718_p8 }
  0x89   :  { %10728 = shalt.err (!%p10725_p12)
}
  0x8a   :  { %s13174_s2 = sld [smem:[#allocation57_spill]]  ;;  %s10964_s14 = smov [#allocation6]  }
  0x8b   :  { %s73_s8 = sshll.u32 %s10964_s14, 4  ;;  %s10965_s4 = smov [#allocation9]   ;;  %s74_s8 = int_to_ptr.vmem [resolvable:$true] %s73_s8 }
  0x8c   :  { %s100_s23 = sshll.u32 %s10965_s4, 4  ;;  %s10737_s29 = scalar_lea.vmem %s74_s8, 1024  ;;  %s101_s23 = int_to_ptr.vmem [resolvable:$true] %s100_s23 }
  0x8d   :  { %p10738_p13 = scmp.ne.s32.totalorder %s74_s8, %s10737_s29  ;;  %p10742_p0 = scmp.lt.s32.totalorder %s74_s8, %s74_s8 }
  0x8e   :  { %p10743_p1 = scmp.lt.s32.totalorder %s10737_s29, %s10737_s29 }
  0x90   :  { %57 = dma.hbm_to_vmem [thread:$0]  %s13174_s2, 2304, %s52_s18, [#allocation3], %s10954_s10, %s10954_s10, %s10955_s6  }
  0x91   :  { %p10744_p2 = por %p10743_p1, %p10742_p0 }
  0x93   :  { %p10745_p3 = pnand %p10744_p2, %p10738_p13 }
  0x95   :  { %10748 = shalt.err (!%p10745_p3)
}
  0x96   :  { %s13175_s0 = sld [smem:[#allocation59_spill]]  ;;  %s10757_s5 = scalar_lea.vmem %s101_s23, 32 }
  0x97   :  { %p10758_p4 = scmp.ne.s32.totalorder %s101_s23, %s10757_s5  ;;  %p10762_p5 = scmp.lt.s32.totalorder %s101_s23, %s101_s23 }
  0x98   :  { %p10763_p6 = scmp.lt.s32.totalorder %s10757_s5, %s10757_s5 }
  0x9a   :  { %p10764_p7 = por %p10763_p6, %p10762_p5 }
  0x9c   :  { %79 = dma.hbm_to_vmem [thread:$0]  %s13175_s0, 1024, %s74_s8, [#allocation5], %s10954_s10, %s10954_s10, %s10955_s6  }
  0x9d   :  { %p10765_p8 = pnand %p10764_p7, %p10758_p4 }
  0x9f   :  { %10768 = shalt.err (!%p10765_p8)
}
  0xa0   :  { %s13176_s18 = sld [smem:[#allocation62_spill]]  ;;  %s10966_s3 = smov [#allocation12]  }
  0xa1   :  { %s121_s12 = sshll.u32 %s10966_s3, 4  ;;  %s10967_s9 = smov [#allocation15]   ;;  %s122_s12 = int_to_ptr.vmem [resolvable:$true] %s121_s12 }
  0xa2   :  { %s143_s7 = sshll.u32 %s10967_s9, 4  ;;  %s10777_s21 = scalar_lea.vmem %s122_s12, 2304  ;;  %s144_s7 = int_to_ptr.vmem [resolvable:$true] %s143_s7 }
  0xa3   :  { %p10778_p9 = scmp.ne.s32.totalorder %s122_s12, %s10777_s21  ;;  %p10782_p10 = scmp.lt.s32.totalorder %s122_s12, %s122_s12 }
  0xa4   :  { %p10783_p11 = scmp.lt.s32.totalorder %s10777_s21, %s10777_s21 }
  0xa6   :  { %103 = dma.hbm_to_vmem [thread:$0]  %s13176_s18, 32, %s101_s23, [#allocation8]  }
  0xa7   :  { %p10784_p12 = por %p10783_p11, %p10782_p10 }
  0xa9   :  { %p10785_p13 = pnand %p10784_p12, %p10778_p9 }
  0xab   :  { %10788 = shalt.err (!%p10785_p13)
}
  0xac   :  { %s13177_s14 = sld [smem:[#allocation64_spill]]  ;;  %s10797_s8 = scalar_lea.vmem %s144_s7, 256 }
  0xad   :  { %p10798_p0 = scmp.ne.s32.totalorder %s144_s7, %s10797_s8  ;;  %p10802_p1 = scmp.lt.s32.totalorder %s144_s7, %s144_s7 }
  0xae   :  { %p10803_p2 = scmp.lt.s32.totalorder %s10797_s8, %s10797_s8 }
  0xb0   :  { %p10804_p3 = por %p10803_p2, %p10802_p1 }
  0xb2   :  { %127 = dma.hbm_to_vmem [thread:$0]  %s13177_s14, 2304, %s122_s12, [#allocation11], %s10954_s10, %s10954_s10, %s10955_s6  }
  0xb3   :  { %p10805_p4 = pnand %p10804_p3, %p10798_p0 }
  0xb5   :  { %10808 = shalt.err (!%p10805_p4)
}
  0xb6   :  { %149 = dma.hbm_to_vmem [thread:$0]  %s13140_s11, 256, %s144_s7, [#allocation14], %s10954_s10, %s10954_s10, %s10955_s6  }
  0xb7   :  { %s10968_s29 = smov [#allocation18]   ;;  %s10969_s30 = smov [#allocation21]  }
  0xb8   :  { %s167_s16 = sshll.u32 %s10968_s29, 4  ;;  %s189_s0 = sshll.u32 %s10969_s30, 4  ;;  %s168_s16 = int_to_ptr.vmem [resolvable:$true] %s167_s16  ;;  %s190_s0 = int_to_ptr.vmem [resolvable:$true] %s189_s0 }
  0xb9   :  { %s10817_s5 = scalar_lea.vmem %s168_s16, 512  ;;  %p10822_p6 = scmp.lt.s32.totalorder %s168_s16, %s168_s16 }
  0xba   :  { %p10818_p5 = scmp.ne.s32.totalorder %s168_s16, %s10817_s5  ;;  %p10823_p7 = scmp.lt.s32.totalorder %s10817_s5, %s10817_s5 }
  0xbc   :  { %p10824_p8 = por %p10823_p7, %p10822_p6 }
  0xbe   :  { %p10825_p9 = pnand %p10824_p8, %p10818_p5 }
  0xc0   :  { %10828 = shalt.err (!%p10825_p9)
}
  0xc1   :  { %173 = dma.hbm_to_vmem [thread:$0]  %s13142_s13, 512, %s168_s16, [#allocation17], %s10954_s10, %s10954_s10, %s10955_s6  }
  0xc2   :  { %s10837_s11 = scalar_lea.vmem %s190_s0, 2304  ;;  %p10842_p11 = scmp.lt.s32.totalorder %s190_s0, %s190_s0 }
  0xc3   :  { %p10838_p10 = scmp.ne.s32.totalorder %s190_s0, %s10837_s11  ;;  %p10843_p12 = scmp.lt.s32.totalorder %s10837_s11, %s10837_s11 }
  0xc5   :  { %p10844_p13 = por %p10843_p12, %p10842_p11 }
  0xc7   :  { %p10845_p0 = pnand %p10844_p13, %p10838_p10 }
  0xc9   :  { %10848 = shalt.err (!%p10845_p0)
}
  0xca   :  { %195 = dma.hbm_to_vmem [thread:$0]  %s13144_s15, 2304, %s190_s0, [#allocation20], %s10954_s10, %s10954_s10, %s10955_s6  }
  0xcb   :  { %s10970_s12 = smov [#allocation24]   ;;  %s10971_s7 = smov [#allocation27]  }
  0xcc   :  { %s214_s9 = sshll.u32 %s10970_s12, 4  ;;  %s235_s13 = sshll.u32 %s10971_s7, 4  ;;  %s215_s9 = int_to_ptr.vmem [resolvable:$true] %s214_s9  ;;  %s236_s13 = int_to_ptr.vmem [resolvable:$true] %s235_s13 }
  0xcd   :  { %s10857_s21 = scalar_lea.vmem %s215_s9, 16  ;;  %s10861_s28 = scalar_lea.vmem %s215_s9, 32 }
  0xce   :  { %p10858_p1 = scmp.ne.s32.totalorder %s215_s9, %s10857_s21  ;;  %p10862_p2 = scmp.lt.s32.totalorder %s215_s9, %s215_s9 }
  0xcf   :  { %p10863_p3 = scmp.lt.s32.totalorder %s10861_s28, %s10857_s21 }
  0xd1   :  { %p10864_p4 = por %p10863_p3, %p10862_p2 }
  0xd3   :  { %p10865_p5 = pnand %p10864_p4, %p10858_p1 }
  0xd5   :  { %10868 = shalt.err (!%p10865_p5)
}
  0xd6   :  { %217 = dma.hbm_to_vmem [thread:$0]  %s13146_s17, 16, %s215_s9, [#allocation23]  }
  0xd7   :  { %s10877_s8 = scalar_lea.vmem %s236_s13, 256  ;;  %p10882_p7 = scmp.lt.s32.totalorder %s236_s13, %s236_s13 }
  0xd8   :  { %p10878_p6 = scmp.ne.s32.totalorder %s236_s13, %s10877_s8  ;;  %p10883_p8 = scmp.lt.s32.totalorder %s10877_s8, %s10877_s8 }
  0xda   :  { %p10884_p9 = por %p10883_p8, %p10882_p7 }
  0xdc   :  { %p10885_p10 = pnand %p10884_p9, %p10878_p6 }
  0xde   :  { %10888 = shalt.err (!%p10885_p10)
}
  0xdf   :  { %241 = dma.hbm_to_vmem [thread:$0]  %s13148_s19, 256, %s236_s13, [#allocation26], %s10954_s10, %s10954_s10, %s10955_s6  }
  0xe0   :  { %s10972_s23 = smov [#allocation30]   ;;  %s10973_s16 = smov [#allocation33]  }
  0xe1   :  { %s262_s29 = sshll.u32 %s10972_s23, 4  ;;  %s284_s17 = sshll.u32 %s10973_s16, 4  ;;  %s263_s29 = int_to_ptr.vmem [resolvable:$true] %s262_s29  ;;  %s285_s17 = int_to_ptr.vmem [resolvable:$true] %s284_s17 }
  0xe2   :  { %s10897_s30 = scalar_lea.vmem %s263_s29, 16  ;;  %s10901_s0 = scalar_lea.vmem %s263_s29, 32 }
  0xe3   :  { %p10898_p11 = scmp.ne.s32.totalorder %s263_s29, %s10897_s30  ;;  %p10902_p12 = scmp.lt.s32.totalorder %s263_s29, %s263_s29 }
  0xe4   :  { %p10903_p13 = scmp.lt.s32.totalorder %s10901_s0, %s10897_s30 }
  0xe6   :  { %p10904_p0 = por %p10903_p13, %p10902_p12 }
  0xe8   :  { %p10905_p1 = pnand %p10904_p0, %p10898_p11 }
  0xea   :  { %10908 = shalt.err (!%p10905_p1)
}
  0xeb   :  { %265 = dma.hbm_to_vmem [thread:$0]  %s13151_s22, 16, %s263_s29, [#allocation29]  }
  0xec   :  { %s10917_s27 = scalar_lea.vmem %s285_s17, 16  ;;  %s10921_s19 = scalar_lea.vmem %s285_s17, 32 }
  0xed   :  { %p10918_p2 = scmp.ne.s32.totalorder %s285_s17, %s10917_s27  ;;  %p10922_p3 = scmp.lt.s32.totalorder %s285_s17, %s285_s17 }
  0xee   :  { %p10923_p4 = scmp.lt.s32.totalorder %s10921_s19, %s10917_s27 }
  0xf0   :  { %p10924_p5 = por %p10923_p4, %p10922_p3 }
  0xf2   :  { %p10925_p6 = pnand %p10924_p5, %p10918_p2 }
  0xf4   :  { %10928 = shalt.err (!%p10925_p6)
}
  0xf5   :  { %287 = dma.hbm_to_vmem [thread:$0]  %s13154_s25, 16, %s285_s17, [#allocation32]  }
  0xf6   :  { %10929 = dma.done.wait [#allocation3], 2304  }
  0xf7   :  { %10930 = vsyncadd [#allocation3], 4294964992 }
  0xf8   :  { %10931 = dma.done.wait [#allocation5], 1040  }
  0xf9   :  { %10932 = vsyncadd [#allocation5], 4294966256 }
  0xfa   :  { %10933 = dma.done.wait [#allocation8], 288  }
  0xfb   :  { %10934 = vsyncadd [#allocation8], 4294967008 }
  0xfc   :  { %10935 = dma.done.wait [#allocation11], 4608  }
  0xfd   :  { %10936 = vsyncadd [#allocation11], 4294962688 }
  0xfe   :  { %10937 = dma.done.wait [#allocation14], 272  }
  0xff   :  { %10938 = vsyncadd [#allocation14], 4294967024 }
 0x100   :  { %10939 = dma.done.wait [#allocation17], 768  }
 0x101   :  { %10940 = vsyncadd [#allocation17], 4294966528 }
 0x102   :  { %10941 = dma.done.wait [#allocation20], 2336  }
 0x103   :  { %10942 = vsyncadd [#allocation20], 4294964960 }
 0x104   :  { %10943 = dma.done.wait [#allocation23], 4624  }
 0x105   :  { %10944 = vsyncadd [#allocation23], 4294962672 }
 0x106   :  { %10945 = dma.done.wait [#allocation26], 512  }
 0x107   :  { %10946 = vsyncadd [#allocation26], 4294966784 }
 0x108   :  { %10947 = dma.done.wait [#allocation29], 4624  }
 0x109   :  { %10948 = vsyncadd [#allocation29], 4294962672 }
 0x10a   :  { %10949 = dma.done.wait [#allocation32], 80  }
 0x10b   :  { %10950 = vsyncadd [#allocation32], 4294967216  ;;  %s13178_s11 = sld [smem:[#allocation55_spill]]  ;;  %v506_v48 = vld [vmem:[#allocation2 + $0x8] sm:$0xff]  ;;  %v505_v49 = vld [vmem:[#allocation2] sm:$0xff]  ;;  %vm507_vm0 = vcmask 130048  }
 0x10c   :  { %s13179_s25 = sld [smem:[#allocation56_spill]]  ;;  %9619 = vmatprep.subr.mxu1 %v506_v48  ;;  %vm10975_vm1 = vmmov 0   ;;  %vm2856_vm2 = vcmask 1041408   ;;  %vm2852_vm3 = vcmask 15360   ;;  %vm3165_vm4 = vcmask 523264  }
 0x10d   :  { %9620 = vmatpush3.msra.mxu1 %v506_v48  ;;  %s13200_s27 = sld [smem:[#allocation60_spill]]  ;;  %vm4700_vm5 = vcmask 261120   ;;  %vm8331_vm8 = vcmask 27648  }
 0x10e   :  { %9621 = vmatprep.subr.mxu1 %v505_v49 }
 0x10f   :  { %9622 = vmatpush3.msra.mxu1 %v505_v49 }
 0x111   :  { %v11217_v0 = vld [vmem:[%s13178_s11 + $0xf8] sm:$0xff]  ;;  %v11227_v2 = vld [vmem:[%s13178_s11 + $0xf0] sm:$0xff]  ;;  %v11239_v4 = vld [vmem:[%s13178_s11 + $0xe8] sm:$0xff] }
 0x112   :  { %v11222_v1 = vld [vmem:[%s13178_s11 + $0x78] sm:$0xff]  ;;  %8699 = vmatprep.subr.mxu0 %v11217_v0  ;;  %v11233_v3 = vld [vmem:[%s13178_s11 + $0x70] sm:$0xff]  ;;  %v11245_v5 = vld [vmem:[%s13178_s11 + $0x68] sm:$0xff]  ;;  %8765 = vmatprep.subr.mxu1 %v11217_v0 }
 0x113   :  { %8700 = vmatpush3.msra.mxu0 %v11222_v1  ;;  %v11251_v6 = vld [vmem:[%s13178_s11 + $0xe0] sm:$0xff]  ;;  %v11263_v8 = vld [vmem:[%s13178_s11 + $0xd8] sm:$0xff]  ;;  %v11275_v10 = vld [vmem:[%s13178_s11 + $0xd0] sm:$0xff] }
 0x114   :  { %8701 = vmatprep.subr.mxu0 %v11227_v2  ;;  %v11257_v7 = vld [vmem:[%s13178_s11 + $0x60] sm:$0xff]  ;;  %v11269_v9 = vld [vmem:[%s13178_s11 + $0x58] sm:$0xff]  ;;  %v11281_v11 = vld [vmem:[%s13178_s11 + $0x50] sm:$0xff] }
 0x115   :  { %8702 = vmatpush3.msra.mxu0 %v11233_v3  ;;  %v11287_v12 = vld [vmem:[%s13178_s11 + $0xc8] sm:$0xff]  ;;  %v11302_v15 = vld [vmem:[%s13178_s11 + $0xc0] sm:$0xff]  ;;  %v11314_v17 = vld [vmem:[%s13178_s11 + $0xb8] sm:$0xff] }
 0x116   :  { %8703 = vmatprep.subr.mxu0 %v11239_v4  ;;  %v385_v13 = vld [vmem:[%s13179_s25 + $0x8] sm:$0xff]  ;;  %v11308_v16 = vld [vmem:[%s13178_s11 + $0x40] sm:$0xff]  ;;  %v11320_v18 = vld [vmem:[%s13178_s11 + $0x38] sm:$0xff] }
 0x117   :  { %8704 = vmatpush3.msra.mxu0 %v11245_v5  ;;  %v11296_v14 = vld [vmem:[%s13178_s11 + $0x48] sm:$0xff]  ;;  %464 = vmatprep.mubr.f32.mxu0 %v385_v13  ;;  %v11326_v19 = vld [vmem:[%s13178_s11 + $0xb0] sm:$0xff]  ;;  %v11350_v23 = vld [vmem:[%s13178_s11 + $0xa0] sm:$0xff] }
 0x118   :  { %8705 = vmatprep.subr.mxu0 %v11251_v6  ;;  %v11332_v20 = vld [vmem:[%s13178_s11 + $0x30] sm:$0xff]  ;;  %v11338_v21 = vld [vmem:[%s13178_s11 + $0xa8] sm:$0xff]  ;;  %v11356_v24 = vld [vmem:[%s13178_s11 + $0x20] sm:$0xff] }
 0x119   :  { %8706 = vmatpush3.msra.mxu0 %v11257_v7  ;;  %v11344_v22 = vld [vmem:[%s13178_s11 + $0x28] sm:$0xff]  ;;  %v11362_v25 = vld [vmem:[%s13178_s11 + $0x98] sm:$0xff]  ;;  %v11374_v27 = vld [vmem:[%s13178_s11 + $0x90] sm:$0xff] }
 0x11a   :  { %8707 = vmatprep.subr.mxu0 %v11263_v8  ;;  %v11368_v26 = vld [vmem:[%s13178_s11 + $0x18] sm:$0xff]  ;;  %v11380_v28 = vld [vmem:[%s13178_s11 + $0x10] sm:$0xff]  ;;  %v11386_v29 = vld [vmem:[%s13178_s11 + $0x88] sm:$0xff] }
 0x11b   :  { %8708 = vmatpush3.msra.mxu0 %v11269_v9  ;;  %v11392_v30 = vld [vmem:[%s13178_s11 + $0x8] sm:$0xff]  ;;  %v11398_v31 = vld [vmem:[%s13178_s11 + $0x80] sm:$0xff]  ;;  %v387_v34 = vld [vmem:[%s13179_s25 + $0x18] sm:$0xff] }
 0x11c   :  { %8709 = vmatprep.subr.mxu0 %v11275_v10  ;;  %v11404_v32 = vld [vmem:[%s13178_s11] sm:$0xff]  ;;  %v386_v35 = vld [vmem:[%s13179_s25 + $0x10] sm:$0xff]  ;;  %v389_v36 = vld [vmem:[%s13179_s25 + $0x28] sm:$0xff] }
 0x11d   :  { %8710 = vmatpush3.msra.mxu0 %v11281_v11  ;;  %v384_v33 = vld [vmem:[%s13179_s25] sm:$0xff]  ;;  %v391_v38 = vld [vmem:[%s13179_s25 + $0x38] sm:$0xff]  ;;  %v390_v39 = vld [vmem:[%s13179_s25 + $0x30] sm:$0xff] }
 0x11e   :  { %8711 = vmatprep.subr.mxu0 %v11287_v12  ;;  %v388_v37 = vld [vmem:[%s13179_s25 + $0x20] sm:$0xff]  ;;  %v393_v40 = vld [vmem:[%s13179_s25 + $0x48] sm:$0xff]  ;;  %v395_v42 = vld [vmem:[%s13179_s25 + $0x58] sm:$0xff] }
 0x11f   :  { %8712 = vmatpush3.msra.mxu0 %v11296_v14  ;;  %v392_v41 = vld [vmem:[%s13179_s25 + $0x40] sm:$0xff]  ;;  %v394_v43 = vld [vmem:[%s13179_s25 + $0x50] sm:$0xff]  ;;  %v397_v44 = vld [vmem:[%s13179_s25 + $0x68] sm:$0xff] }
 0x120   :  { %8713 = vmatprep.subr.mxu0 %v11302_v15  ;;  %v396_v45 = vld [vmem:[%s13179_s25 + $0x60] sm:$0xff]  ;;  %v399_v46 = vld [vmem:[%s13179_s25 + $0x78] sm:$0xff]  ;;  %v398_v47 = vld [vmem:[%s13179_s25 + $0x70] sm:$0xff] }
 0x121   :  { %8714 = vmatpush3.msra.mxu0 %v11308_v16  ;;  %v8395_v48 = vld [vmem:[%s13179_s25 + $0xb8] sm:$0xff]  ;;  %v8394_v49 = vld [vmem:[%s13179_s25 + $0xb0] sm:$0xff] }
 0x122   :  { %8715 = vmatprep.subr.mxu0 %v11314_v17 }
 0x123   :  { %8716 = vmatpush3.msra.mxu0 %v11320_v18 }
 0x124   :  { %8717 = vmatprep.subr.mxu0 %v11326_v19 }
 0x125   :  { %8718 = vmatpush3.msra.mxu0 %v11332_v20 }
 0x126   :  { %8719 = vmatprep.subr.mxu0 %v11338_v21 }
 0x127   :  { %8720 = vmatpush3.msra.mxu0 %v11344_v22 }
 0x128   :  { %8721 = vmatprep.subr.mxu0 %v11350_v23 }
 0x129   :  { %8722 = vmatpush3.msra.mxu0 %v11356_v24 }
 0x12a   :  { %8723 = vmatprep.subr.mxu0 %v11362_v25 }
 0x12b   :  { %8724 = vmatpush3.msra.mxu0 %v11368_v26 }
 0x12c   :  { %8725 = vmatprep.subr.mxu0 %v11374_v27 }
 0x12d   :  { %8726 = vmatpush3.msra.mxu0 %v11380_v28 }
 0x12e   :  { %8727 = vmatprep.subr.mxu0 %v11386_v29 }
 0x12f   :  { %8728 = vmatpush3.msra.mxu0 %v11392_v30 }
 0x130   :  { %8729 = vmatprep.subr.mxu0 %v11398_v31 }
 0x131   :  { %8730 = vmatpush3.msra.mxu0 %v11404_v32 }
 0x132   :  { %465 = vmatmul.mubr.f32.vlgmr.msra.gmra.mxu0 %v384_v33 }
 0x133   :  { %469 = vmatprep.mubr.f32.mxu0 %v387_v34 }
 0x136   :  { %470 = vmatmul.mubr.f32.gmra.mxu0 %v386_v35 }
 0x137   :  { %474 = vmatprep.mubr.f32.mxu0 %v389_v36 }
 0x13a   :  { %475 = vmatmul.mubr.f32.gmra.mxu0 %v388_v37 }
 0x13b   :  { %479 = vmatprep.mubr.f32.mxu0 %v391_v38 }
 0x13e   :  { %480 = vmatmul.mubr.f32.gmra.mxu0 %v390_v39 }
 0x13f   :  { %484 = vmatprep.mubr.f32.mxu0 %v393_v40 }
 0x142   :  { %485 = vmatmul.mubr.f32.gmra.mxu0 %v392_v41 }
 0x143   :  { %489 = vmatprep.mubr.f32.mxu0 %v395_v42  ;;  %v8389_v42 = vld [vmem:[%s13179_s25 + $0x88] sm:$0xff] }
 0x146   :  { %490 = vmatmul.mubr.f32.gmra.mxu0 %v394_v43  ;;  %v8388_v43 = vld [vmem:[%s13179_s25 + $0x80] sm:$0xff] }
 0x147   :  { %494 = vmatprep.mubr.f32.mxu0 %v397_v44  ;;  %v8391_v44 = vld [vmem:[%s13179_s25 + $0x98] sm:$0xff] }
 0x14a   :  { %495 = vmatmul.mubr.f32.gmra.mxu0 %v396_v45  ;;  %v8390_v45 = vld [vmem:[%s13179_s25 + $0x90] sm:$0xff] }
 0x14b   :  { %499 = vmatprep.mubr.f32.mxu0 %v399_v46  ;;  %v8393_v46 = vld [vmem:[%s13179_s25 + $0xa8] sm:$0xff] }
 0x14e   :  { %500 = vmatmul.mubr.f32.gmra.mxu0 %v398_v47  ;;  %v8392_v47 = vld [vmem:[%s13179_s25 + $0xa0] sm:$0xff] }
 0x1f2   :  { %v8731_v50 = vpop.f32.mrf.mxu0 }
 0x1f4   :  { %v8732_v51 = vpop.f32.mrf.mxu0 }
 0x1f5   :  { %v8733_v52 = vadd.f32 %v8732_v51, %v8731_v50  ;;  %v8397_v50 = vld [vmem:[%s13179_s25 + $0xc8] sm:$0xff]  ;;  %v8396_v51 = vld [vmem:[%s13179_s25 + $0xc0] sm:$0xff] }
 0x1f6   :  { %v8734_v53 = vpop.f32.mrf.mxu0 }
 0x1f7   :  { %9623 = vmatprep.mubr.msk.f32.mxu1 %vm507_vm0, %v8733_v52  ;;  %v8399_v52 = vld [vmem:[%s13179_s25 + $0xd8] sm:$0xff] }
 0x1f8   :  { %v8735_v54 = vpop.f32.mrf.mxu0 }
 0x1f9   :  { %v8736_v55 = vadd.f32 %v8735_v54, %v8734_v53  ;;  %v8398_v53 = vld [vmem:[%s13179_s25 + $0xd0] sm:$0xff]  ;;  %v8401_v54 = vld [vmem:[%s13179_s25 + $0xe8] sm:$0xff] }
 0x1fa   :  { %v8737_v56 = vpop.f32.mrf.mxu0 }
 0x1fb   :  { %9624 = vmatmul.mubr.msk.f32.vlgmr.msra.gmra.mxu1 %vm507_vm0, %v8736_v55  ;;  %v8400_v55 = vld [vmem:[%s13179_s25 + $0xe0] sm:$0xff] }
 0x1fc   :  { %8766 = vmatpush3.msra.mxu1 %v11222_v1  ;;  %v8738_v57 = vpop.f32.mrf.mxu0 }
 0x1fd   :  { %v8739_v58 = vadd.f32 %v8738_v57, %v8737_v56  ;;  %8767 = vmatprep.subr.mxu1 %v11227_v2  ;;  %v8403_v56 = vld [vmem:[%s13179_s25 + $0xf8] sm:$0xff]  ;;  %v8402_v57 = vld [vmem:[%s13179_s25 + $0xf0] sm:$0xff] }
 0x1fe   :  { %8768 = vmatpush3.msra.mxu1 %v11233_v3  ;;  %v8740_v59 = vpop.f32.mrf.mxu0 }
 0x1ff   :  { %8769 = vmatprep.subr.mxu1 %v11239_v4  ;;  %9626 = vmatprep.mubr.msk.f32.mxu1 %vm507_vm0, %v8739_v58  ;;  %v8413_v58 = vld [vmem:[%s13179_s25 + $0x108] sm:$0xff] }
 0x200   :  { %8770 = vmatpush3.msra.mxu1 %v11245_v5  ;;  %v8741_v60 = vpop.f32.mrf.mxu0 }
 0x201   :  { %v8742_v61 = vadd.f32 %v8741_v60, %v8740_v59  ;;  %8771 = vmatprep.subr.mxu1 %v11251_v6  ;;  %v8412_v59 = vld [vmem:[%s13179_s25 + $0x100] sm:$0xff]  ;;  %v8415_v60 = vld [vmem:[%s13179_s25 + $0x118] sm:$0xff] }
 0x202   :  { %8772 = vmatpush3.msra.mxu1 %v11257_v7  ;;  %v8743_v62 = vpop.f32.mrf.mxu0 }
 0x203   :  { %8773 = vmatprep.subr.mxu1 %v11263_v8  ;;  %9627 = vmatmul.mubr.msk.f32.gmra.mxu1 %vm507_vm0, %v8742_v61  ;;  %v8414_v61 = vld [vmem:[%s13179_s25 + $0x110] sm:$0xff] }
 0x204   :  { %8774 = vmatpush3.msra.mxu1 %v11269_v9  ;;  %v8744_v63 = vpop.f32.mrf.mxu0 }
 0x205   :  { %v8745_v13 = vadd.f32 %v8744_v63, %v8743_v62  ;;  %8775 = vmatprep.subr.mxu1 %v11275_v10  ;;  %v8417_v62 = vld [vmem:[%s13179_s25 + $0x128] sm:$0xff]  ;;  %v8416_v63 = vld [vmem:[%s13179_s25 + $0x120] sm:$0xff] }
 0x206   :  { %8776 = vmatpush3.msra.mxu1 %v11281_v11  ;;  %v8746_v33 = vpop.f32.mrf.mxu0 }
 0x207   :  { %8777 = vmatprep.subr.mxu1 %v11287_v12  ;;  %9629 = vmatprep.mubr.msk.f32.mxu1 %vm507_vm0, %v8745_v13  ;;  %v8419_v13 = vld [vmem:[%s13179_s25 + $0x138] sm:$0xff] }
 0x208   :  { %8778 = vmatpush3.msra.mxu1 %v11296_v14  ;;  %v8747_v34 = vpop.f32.mrf.mxu0 }
 0x209   :  { %v8748_v35 = vadd.f32 %v8747_v34, %v8746_v33  ;;  %8779 = vmatprep.subr.mxu1 %v11302_v15  ;;  %v8418_v33 = vld [vmem:[%s13179_s25 + $0x130] sm:$0xff]  ;;  %v8421_v34 = vld [vmem:[%s13179_s25 + $0x148] sm:$0xff] }
 0x20a   :  { %8780 = vmatpush3.msra.mxu1 %v11308_v16  ;;  %v8749_v36 = vpop.f32.mrf.mxu0 }
 0x20b   :  { %8781 = vmatprep.subr.mxu1 %v11314_v17  ;;  %9630 = vmatmul.mubr.msk.f32.gmra.mxu1 %vm507_vm0, %v8748_v35  ;;  %v8420_v35 = vld [vmem:[%s13179_s25 + $0x140] sm:$0xff] }
 0x20c   :  { %8782 = vmatpush3.msra.mxu1 %v11320_v18  ;;  %v8750_v37 = vpop.f32.mrf.mxu0 }
 0x20d   :  { %v8751_v38 = vadd.f32 %v8750_v37, %v8749_v36  ;;  %8783 = vmatprep.subr.mxu1 %v11326_v19  ;;  %v8423_v36 = vld [vmem:[%s13179_s25 + $0x158] sm:$0xff]  ;;  %v8422_v37 = vld [vmem:[%s13179_s25 + $0x150] sm:$0xff] }
 0x20e   :  { %8784 = vmatpush3.msra.mxu1 %v11332_v20  ;;  %v8752_v39 = vpop.f32.mrf.mxu0 }
 0x20f   :  { %8785 = vmatprep.subr.mxu1 %v11338_v21  ;;  %9632 = vmatprep.mubr.msk.f32.mxu1 %vm507_vm0, %v8751_v38  ;;  %v8425_v38 = vld [vmem:[%s13179_s25 + $0x168] sm:$0xff] }
 0x210   :  { %8786 = vmatpush3.msra.mxu1 %v11344_v22  ;;  %v8753_v40 = vpop.f32.mrf.mxu0 }
 0x211   :  { %v8754_v41 = vadd.f32 %v8753_v40, %v8752_v39  ;;  %8787 = vmatprep.subr.mxu1 %v11350_v23  ;;  %v8424_v39 = vld [vmem:[%s13179_s25 + $0x160] sm:$0xff]  ;;  %v8427_v40 = vld [vmem:[%s13179_s25 + $0x178] sm:$0xff] }
 0x212   :  { %8788 = vmatpush3.msra.mxu1 %v11356_v24 }
 0x213   :  { %8789 = vmatprep.subr.mxu1 %v11362_v25  ;;  %9633 = vmatmul.mubr.msk.f32.gmra.mxu1 %vm507_vm0, %v8754_v41  ;;  %v8426_v41 = vld [vmem:[%s13179_s25 + $0x170] sm:$0xff] }
 0x214   :  { %8790 = vmatpush3.msra.mxu1 %v11368_v26  ;;  %732 = vmatprep.mubr.f32.mxu1 %v8389_v42  ;;  %v8437_v42 = vld [vmem:[%s13179_s25 + $0x188] sm:$0xff] }
 0x215   :  { %8791 = vmatprep.subr.mxu1 %v11374_v27 }
 0x216   :  { %8792 = vmatpush3.msra.mxu1 %v11380_v28 }
 0x217   :  { %8793 = vmatprep.subr.mxu1 %v11386_v29 }
 0x218   :  { %8794 = vmatpush3.msra.mxu1 %v11392_v30 }
 0x219   :  { %8795 = vmatprep.subr.mxu1 %v11398_v31 }
 0x21a   :  { %8796 = vmatpush3.msra.mxu1 %v11404_v32 }
 0x21b   :  { %733 = vmatmul.mubr.f32.vlgmr.msra.gmra.mxu1 %v8388_v43  ;;  %8831 = vmatprep.subr.mxu1 %v11217_v0  ;;  %v8436_v43 = vld [vmem:[%s13179_s25 + $0x180] sm:$0xff] }
 0x21c   :  { %8832 = vmatpush3.msra.mxu1 %v11222_v1  ;;  %737 = vmatprep.mubr.f32.mxu1 %v8391_v44  ;;  %v8439_v44 = vld [vmem:[%s13179_s25 + $0x198] sm:$0xff] }
 0x21d   :  { %8833 = vmatprep.subr.mxu1 %v11227_v2 }
 0x21e   :  { %8834 = vmatpush3.msra.mxu1 %v11233_v3 }
 0x21f   :  { %738 = vmatmul.mubr.f32.gmra.mxu1 %v8390_v45  ;;  %8835 = vmatprep.subr.mxu1 %v11239_v4  ;;  %v8438_v45 = vld [vmem:[%s13179_s25 + $0x190] sm:$0xff] }
 0x220   :  { %8836 = vmatpush3.msra.mxu1 %v11245_v5  ;;  %742 = vmatprep.mubr.f32.mxu1 %v8393_v46  ;;  %v8441_v46 = vld [vmem:[%s13179_s25 + $0x1a8] sm:$0xff] }
 0x221   :  { %8837 = vmatprep.subr.mxu1 %v11251_v6 }
 0x222   :  { %8838 = vmatpush3.msra.mxu1 %v11257_v7 }
 0x223   :  { %743 = vmatmul.mubr.f32.gmra.mxu1 %v8392_v47  ;;  %8839 = vmatprep.subr.mxu1 %v11263_v8  ;;  %v775_v47 = vld [vmem:[#allocation2 + $0x18] sm:$0xff] }
 0x224   :  { %8840 = vmatpush3.msra.mxu1 %v11269_v9  ;;  %747 = vmatprep.mubr.f32.mxu1 %v8395_v48  ;;  %v8440_v48 = vld [vmem:[%s13179_s25 + $0x1a0] sm:$0xff] }
 0x225   :  { %8841 = vmatprep.subr.mxu1 %v11275_v10  ;;  %9635 = vmatprep.subr.mxu0 %v775_v47 }
 0x226   :  { %8842 = vmatpush3.msra.mxu1 %v11281_v11  ;;  %9636 = vmatpush3.msra.mxu0 %v775_v47 }
 0x227   :  { %748 = vmatmul.mubr.f32.gmra.mxu1 %v8394_v49  ;;  %8843 = vmatprep.subr.mxu1 %v11287_v12  ;;  %v8443_v49 = vld [vmem:[%s13179_s25 + $0x1b8] sm:$0xff] }
 0x228   :  { %8844 = vmatpush3.msra.mxu1 %v11296_v14  ;;  %752 = vmatprep.mubr.f32.mxu1 %v8397_v50  ;;  %v774_v50 = vld [vmem:[#allocation2 + $0x10] sm:$0xff] }
 0x229   :  { %8845 = vmatprep.subr.mxu1 %v11302_v15  ;;  %9637 = vmatprep.subr.mxu0 %v774_v50 }
 0x22a   :  { %8846 = vmatpush3.msra.mxu1 %v11308_v16  ;;  %9638 = vmatpush3.msra.mxu0 %v774_v50 }
 0x22b   :  { %753 = vmatmul.mubr.f32.gmra.mxu1 %v8396_v51  ;;  %8847 = vmatprep.subr.mxu1 %v11314_v17  ;;  %v8442_v51 = vld [vmem:[%s13179_s25 + $0x1b0] sm:$0xff] }
 0x22c   :  { %8848 = vmatpush3.msra.mxu1 %v11320_v18  ;;  %757 = vmatprep.mubr.f32.mxu1 %v8399_v52  ;;  %v8445_v52 = vld [vmem:[%s13179_s25 + $0x1c8] sm:$0xff] }
 0x22d   :  { %8849 = vmatprep.subr.mxu1 %v11326_v19 }
 0x22e   :  { %8850 = vmatpush3.msra.mxu1 %v11332_v20 }
 0x22f   :  { %758 = vmatmul.mubr.f32.gmra.mxu1 %v8398_v53  ;;  %8851 = vmatprep.subr.mxu1 %v11338_v21  ;;  %v8444_v53 = vld [vmem:[%s13179_s25 + $0x1c0] sm:$0xff] }
 0x230   :  { %8852 = vmatpush3.msra.mxu1 %v11344_v22  ;;  %762 = vmatprep.mubr.f32.mxu1 %v8401_v54  ;;  %v8447_v54 = vld [vmem:[%s13179_s25 + $0x1d8] sm:$0xff] }
 0x231   :  { %8853 = vmatprep.subr.mxu1 %v11350_v23 }
 0x232   :  { %8854 = vmatpush3.msra.mxu1 %v11356_v24 }
 0x233   :  { %763 = vmatmul.mubr.f32.gmra.mxu1 %v8400_v55  ;;  %8855 = vmatprep.subr.mxu1 %v11362_v25  ;;  %v8446_v55 = vld [vmem:[%s13179_s25 + $0x1d0] sm:$0xff] }
 0x234   :  { %8856 = vmatpush3.msra.mxu1 %v11368_v26  ;;  %767 = vmatprep.mubr.f32.mxu1 %v8403_v56  ;;  %v8449_v56 = vld [vmem:[%s13179_s25 + $0x1e8] sm:$0xff] }
 0x235   :  { %8857 = vmatprep.subr.mxu1 %v11374_v27 }
 0x236   :  { %8858 = vmatpush3.msra.mxu1 %v11380_v28 }
 0x237   :  { %768 = vmatmul.mubr.f32.gmra.mxu1 %v8402_v57  ;;  %8859 = vmatprep.subr.mxu1 %v11386_v29  ;;  %v8448_v57 = vld [vmem:[%s13179_s25 + $0x1e0] sm:$0xff] }
 0x238   :  { %8860 = vmatpush3.msra.mxu1 %v11392_v30  ;;  %994 = vmatprep.mubr.f32.mxu1 %v8413_v58  ;;  %v8451_v58 = vld [vmem:[%s13179_s25 + $0x1f8] sm:$0xff] }
 0x239   :  { %8861 = vmatprep.subr.mxu1 %v11398_v31 }
 0x23a   :  { %8862 = vmatpush3.msra.mxu1 %v11404_v32 }
 0x23b   :  { %995 = vmatmul.mubr.f32.vlgmr.msra.gmra.mxu1 %v8412_v59  ;;  %8897 = vmatprep.subr.mxu1 %v11217_v0  ;;  %v8450_v59 = vld [vmem:[%s13179_s25 + $0x1f0] sm:$0xff] }
 0x23c   :  { %8898 = vmatpush3.msra.mxu1 %v11222_v1  ;;  %999 = vmatprep.mubr.f32.mxu1 %v8415_v60  ;;  %v1037_v60 = vld [vmem:[#allocation2 + $0x28] sm:$0xff] }
 0x23d   :  { %8899 = vmatprep.subr.mxu1 %v11227_v2  ;;  %9651 = vmatprep.subr.mxu0 %v1037_v60 }
 0x23e   :  { %8900 = vmatpush3.msra.mxu1 %v11233_v3 }
 0x23f   :  { %1000 = vmatmul.mubr.f32.gmra.mxu1 %v8414_v61  ;;  %8901 = vmatprep.subr.mxu1 %v11239_v4 }
 0x240   :  { %8902 = vmatpush3.msra.mxu1 %v11245_v5  ;;  %1004 = vmatprep.mubr.f32.mxu1 %v8417_v62 }
 0x241   :  { %8903 = vmatprep.subr.mxu1 %v11251_v6 }
 0x242   :  { %8904 = vmatpush3.msra.mxu1 %v11257_v7 }
 0x243   :  { %1005 = vmatmul.mubr.f32.gmra.mxu1 %v8416_v63  ;;  %8905 = vmatprep.subr.mxu1 %v11263_v8 }
 0x244   :  { %8906 = vmatpush3.msra.mxu1 %v11269_v9  ;;  %1009 = vmatprep.mubr.f32.mxu1 %v8419_v13 }
 0x245   :  { %8907 = vmatprep.subr.mxu1 %v11275_v10 }
 0x246   :  { %8908 = vmatpush3.msra.mxu1 %v11281_v11 }
 0x247   :  { %1010 = vmatmul.mubr.f32.gmra.mxu1 %v8418_v33  ;;  %8909 = vmatprep.subr.mxu1 %v11287_v12 }
 0x248   :  { %8910 = vmatpush3.msra.mxu1 %v11296_v14  ;;  %1014 = vmatprep.mubr.f32.mxu1 %v8421_v34 }
 0x249   :  { %8911 = vmatprep.subr.mxu1 %v11302_v15 }
 0x24a   :  { %8912 = vmatpush3.msra.mxu1 %v11308_v16 }
 0x24b   :  { %1015 = vmatmul.mubr.f32.gmra.mxu1 %v8420_v35  ;;  %8913 = vmatprep.subr.mxu1 %v11314_v17 }
 0x24c   :  { %8914 = vmatpush3.msra.mxu1 %v11320_v18  ;;  %1019 = vmatprep.mubr.f32.mxu1 %v8423_v36 }
 0x24d   :  { %8915 = vmatprep.subr.mxu1 %v11326_v19 }
 0x24e   :  { %8916 = vmatpush3.msra.mxu1 %v11332_v20 }
 0x24f   :  { %1020 = vmatmul.mubr.f32.gmra.mxu1 %v8422_v37  ;;  %8917 = vmatprep.subr.mxu1 %v11338_v21 }
 0x250   :  { %8918 = vmatpush3.msra.mxu1 %v11344_v22  ;;  %1024 = vmatprep.mubr.f32.mxu1 %v8425_v38 }
 0x251   :  { %8919 = vmatprep.subr.mxu1 %v11350_v23 }
 0x252   :  { %8920 = vmatpush3.msra.mxu1 %v11356_v24 }
 0x253   :  { %1025 = vmatmul.mubr.f32.gmra.mxu1 %v8424_v39  ;;  %8921 = vmatprep.subr.mxu1 %v11362_v25 }
 0x254   :  { %8922 = vmatpush3.msra.mxu1 %v11368_v26  ;;  %1029 = vmatprep.mubr.f32.mxu1 %v8427_v40 }
 0x255   :  { %8923 = vmatprep.subr.mxu1 %v11374_v27 }
 0x256   :  { %8924 = vmatpush3.msra.mxu1 %v11380_v28 }
 0x257   :  { %1030 = vmatmul.mubr.f32.gmra.mxu1 %v8426_v41  ;;  %8925 = vmatprep.subr.mxu1 %v11386_v29 }
 0x258   :  { %8926 = vmatpush3.msra.mxu1 %v11392_v30  ;;  %1256 = vmatprep.mubr.f32.mxu1 %v8437_v42 }
 0x259   :  { %8927 = vmatprep.subr.mxu1 %v11398_v31 }
 0x25a   :  { %8928 = vmatpush3.msra.mxu1 %v11404_v32 }
 0x25b   :  { %1257 = vmatmul.mubr.f32.vlgmr.msra.gmra.mxu1 %v8436_v43 }
 0x25c   :  { %1261 = vmatprep.mubr.f32.mxu1 %v8439_v44  ;;  %v1036_v44 = vld [vmem:[#allocation2 + $0x20] sm:$0xff] }
 0x25f   :  { %1262 = vmatmul.mubr.f32.gmra.mxu1 %v8438_v45 }
 0x260   :  { %1266 = vmatprep.mubr.f32.mxu1 %v8441_v46  ;;  %v1299_v46 = vld [vmem:[#allocation2 + $0x38] sm:$0xff] }
 0x263   :  { %1267 = vmatmul.mubr.f32.gmra.mxu1 %v8440_v48 }
 0x264   :  { %1271 = vmatprep.mubr.f32.mxu1 %v8443_v49 }
 0x267   :  { %1272 = vmatmul.mubr.f32.gmra.mxu1 %v8442_v51 }
 0x268   :  { %1276 = vmatprep.mubr.f32.mxu1 %v8445_v52 }
 0x26b   :  { %1277 = vmatmul.mubr.f32.gmra.mxu1 %v8444_v53 }
 0x26c   :  { %1281 = vmatprep.mubr.f32.mxu1 %v8447_v54 }
 0x26f   :  { %1282 = vmatmul.mubr.f32.gmra.mxu1 %v8446_v55 }
 0x270   :  { %1286 = vmatprep.mubr.f32.mxu1 %v8449_v56 }
 0x273   :  { %1287 = vmatmul.mubr.f32.gmra.mxu1 %v8448_v57 }
 0x274   :  { %1291 = vmatprep.mubr.f32.mxu1 %v8451_v58 }
 0x277   :  { %1292 = vmatmul.mubr.f32.gmra.mxu1 %v8450_v59 }
 0x2bb   :  { %v11702_v61 = vpop.f32.mrf.mxu1 }
 0x2bd   :  { %v11704_v62 = vpop.f32.mrf.mxu1 }
 0x2c3   :  { %v11706_v63 = vpop.f32.mrf.mxu1 }
 0x2c5   :  { %v11708_v13 = vpop.f32.mrf.mxu1 }
 0x2c6   :  { %13180 = vst [vmem:[#allocation45_spill] sm:$0xff] %v11708_v13 }
 0x2cb   :  { %v11710_v33 = vpop.f32.mrf.mxu1 }
 0x2cd   :  { %v11712_v34 = vpop.f32.mrf.mxu1 }
 0x2d3   :  { %v11714_v35 = vpop.f32.mrf.mxu1 }
 0x2d5   :  { %v11716_v36 = vpop.f32.mrf.mxu1 }
 0x2db   :  { %v8797_v37 = vpop.f32.mrf.mxu1 }
 0x2dd   :  { %v8798_v38 = vpop.f32.mrf.mxu1 }
 0x2de   :  { %v8799_v39 = vadd.f32 %v8798_v38, %v8797_v37 }
 0x2df   :  { %v8800_v40 = vpop.f32.mrf.mxu1 }
 0x2e0   :  { %9639 = vmatprep.mubr.msk.f32.mxu0 %vm507_vm0, %v8799_v39 }
 0x2e1   :  { %v8801_v41 = vpop.f32.mrf.mxu1 }
 0x2e2   :  { %v8802_v42 = vadd.f32 %v8801_v41, %v8800_v40 }
 0x2e3   :  { %v8803_v43 = vpop.f32.mrf.mxu1 }
 0x2e4   :  { %9640 = vmatmul.mubr.msk.f32.vlgmr.msra.gmra.mxu0 %vm507_vm0, %v8802_v42 }
 0x2e5   :  { %v8804_v45 = vpop.f32.mrf.mxu1  ;;  %9652 = vmatpush3.msra.mxu0 %v1037_v60 }
 0x2e6   :  { %v8805_v47 = vadd.f32 %v8804_v45, %v8803_v43  ;;  %9653 = vmatprep.subr.mxu0 %v1036_v44 }
 0x2e7   :  { %v8806_v48 = vpop.f32.mrf.mxu1  ;;  %9654 = vmatpush3.msra.mxu0 %v1036_v44 }
 0x2e8   :  { %9642 = vmatprep.mubr.msk.f32.mxu0 %vm507_vm0, %v8805_v47  ;;  %9667 = vmatprep.subr.mxu0 %v1299_v46  ;;  %v1298_v47 = vld [vmem:[#allocation2 + $0x30] sm:$0xff] }
 0x2e9   :  { %v8807_v49 = vpop.f32.mrf.mxu1 }
 0x2ea   :  { %v8808_v50 = vadd.f32 %v8807_v49, %v8806_v48 }
 0x2eb   :  { %v8809_v51 = vpop.f32.mrf.mxu1 }
 0x2ec   :  { %9643 = vmatmul.mubr.msk.f32.gmra.mxu0 %vm507_vm0, %v8808_v50 }
 0x2ed   :  { %v8810_v52 = vpop.f32.mrf.mxu1 }
 0x2ee   :  { %v8811_v53 = vadd.f32 %v8810_v52, %v8809_v51 }
 0x2ef   :  { %v8812_v54 = vpop.f32.mrf.mxu1 }
 0x2f0   :  { %9645 = vmatprep.mubr.msk.f32.mxu0 %vm507_vm0, %v8811_v53 }
 0x2f1   :  { %v8813_v55 = vpop.f32.mrf.mxu1 }
 0x2f2   :  { %v8814_v56 = vadd.f32 %v8813_v55, %v8812_v54 }
 0x2f3   :  { %v8815_v57 = vpop.f32.mrf.mxu1 }
 0x2f4   :  { %9646 = vmatmul.mubr.msk.f32.gmra.mxu0 %vm507_vm0, %v8814_v56 }
 0x2f5   :  { %v8816_v58 = vpop.f32.mrf.mxu1 }
 0x2f6   :  { %v8817_v59 = vadd.f32 %v8816_v58, %v8815_v57 }
 0x2f7   :  { %v8818_v60 = vpop.f32.mrf.mxu1 }
 0x2f8   :  { %9648 = vmatprep.mubr.msk.f32.mxu0 %vm507_vm0, %v8817_v59 }
 0x2f9   :  { %v8819_v37 = vpop.f32.mrf.mxu1 }
 0x2fa   :  { %v8820_v38 = vadd.f32 %v8819_v37, %v8818_v60 }
 0x2fb   :  { %v8863_v39 = vpop.f32.mrf.mxu1 }
 0x2fc   :  { %9649 = vmatmul.mubr.msk.f32.gmra.mxu0 %vm507_vm0, %v8820_v38 }
 0x2fd   :  { %v8864_v40 = vpop.f32.mrf.mxu1 }
 0x2fe   :  { %v8865_v41 = vadd.f32 %v8864_v40, %v8863_v39 }
 0x2ff   :  { %v8866_v42 = vpop.f32.mrf.mxu1 }
 0x300   :  { %9655 = vmatprep.mubr.msk.f32.mxu0 %vm507_vm0, %v8865_v41 }
 0x301   :  { %v8867_v43 = vpop.f32.mrf.mxu1 }
 0x302   :  { %v8868_v44 = vadd.f32 %v8867_v43, %v8866_v42 }
 0x303   :  { %v8869_v45 = vpop.f32.mrf.mxu1 }
 0x304   :  { %9656 = vmatmul.mubr.msk.f32.vlgmr.msra.gmra.mxu0 %vm507_vm0, %v8868_v44 }
 0x305   :  { %v8870_v48 = vpop.f32.mrf.mxu1  ;;  %9668 = vmatpush3.msra.mxu0 %v1299_v46 }
 0x306   :  { %v8871_v49 = vadd.f32 %v8870_v48, %v8869_v45  ;;  %9669 = vmatprep.subr.mxu0 %v1298_v47 }
 0x307   :  { %v8872_v50 = vpop.f32.mrf.mxu1  ;;  %9670 = vmatpush3.msra.mxu0 %v1298_v47 }
 0x308   :  { %9658 = vmatprep.mubr.msk.f32.mxu0 %vm507_vm0, %v8871_v49  ;;  %8963 = vmatprep.subr.mxu0 %v11217_v0 }
 0x309   :  { %v8873_v51 = vpop.f32.mrf.mxu1 }
 0x30a   :  { %v8874_v52 = vadd.f32 %v8873_v51, %v8872_v50 }
 0x30b   :  { %v8875_v53 = vpop.f32.mrf.mxu1 }
 0x30c   :  { %9659 = vmatmul.mubr.msk.f32.gmra.mxu0 %vm507_vm0, %v8874_v52 }
 0x30d   :  { %v8876_v54 = vpop.f32.mrf.mxu1 }
 0x30e   :  { %v8877_v55 = vadd.f32 %v8876_v54, %v8875_v53 }
 0x30f   :  { %v8878_v56 = vpop.f32.mrf.mxu1 }
 0x310   :  { %9661 = vmatprep.mubr.msk.f32.mxu0 %vm507_vm0, %v8877_v55 }
 0x311   :  { %v8879_v57 = vpop.f32.mrf.mxu1 }
 0x312   :  { %v8880_v46 = vadd.f32 %v8879_v57, %v8878_v56 }
 0x313   :  { %v8881_v58 = vpop.f32.mrf.mxu1 }
 0x314   :  { %9662 = vmatmul.mubr.msk.f32.gmra.mxu0 %vm507_vm0, %v8880_v46 }
 0x315   :  { %v8882_v59 = vpop.f32.mrf.mxu1 }
 0x316   :  { %v8883_v60 = vadd.f32 %v8882_v59, %v8881_v58 }
 0x317   :  { %v8884_v37 = vpop.f32.mrf.mxu1 }
 0x318   :  { %9664 = vmatprep.mubr.msk.f32.mxu0 %vm507_vm0, %v8883_v60 }
 0x319   :  { %v8885_v38 = vpop.f32.mrf.mxu1 }
 0x31a   :  { %v8886_v39 = vadd.f32 %v8885_v38, %v8884_v37 }
 0x31b   :  { %v8929_v40 = vpop.f32.mrf.mxu1 }
 0x31c   :  { %9665 = vmatmul.mubr.msk.f32.gmra.mxu0 %vm507_vm0, %v8886_v39 }
 0x31d   :  { %v8930_v41 = vpop.f32.mrf.mxu1 }
 0x31e   :  { %v8931_v42 = vadd.f32 %v8930_v41, %v8929_v40  ;;  %v8461_v40 = vld [vmem:[%s13179_s25 + $0x208] sm:$0xff]  ;;  %v8460_v41 = vld [vmem:[%s13179_s25 + $0x200] sm:$0xff] }
 0x31f   :  { %v8932_v43 = vpop.f32.mrf.mxu1 }
 0x320   :  { %9671 = vmatprep.mubr.msk.f32.mxu0 %vm507_vm0, %v8931_v42  ;;  %v8463_v42 = vld [vmem:[%s13179_s25 + $0x218] sm:$0xff] }
 0x321   :  { %v8933_v44 = vpop.f32.mrf.mxu1 }
 0x322   :  { %v8934_v45 = vadd.f32 %v8933_v44, %v8932_v43  ;;  %v8462_v43 = vld [vmem:[%s13179_s25 + $0x210] sm:$0xff]  ;;  %v8465_v44 = vld [vmem:[%s13179_s25 + $0x228] sm:$0xff] }
 0x323   :  { %v8935_v47 = vpop.f32.mrf.mxu1 }
 0x324   :  { %9672 = vmatmul.mubr.msk.f32.vlgmr.msra.gmra.mxu0 %vm507_vm0, %v8934_v45 }
 0x325   :  { %8964 = vmatpush3.msra.mxu0 %v11222_v1  ;;  %v8936_v48 = vpop.f32.mrf.mxu1 }
 0x326   :  { %v8937_v49 = vadd.f32 %v8936_v48, %v8935_v47  ;;  %8965 = vmatprep.subr.mxu0 %v11227_v2 }
 0x327   :  { %8966 = vmatpush3.msra.mxu0 %v11233_v3  ;;  %v8938_v50 = vpop.f32.mrf.mxu1 }
 0x328   :  { %8967 = vmatprep.subr.mxu0 %v11239_v4  ;;  %9674 = vmatprep.mubr.msk.f32.mxu0 %vm507_vm0, %v8937_v49 }
 0x329   :  { %8968 = vmatpush3.msra.mxu0 %v11245_v5  ;;  %v8939_v51 = vpop.f32.mrf.mxu1 }
 0x32a   :  { %v8940_v52 = vadd.f32 %v8939_v51, %v8938_v50  ;;  %8969 = vmatprep.subr.mxu0 %v11251_v6 }
 0x32b   :  { %8970 = vmatpush3.msra.mxu0 %v11257_v7  ;;  %v8941_v53 = vpop.f32.mrf.mxu1 }
 0x32c   :  { %8971 = vmatprep.subr.mxu0 %v11263_v8  ;;  %9675 = vmatmul.mubr.msk.f32.gmra.mxu0 %vm507_vm0, %v8940_v52 }
 0x32d   :  { %8972 = vmatpush3.msra.mxu0 %v11269_v9  ;;  %v8942_v54 = vpop.f32.mrf.mxu1 }
 0x32e   :  { %v8943_v55 = vadd.f32 %v8942_v54, %v8941_v53  ;;  %8973 = vmatprep.subr.mxu0 %v11275_v10 }
 0x32f   :  { %8974 = vmatpush3.msra.mxu0 %v11281_v11  ;;  %v8944_v56 = vpop.f32.mrf.mxu1 }
 0x330   :  { %8975 = vmatprep.subr.mxu0 %v11287_v12  ;;  %9677 = vmatprep.mubr.msk.f32.mxu0 %vm507_vm0, %v8943_v55 }
 0x331   :  { %8976 = vmatpush3.msra.mxu0 %v11296_v14  ;;  %v8945_v57 = vpop.f32.mrf.mxu1 }
 0x332   :  { %v8946_v46 = vadd.f32 %v8945_v57, %v8944_v56  ;;  %8977 = vmatprep.subr.mxu0 %v11302_v15 }
 0x333   :  { %8978 = vmatpush3.msra.mxu0 %v11308_v16  ;;  %v8947_v58 = vpop.f32.mrf.mxu1 }
 0x334   :  { %8979 = vmatprep.subr.mxu0 %v11314_v17  ;;  %9678 = vmatmul.mubr.msk.f32.gmra.mxu0 %vm507_vm0, %v8946_v46 }
 0x335   :  { %8980 = vmatpush3.msra.mxu0 %v11320_v18  ;;  %v8948_v59 = vpop.f32.mrf.mxu1 }
 0x336   :  { %v8949_v60 = vadd.f32 %v8948_v59, %v8947_v58  ;;  %8981 = vmatprep.subr.mxu0 %v11326_v19 }
 0x337   :  { %8982 = vmatpush3.msra.mxu0 %v11332_v20  ;;  %v8950_v37 = vpop.f32.mrf.mxu1 }
 0x338   :  { %8983 = vmatprep.subr.mxu0 %v11338_v21  ;;  %9680 = vmatprep.mubr.msk.f32.mxu0 %vm507_vm0, %v8949_v60 }
 0x339   :  { %8984 = vmatpush3.msra.mxu0 %v11344_v22  ;;  %v8951_v38 = vpop.f32.mrf.mxu1 }
 0x33a   :  { %v8952_v39 = vadd.f32 %v8951_v38, %v8950_v37  ;;  %8985 = vmatprep.subr.mxu0 %v11350_v23 }
 0x33b   :  { %8986 = vmatpush3.msra.mxu0 %v11356_v24 }
 0x33c   :  { %8987 = vmatprep.subr.mxu0 %v11362_v25  ;;  %9681 = vmatmul.mubr.msk.f32.gmra.mxu0 %vm507_vm0, %v8952_v39 }
 0x33d   :  { %8988 = vmatpush3.msra.mxu0 %v11368_v26  ;;  %1518 = vmatprep.mubr.f32.mxu0 %v8461_v40 }
 0x33e   :  { %8989 = vmatprep.subr.mxu0 %v11374_v27 }
 0x33f   :  { %8990 = vmatpush3.msra.mxu0 %v11380_v28 }
 0x340   :  { %8991 = vmatprep.subr.mxu0 %v11386_v29 }
 0x341   :  { %8992 = vmatpush3.msra.mxu0 %v11392_v30 }
 0x342   :  { %8993 = vmatprep.subr.mxu0 %v11398_v31 }
 0x343   :  { %8994 = vmatpush3.msra.mxu0 %v11404_v32 }
 0x344   :  { %1519 = vmatmul.mubr.f32.vlgmr.msra.gmra.mxu0 %v8460_v41  ;;  %9029 = vmatprep.subr.mxu0 %v11217_v0  ;;  %v8464_v0 = vld [vmem:[%s13179_s25 + $0x220] sm:$0xff] }
 0x345   :  { %9030 = vmatpush3.msra.mxu0 %v11222_v1  ;;  %1523 = vmatprep.mubr.f32.mxu0 %v8463_v42  ;;  %v8467_v1 = vld [vmem:[%s13179_s25 + $0x238] sm:$0xff] }
 0x346   :  { %9031 = vmatprep.subr.mxu0 %v11227_v2  ;;  %v8466_v2 = vld [vmem:[%s13179_s25 + $0x230] sm:$0xff] }
 0x347   :  { %9032 = vmatpush3.msra.mxu0 %v11233_v3  ;;  %v8469_v3 = vld [vmem:[%s13179_s25 + $0x248] sm:$0xff] }
 0x348   :  { %1524 = vmatmul.mubr.f32.gmra.mxu0 %v8462_v43  ;;  %9033 = vmatprep.subr.mxu0 %v11239_v4  ;;  %v8468_v4 = vld [vmem:[%s13179_s25 + $0x240] sm:$0xff] }
 0x349   :  { %9034 = vmatpush3.msra.mxu0 %v11245_v5  ;;  %1528 = vmatprep.mubr.f32.mxu0 %v8465_v44  ;;  %v8471_v5 = vld [vmem:[%s13179_s25 + $0x258] sm:$0xff] }
 0x34a   :  { %9035 = vmatprep.subr.mxu0 %v11251_v6  ;;  %v8470_v6 = vld [vmem:[%s13179_s25 + $0x250] sm:$0xff] }
 0x34b   :  { %9036 = vmatpush3.msra.mxu0 %v11257_v7  ;;  %v8473_v7 = vld [vmem:[%s13179_s25 + $0x268] sm:$0xff] }
 0x34c   :  { %1529 = vmatmul.mubr.f32.gmra.mxu0 %v8464_v0  ;;  %9037 = vmatprep.subr.mxu0 %v11263_v8  ;;  %v8472_v8 = vld [vmem:[%s13179_s25 + $0x260] sm:$0xff] }
 0x34d   :  { %9038 = vmatpush3.msra.mxu0 %v11269_v9  ;;  %1533 = vmatprep.mubr.f32.mxu0 %v8467_v1  ;;  %v8475_v9 = vld [vmem:[%s13179_s25 + $0x278] sm:$0xff] }
 0x34e   :  { %9039 = vmatprep.subr.mxu0 %v11275_v10  ;;  %v8474_v10 = vld [vmem:[%s13179_s25 + $0x270] sm:$0xff] }
 0x34f   :  { %9040 = vmatpush3.msra.mxu0 %v11281_v11  ;;  %v8485_v11 = vld [vmem:[%s13179_s25 + $0x288] sm:$0xff] }
 0x350   :  { %1534 = vmatmul.mubr.f32.gmra.mxu0 %v8466_v2  ;;  %9041 = vmatprep.subr.mxu0 %v11287_v12  ;;  %v8484_v12 = vld [vmem:[%s13179_s25 + $0x280] sm:$0xff] }
 0x351   :  { %9042 = vmatpush3.msra.mxu0 %v11296_v14  ;;  %1538 = vmatprep.mubr.f32.mxu0 %v8469_v3  ;;  %v8487_v14 = vld [vmem:[%s13179_s25 + $0x298] sm:$0xff] }
 0x352   :  { %9043 = vmatprep.subr.mxu0 %v11302_v15  ;;  %v8486_v15 = vld [vmem:[%s13179_s25 + $0x290] sm:$0xff] }
 0x353   :  { %9044 = vmatpush3.msra.mxu0 %v11308_v16  ;;  %v8489_v16 = vld [vmem:[%s13179_s25 + $0x2a8] sm:$0xff] }
 0x354   :  { %1539 = vmatmul.mubr.f32.gmra.mxu0 %v8468_v4  ;;  %9045 = vmatprep.subr.mxu0 %v11314_v17  ;;  %v8488_v17 = vld [vmem:[%s13179_s25 + $0x2a0] sm:$0xff] }
 0x355   :  { %9046 = vmatpush3.msra.mxu0 %v11320_v18  ;;  %1543 = vmatprep.mubr.f32.mxu0 %v8471_v5  ;;  %v8491_v18 = vld [vmem:[%s13179_s25 + $0x2b8] sm:$0xff] }
 0x356   :  { %9047 = vmatprep.subr.mxu0 %v11326_v19  ;;  %v8490_v19 = vld [vmem:[%s13179_s25 + $0x2b0] sm:$0xff] }
 0x357   :  { %9048 = vmatpush3.msra.mxu0 %v11332_v20  ;;  %v8493_v20 = vld [vmem:[%s13179_s25 + $0x2c8] sm:$0xff] }
 0x358   :  { %1544 = vmatmul.mubr.f32.gmra.mxu0 %v8470_v6  ;;  %9049 = vmatprep.subr.mxu0 %v11338_v21  ;;  %v8492_v21 = vld [vmem:[%s13179_s25 + $0x2c0] sm:$0xff] }
 0x359   :  { %9050 = vmatpush3.msra.mxu0 %v11344_v22  ;;  %1548 = vmatprep.mubr.f32.mxu0 %v8473_v7  ;;  %v8495_v22 = vld [vmem:[%s13179_s25 + $0x2d8] sm:$0xff] }
 0x35a   :  { %9051 = vmatprep.subr.mxu0 %v11350_v23  ;;  %v8494_v23 = vld [vmem:[%s13179_s25 + $0x2d0] sm:$0xff] }
 0x35b   :  { %9052 = vmatpush3.msra.mxu0 %v11356_v24  ;;  %v8497_v24 = vld [vmem:[%s13179_s25 + $0x2e8] sm:$0xff] }
 0x35c   :  { %1549 = vmatmul.mubr.f32.gmra.mxu0 %v8472_v8  ;;  %9053 = vmatprep.subr.mxu0 %v11362_v25  ;;  %v8496_v25 = vld [vmem:[%s13179_s25 + $0x2e0] sm:$0xff] }
 0x35d   :  { %9054 = vmatpush3.msra.mxu0 %v11368_v26  ;;  %1553 = vmatprep.mubr.f32.mxu0 %v8475_v9  ;;  %v8499_v26 = vld [vmem:[%s13179_s25 + $0x2f8] sm:$0xff] }
 0x35e   :  { %9055 = vmatprep.subr.mxu0 %v11374_v27  ;;  %v8498_v27 = vld [vmem:[%s13179_s25 + $0x2f0] sm:$0xff] }
 0x35f   :  { %9056 = vmatpush3.msra.mxu0 %v11380_v28  ;;  %v1561_v28 = vld [vmem:[#allocation2 + $0x48] sm:$0xff] }
 0x360   :  { %1554 = vmatmul.mubr.f32.gmra.mxu0 %v8474_v10  ;;  %9057 = vmatprep.subr.mxu0 %v11386_v29  ;;  %v1560_v29 = vld [vmem:[#allocation2 + $0x40] sm:$0xff] }
 0x361   :  { %9058 = vmatpush3.msra.mxu0 %v11392_v30  ;;  %1780 = vmatprep.mubr.f32.mxu0 %v8485_v11  ;;  %v1823_v30 = vld [vmem:[#allocation2 + $0x58] sm:$0xff] }
 0x362   :  { %9059 = vmatprep.subr.mxu0 %v11398_v31  ;;  %9683 = vmatprep.subr.mxu1 %v1561_v28  ;;  %v11902_v31 = vld [vmem:[#allocation4] ss:$0 sm:$0xff] }
 0x363   :  { %9060 = vmatpush3.msra.mxu0 %v11404_v32  ;;  %9684 = vmatpush3.msra.mxu1 %v1561_v28  ;;  %v644_v32 = vadd.f32 %v11702_v61, %v11902_v31  ;;  %v646_v49 = vadd.f32 %v11706_v63, %v11902_v31  ;;  %v648_v53 = vadd.f32 %v11710_v33, %v11902_v31 }
 0x364   :  { %1781 = vmatmul.mubr.f32.vlgmr.msra.gmra.mxu0 %v8484_v12  ;;  %9685 = vmatprep.subr.mxu1 %v1560_v29  ;;  %v650_v61 = vadd.f32 %v11714_v35, %v11902_v31 }
 0x365   :  { %1785 = vmatprep.mubr.f32.mxu0 %v8487_v14  ;;  %9686 = vmatpush3.msra.mxu1 %v1560_v29 }
 0x366   :  { %9699 = vmatprep.subr.mxu1 %v1823_v30 }
 0x368   :  { %1786 = vmatmul.mubr.f32.gmra.mxu0 %v8486_v15 }
 0x369   :  { %1790 = vmatprep.mubr.f32.mxu0 %v8489_v16 }
 0x36c   :  { %1791 = vmatmul.mubr.f32.gmra.mxu0 %v8488_v17 }
 0x36d   :  { %1795 = vmatprep.mubr.f32.mxu0 %v8491_v18 }
 0x370   :  { %1796 = vmatmul.mubr.f32.gmra.mxu0 %v8490_v19  ;;  %v1822_v19 = vld [vmem:[#allocation2 + $0x50] sm:$0xff] }
 0x371   :  { %1800 = vmatprep.mubr.f32.mxu0 %v8493_v20 }
 0x374   :  { %1801 = vmatmul.mubr.f32.gmra.mxu0 %v8492_v21 }
 0x375   :  { %1805 = vmatprep.mubr.f32.mxu0 %v8495_v22 }
 0x378   :  { %1806 = vmatmul.mubr.f32.gmra.mxu0 %v8494_v23  ;;  %v11950_v23 = vld [vmem:[%s13178_s11 + $0xf8] sm:$0xff] }
 0x379   :  { %1810 = vmatprep.mubr.f32.mxu0 %v8497_v24 }
 0x37c   :  { %1811 = vmatmul.mubr.f32.gmra.mxu0 %v8496_v25 }
 0x37d   :  { %1815 = vmatprep.mubr.f32.mxu0 %v8499_v26 }
 0x380   :  { %1816 = vmatmul.mubr.f32.gmra.mxu0 %v8498_v27 }
 0x3a4   :  { %v9641_v45 = vpop.f32.mrf.mxu0 }
 0x3a5   :  { %v906_v47 = vadd.f32 %v9641_v45, %v644_v32 }
 0x3a6   :  { %v11906_v48 = vpop.f32.mrf.mxu0 }
 0x3ac   :  { %v9644_v50 = vpop.f32.mrf.mxu0 }
 0x3ad   :  { %v908_v51 = vadd.f32 %v9644_v50, %v646_v49 }
 0x3ae   :  { %v11910_v52 = vpop.f32.mrf.mxu0 }
 0x3af   :  { %13181 = vst [vmem:[#allocation46_spill] sm:$0xff] %v11910_v52 }
 0x3b4   :  { %v9647_v54 = vpop.f32.mrf.mxu0 }
 0x3b5   :  { %v910_v55 = vadd.f32 %v9647_v54, %v648_v53 }
 0x3b6   :  { %v11914_v56 = vpop.f32.mrf.mxu0 }
 0x3bc   :  { %v9650_v57 = vpop.f32.mrf.mxu0 }
 0x3bd   :  { %v912_v46 = vadd.f32 %v9650_v57, %v650_v61 }
 0x3be   :  { %v11918_v58 = vpop.f32.mrf.mxu0 }
 0x3c4   :  { %v9657_v59 = vpop.f32.mrf.mxu0 }
 0x3c5   :  { %v1168_v63 = vadd.f32 %v9657_v59, %v906_v47 }
 0x3c6   :  { %v11920_v60 = vpop.f32.mrf.mxu0 }
 0x3c7   :  { %13182 = vst [vmem:[#allocation47_spill] sm:$0xff] %v11920_v60 }
 0x3cc   :  { %v9660_v37 = vpop.f32.mrf.mxu0 }
 0x3cd   :  { %v1170_v38 = vadd.f32 %v9660_v37, %v908_v51  ;;  %v11963_v37 = vld [vmem:[%s13178_s11 + $0x78] sm:$0xff] }
 0x3ce   :  { %v11922_v39 = vpop.f32.mrf.mxu0 }
 0x3cf   :  { %13183 = vst [vmem:[#allocation48_spill] sm:$0xff] %v11922_v39  ;;  %v8571_v39 = vld [vmem:[%s13179_s25 + $0x478] sm:$0xff] }
 0x3d4   :  { %v9663_v33 = vpop.f32.mrf.mxu0 }
 0x3d5   :  { %v1172_v40 = vadd.f32 %v9663_v33, %v910_v55 }
 0x3d6   :  { %v11924_v41 = vpop.f32.mrf.mxu0 }
 0x3dc   :  { %v9666_v42 = vpop.f32.mrf.mxu0 }
 0x3dd   :  { %v1174_v43 = vadd.f32 %v9666_v42, %v912_v46  ;;  %v11975_v42 = vld [vmem:[%s13178_s11 + $0x70] sm:$0xff] }
 0x3de   :  { %v11926_v44 = vpop.f32.mrf.mxu0 }
 0x3e4   :  { %v9673_v35 = vpop.f32.mrf.mxu0 }
 0x3e5   :  { %v11928_v0 = vadd.f32 %v9673_v35, %v1168_v63  ;;  %v11981_v35 = vld [vmem:[%s13178_s11 + $0xe8] sm:$0xff] }
 0x3e6   :  { %v11930_v1 = vpop.f32.mrf.mxu0 }
 0x3e7   :  { %13184 = vst [vmem:[#allocation49_spill] sm:$0xff] %v11930_v1 }
 0x3ec   :  { %v9676_v2 = vpop.f32.mrf.mxu0 }
 0x3ed   :  { %v11932_v3 = vadd.f32 %v9676_v2, %v1170_v38  ;;  %v11988_v2 = vld [vmem:[%s13178_s11 + $0x68] sm:$0xff] }
 0x3ee   :  { %v11934_v4 = vpop.f32.mrf.mxu0 }
 0x3ef   :  { %13185 = vst [vmem:[#allocation50_spill] sm:$0xff] %v11934_v4 }
 0x3f4   :  { %v9679_v5 = vpop.f32.mrf.mxu0 }
 0x3f5   :  { %v11936_v6 = vadd.f32 %v9679_v5, %v1172_v40  ;;  %v11969_v40 = vld [vmem:[%s13178_s11 + $0xf0] sm:$0xff] }
 0x3f6   :  { %v11938_v7 = vpop.f32.mrf.mxu0 }
 0x3fc   :  { %v9682_v8 = vpop.f32.mrf.mxu0 }
 0x3fd   :  { %v11940_v9 = vadd.f32 %v9682_v8, %v1174_v43 }
 0x3fe   :  { %v11942_v10 = vpop.f32.mrf.mxu0 }
 0x404   :  { %v8995_v11 = vpop.f32.mrf.mxu0 }
 0x406   :  { %v8996_v12 = vpop.f32.mrf.mxu0 }
 0x407   :  { %v8997_v14 = vadd.f32 %v8996_v12, %v8995_v11  ;;  %v11994_v11 = vld [vmem:[%s13178_s11 + $0xe0] sm:$0xff] }
 0x408   :  { %v8998_v15 = vpop.f32.mrf.mxu0  ;;  %v12000_v12 = vld [vmem:[%s13178_s11 + $0x60] sm:$0xff] }
 0x409   :  { %9687 = vmatprep.mubr.msk.f32.mxu1 %vm507_vm0, %v8997_v14 }
 0x40a   :  { %v8999_v16 = vpop.f32.mrf.mxu0 }
 0x40b   :  { %v9000_v17 = vadd.f32 %v8999_v16, %v8998_v15  ;;  %v12006_v15 = vld [vmem:[%s13178_s11 + $0xd8] sm:$0xff] }
 0x40c   :  { %v9001_v18 = vpop.f32.mrf.mxu0  ;;  %v12013_v16 = vld [vmem:[%s13178_s11 + $0x58] sm:$0xff] }
 0x40d   :  { %9688 = vmatmul.mubr.msk.f32.vlgmr.msra.gmra.mxu1 %vm507_vm0, %v9000_v17 }
 0x40e   :  { %v9002_v20 = vpop.f32.mrf.mxu0  ;;  %9700 = vmatpush3.msra.mxu1 %v1823_v30 }
 0x40f   :  { %v9003_v21 = vadd.f32 %v9002_v20, %v9001_v18  ;;  %9701 = vmatprep.subr.mxu1 %v1822_v19  ;;  %v12025_v20 = vld [vmem:[%s13178_s11 + $0x50] sm:$0xff] }
 0x410   :  { %v9004_v22 = vpop.f32.mrf.mxu0  ;;  %9702 = vmatpush3.msra.mxu1 %v1822_v19  ;;  %v12019_v19 = vld [vmem:[%s13178_s11 + $0xd0] sm:$0xff] }
 0x411   :  { %9690 = vmatprep.mubr.msk.f32.mxu1 %vm507_vm0, %v9003_v21  ;;  %9095 = vmatprep.subr.mxu1 %v11950_v23 }
 0x412   :  { %v9005_v24 = vpop.f32.mrf.mxu0 }
 0x413   :  { %v9006_v25 = vadd.f32 %v9005_v24, %v9004_v22  ;;  %v12031_v22 = vld [vmem:[%s13178_s11 + $0xc8] sm:$0xff] }
 0x414   :  { %v9007_v26 = vpop.f32.mrf.mxu0  ;;  %v12038_v24 = vld [vmem:[%s13178_s11 + $0x48] sm:$0xff] }
 0x415   :  { %9691 = vmatmul.mubr.msk.f32.gmra.mxu1 %vm507_vm0, %v9006_v25 }
 0x416   :  { %v9008_v27 = vpop.f32.mrf.mxu0 }
 0x417   :  { %v9009_v28 = vadd.f32 %v9008_v27, %v9007_v26  ;;  %v12044_v27 = vld [vmem:[%s13178_s11 + $0xc0] sm:$0xff] }
 0x418   :  { %v9010_v29 = vpop.f32.mrf.mxu0 }
 0x419   :  { %9693 = vmatprep.mubr.msk.f32.mxu1 %vm507_vm0, %v9009_v28  ;;  %v12050_v28 = vld [vmem:[%s13178_s11 + $0x40] sm:$0xff] }
 0x41a   :  { %v9011_v30 = vpop.f32.mrf.mxu0 }
 0x41b   :  { %v9012_v32 = vadd.f32 %v9011_v30, %v9010_v29  ;;  %v12056_v30 = vld [vmem:[%s13178_s11 + $0xb8] sm:$0xff] }
 0x41c   :  { %v9013_v45 = vpop.f32.mrf.mxu0 }
 0x41d   :  { %9694 = vmatmul.mubr.msk.f32.gmra.mxu1 %vm507_vm0, %v9012_v32  ;;  %v12063_v32 = vld [vmem:[%s13178_s11 + $0x38] sm:$0xff] }
 0x41e   :  { %v9014_v47 = vpop.f32.mrf.mxu0 }
 0x41f   :  { %v9015_v49 = vadd.f32 %v9014_v47, %v9013_v45 }
 0x420   :  { %v9016_v50 = vpop.f32.mrf.mxu0 }
 0x421   :  { %9696 = vmatprep.mubr.msk.f32.mxu1 %vm507_vm0, %v9015_v49  ;;  %v12069_v49 = vld [vmem:[%s13178_s11 + $0xb0] sm:$0xff] }
 0x422   :  { %v9017_v51 = vpop.f32.mrf.mxu0 }
 0x423   :  { %v9018_v53 = vadd.f32 %v9017_v51, %v9016_v50  ;;  %v12075_v50 = vld [vmem:[%s13178_s11 + $0x30] sm:$0xff] }
 0x424   :  { %v9061_v54 = vpop.f32.mrf.mxu0 }
 0x425   :  { %9697 = vmatmul.mubr.msk.f32.gmra.mxu1 %vm507_vm0, %v9018_v53  ;;  %v12081_v53 = vld [vmem:[%s13178_s11 + $0xa8] sm:$0xff] }
 0x426   :  { %v9062_v55 = vpop.f32.mrf.mxu0 }
 0x427   :  { %v9063_v61 = vadd.f32 %v9062_v55, %v9061_v54  ;;  %v12088_v54 = vld [vmem:[%s13178_s11 + $0x28] sm:$0xff] }
 0x428   :  { %v9064_v57 = vpop.f32.mrf.mxu0 }
 0x429   :  { %9703 = vmatprep.mubr.msk.f32.mxu1 %vm507_vm0, %v9063_v61 }
 0x42a   :  { %v9065_v46 = vpop.f32.mrf.mxu0 }
 0x42b   :  { %v9066_v59 = vadd.f32 %v9065_v46, %v9064_v57  ;;  %v12094_v57 = vld [vmem:[%s13178_s11 + $0xa0] sm:$0xff]  ;;  %v8509_v46 = vld [vmem:[%s13179_s25 + $0x308] sm:$0xff] }
 0x42c   :  { %v9067_v63 = vpop.f32.mrf.mxu0 }
 0x42d   :  { %9704 = vmatmul.mubr.msk.f32.vlgmr.msra.gmra.mxu1 %vm507_vm0, %v9066_v59  ;;  %v12103_v59 = vld [vmem:[%s13178_s11 + $0x20] sm:$0xff] }
 0x42e   :  { %9096 = vmatpush3.msra.mxu1 %v11963_v37  ;;  %v9068_v38 = vpop.f32.mrf.mxu0 }
 0x42f   :  { %v9069_v33 = vadd.f32 %v9068_v38, %v9067_v63  ;;  %9097 = vmatprep.subr.mxu1 %v11969_v40  ;;  %v12109_v63 = vld [vmem:[%s13178_s11 + $0x98] sm:$0xff] }
 0x430   :  { %9098 = vmatpush3.msra.mxu1 %v11975_v42  ;;  %v9070_v43 = vpop.f32.mrf.mxu0  ;;  %v12116_v38 = vld [vmem:[%s13178_s11 + $0x18] sm:$0xff] }
 0x431   :  { %9099 = vmatprep.subr.mxu1 %v11981_v35  ;;  %9706 = vmatprep.mubr.msk.f32.mxu1 %vm507_vm0, %v9069_v33  ;;  %v12122_v33 = vld [vmem:[%s13178_s11 + $0x90] sm:$0xff] }
 0x432   :  { %9100 = vmatpush3.msra.mxu1 %v11988_v2  ;;  %v9071_v5 = vpop.f32.mrf.mxu0 }
 0x433   :  { %v9072_v8 = vadd.f32 %v9071_v5, %v9070_v43  ;;  %9101 = vmatprep.subr.mxu1 %v11994_v11  ;;  %v12128_v43 = vld [vmem:[%s13178_s11 + $0x10] sm:$0xff]  ;;  %v12134_v5 = vld [vmem:[%s13178_s11 + $0x88] sm:$0xff] }
 0x434   :  { %9102 = vmatpush3.msra.mxu1 %v12000_v12  ;;  %v9073_v14 = vpop.f32.mrf.mxu0 }
 0x435   :  { %9103 = vmatprep.subr.mxu1 %v12006_v15  ;;  %9707 = vmatmul.mubr.msk.f32.gmra.mxu1 %vm507_vm0, %v9072_v8  ;;  %v12140_v8 = vld [vmem:[%s13178_s11 + $0x8] sm:$0xff] }
 0x436   :  { %9104 = vmatpush3.msra.mxu1 %v12013_v16  ;;  %v9074_v17 = vpop.f32.mrf.mxu0 }
 0x437   :  { %v9075_v18 = vadd.f32 %v9074_v17, %v9073_v14  ;;  %9105 = vmatprep.subr.mxu1 %v12019_v19  ;;  %v8508_v14 = vld [vmem:[%s13179_s25 + $0x300] sm:$0xff] }
 0x438   :  { %9106 = vmatpush3.msra.mxu1 %v12025_v20  ;;  %v9076_v21 = vpop.f32.mrf.mxu0  ;;  %v12149_v17 = vld [vmem:[%s13178_s11 + $0x80] sm:$0xff] }
 0x439   :  { %9107 = vmatprep.subr.mxu1 %v12031_v22  ;;  %9709 = vmatprep.mubr.msk.f32.mxu1 %vm507_vm0, %v9075_v18  ;;  %v8511_v18 = vld [vmem:[%s13179_s25 + $0x318] sm:$0xff] }
 0x43a   :  { %9108 = vmatpush3.msra.mxu1 %v12038_v24  ;;  %v9077_v25 = vpop.f32.mrf.mxu0 }
 0x43b   :  { %v9078_v26 = vadd.f32 %v9077_v25, %v9076_v21  ;;  %9109 = vmatprep.subr.mxu1 %v12044_v27  ;;  %v12158_v21 = vld [vmem:[%s13178_s11] sm:$0xff]  ;;  %v8510_v25 = vld [vmem:[%s13179_s25 + $0x310] sm:$0xff] }
 0x43c   :  { %9110 = vmatpush3.msra.mxu1 %v12050_v28  ;;  %v9079_v29 = vpop.f32.mrf.mxu0 }
 0x43d   :  { %9111 = vmatprep.subr.mxu1 %v12056_v30  ;;  %9710 = vmatmul.mubr.msk.f32.gmra.mxu1 %vm507_vm0, %v9078_v26  ;;  %v8513_v26 = vld [vmem:[%s13179_s25 + $0x328] sm:$0xff] }
 0x43e   :  { %9112 = vmatpush3.msra.mxu1 %v12063_v32  ;;  %v9080_v45 = vpop.f32.mrf.mxu0 }
 0x43f   :  { %v9081_v47 = vadd.f32 %v9080_v45, %v9079_v29  ;;  %9113 = vmatprep.subr.mxu1 %v12069_v49  ;;  %v8512_v29 = vld [vmem:[%s13179_s25 + $0x320] sm:$0xff]  ;;  %v8515_v45 = vld [vmem:[%s13179_s25 + $0x338] sm:$0xff] }
 0x440   :  { %9114 = vmatpush3.msra.mxu1 %v12075_v50  ;;  %v9082_v51 = vpop.f32.mrf.mxu0 }
 0x441   :  { %9115 = vmatprep.subr.mxu1 %v12081_v53  ;;  %9712 = vmatprep.mubr.msk.f32.mxu1 %vm507_vm0, %v9081_v47  ;;  %v8514_v47 = vld [vmem:[%s13179_s25 + $0x330] sm:$0xff] }
 0x442   :  { %9116 = vmatpush3.msra.mxu1 %v12088_v54  ;;  %v9083_v55 = vpop.f32.mrf.mxu0 }
 0x443   :  { %v9084_v61 = vadd.f32 %v9083_v55, %v9082_v51  ;;  %9117 = vmatprep.subr.mxu1 %v12094_v57  ;;  %v8517_v51 = vld [vmem:[%s13179_s25 + $0x348] sm:$0xff]  ;;  %v8516_v55 = vld [vmem:[%s13179_s25 + $0x340] sm:$0xff] }
 0x444   :  { %9118 = vmatpush3.msra.mxu1 %v12103_v59 }
 0x445   :  { %9119 = vmatprep.subr.mxu1 %v12109_v63  ;;  %9713 = vmatmul.mubr.msk.f32.gmra.mxu1 %vm507_vm0, %v9084_v61  ;;  %v8519_v61 = vld [vmem:[%s13179_s25 + $0x358] sm:$0xff] }
 0x446   :  { %9120 = vmatpush3.msra.mxu1 %v12116_v38  ;;  %2042 = vmatprep.mubr.f32.mxu1 %v8509_v46  ;;  %v8518_v46 = vld [vmem:[%s13179_s25 + $0x350] sm:$0xff] }
 0x447   :  { %9121 = vmatprep.subr.mxu1 %v12122_v33 }
 0x448   :  { %9122 = vmatpush3.msra.mxu1 %v12128_v43 }
 0x449   :  { %9123 = vmatprep.subr.mxu1 %v12134_v5 }
 0x44a   :  { %9124 = vmatpush3.msra.mxu1 %v12140_v8 }
 0x44b   :  { %9125 = vmatprep.subr.mxu1 %v12149_v17 }
 0x44c   :  { %9126 = vmatpush3.msra.mxu1 %v12158_v21 }
 0x44d   :  { %2043 = vmatmul.mubr.f32.vlgmr.msra.gmra.mxu1 %v8508_v14  ;;  %9161 = vmatprep.subr.mxu1 %v11950_v23  ;;  %v8521_v14 = vld [vmem:[%s13179_s25 + $0x368] sm:$0xff] }
 0x44e   :  { %9162 = vmatpush3.msra.mxu1 %v11963_v37  ;;  %2047 = vmatprep.mubr.f32.mxu1 %v8511_v18  ;;  %v8520_v18 = vld [vmem:[%s13179_s25 + $0x360] sm:$0xff] }
 0x44f   :  { %9163 = vmatprep.subr.mxu1 %v11969_v40 }
 0x450   :  { %9164 = vmatpush3.msra.mxu1 %v11975_v42 }
 0x451   :  { %2048 = vmatmul.mubr.f32.gmra.mxu1 %v8510_v25  ;;  %9165 = vmatprep.subr.mxu1 %v11981_v35  ;;  %v8523_v25 = vld [vmem:[%s13179_s25 + $0x378] sm:$0xff] }
 0x452   :  { %9166 = vmatpush3.msra.mxu1 %v11988_v2  ;;  %2052 = vmatprep.mubr.f32.mxu1 %v8513_v26  ;;  %v8522_v26 = vld [vmem:[%s13179_s25 + $0x370] sm:$0xff] }
 0x453   :  { %9167 = vmatprep.subr.mxu1 %v11994_v11 }
 0x454   :  { %9168 = vmatpush3.msra.mxu1 %v12000_v12 }
 0x455   :  { %2053 = vmatmul.mubr.f32.gmra.mxu1 %v8512_v29  ;;  %9169 = vmatprep.subr.mxu1 %v12006_v15  ;;  %v8533_v29 = vld [vmem:[%s13179_s25 + $0x388] sm:$0xff] }
 0x456   :  { %9170 = vmatpush3.msra.mxu1 %v12013_v16  ;;  %2057 = vmatprep.mubr.f32.mxu1 %v8515_v45  ;;  %v8532_v45 = vld [vmem:[%s13179_s25 + $0x380] sm:$0xff] }
 0x457   :  { %9171 = vmatprep.subr.mxu1 %v12019_v19 }
 0x458   :  { %9172 = vmatpush3.msra.mxu1 %v12025_v20 }
 0x459   :  { %2058 = vmatmul.mubr.f32.gmra.mxu1 %v8514_v47  ;;  %9173 = vmatprep.subr.mxu1 %v12031_v22  ;;  %v8535_v47 = vld [vmem:[%s13179_s25 + $0x398] sm:$0xff] }
 0x45a   :  { %9174 = vmatpush3.msra.mxu1 %v12038_v24  ;;  %2062 = vmatprep.mubr.f32.mxu1 %v8517_v51  ;;  %v8534_v51 = vld [vmem:[%s13179_s25 + $0x390] sm:$0xff] }
 0x45b   :  { %9175 = vmatprep.subr.mxu1 %v12044_v27 }
 0x45c   :  { %9176 = vmatpush3.msra.mxu1 %v12050_v28 }
 0x45d   :  { %2063 = vmatmul.mubr.f32.gmra.mxu1 %v8516_v55  ;;  %9177 = vmatprep.subr.mxu1 %v12056_v30  ;;  %v8537_v55 = vld [vmem:[%s13179_s25 + $0x3a8] sm:$0xff] }
 0x45e   :  { %9178 = vmatpush3.msra.mxu1 %v12063_v32  ;;  %2067 = vmatprep.mubr.f32.mxu1 %v8519_v61  ;;  %v8536_v61 = vld [vmem:[%s13179_s25 + $0x3a0] sm:$0xff] }
 0x45f   :  { %9179 = vmatprep.subr.mxu1 %v12069_v49 }
 0x460   :  { %9180 = vmatpush3.msra.mxu1 %v12075_v50 }
 0x461   :  { %2068 = vmatmul.mubr.f32.gmra.mxu1 %v8518_v46  ;;  %9181 = vmatprep.subr.mxu1 %v12081_v53  ;;  %v8539_v46 = vld [vmem:[%s13179_s25 + $0x3b8] sm:$0xff] }
 0x462   :  { %9182 = vmatpush3.msra.mxu1 %v12088_v54  ;;  %2072 = vmatprep.mubr.f32.mxu1 %v8521_v14  ;;  %v8538_v14 = vld [vmem:[%s13179_s25 + $0x3b0] sm:$0xff] }
 0x463   :  { %9183 = vmatprep.subr.mxu1 %v12094_v57 }
 0x464   :  { %9184 = vmatpush3.msra.mxu1 %v12103_v59 }
 0x465   :  { %2073 = vmatmul.mubr.f32.gmra.mxu1 %v8520_v18  ;;  %9185 = vmatprep.subr.mxu1 %v12109_v63  ;;  %v8541_v18 = vld [vmem:[%s13179_s25 + $0x3c8] sm:$0xff] }
 0x466   :  { %9186 = vmatpush3.msra.mxu1 %v12116_v38  ;;  %2077 = vmatprep.mubr.f32.mxu1 %v8523_v25  ;;  %v8540_v25 = vld [vmem:[%s13179_s25 + $0x3c0] sm:$0xff] }
 0x467   :  { %9187 = vmatprep.subr.mxu1 %v12122_v33 }
 0x468   :  { %9188 = vmatpush3.msra.mxu1 %v12128_v43 }
 0x469   :  { %2078 = vmatmul.mubr.f32.gmra.mxu1 %v8522_v26  ;;  %9189 = vmatprep.subr.mxu1 %v12134_v5  ;;  %v8543_v26 = vld [vmem:[%s13179_s25 + $0x3d8] sm:$0xff] }
 0x46a   :  { %9190 = vmatpush3.msra.mxu1 %v12140_v8  ;;  %2304 = vmatprep.mubr.f32.mxu1 %v8533_v29  ;;  %v8542_v29 = vld [vmem:[%s13179_s25 + $0x3d0] sm:$0xff] }
 0x46b   :  { %9191 = vmatprep.subr.mxu1 %v12149_v17 }
 0x46c   :  { %9192 = vmatpush3.msra.mxu1 %v12158_v21 }
 0x46d   :  { %2305 = vmatmul.mubr.f32.vlgmr.msra.gmra.mxu1 %v8532_v45  ;;  %10409 = vmatprep.subr.mxu1 %v11950_v23  ;;  %v8545_v45 = vld [vmem:[%s13179_s25 + $0x3e8] sm:$0xff] }
 0x46e   :  { %2309 = vmatprep.mubr.f32.mxu1 %v8535_v47  ;;  %10425 = vmatpush3.msra.mxu1 %v11963_v37  ;;  %v8544_v47 = vld [vmem:[%s13179_s25 + $0x3e0] sm:$0xff] }
 0x46f   :  { %10410 = vmatprep.subr.mxu1 %v11969_v40 }
 0x470   :  { %10426 = vmatpush3.msra.mxu1 %v11975_v42 }
 0x471   :  { %2310 = vmatmul.mubr.f32.gmra.mxu1 %v8534_v51  ;;  %10411 = vmatprep.subr.mxu1 %v11981_v35  ;;  %v8547_v51 = vld [vmem:[%s13179_s25 + $0x3f8] sm:$0xff] }
 0x472   :  { %2314 = vmatprep.mubr.f32.mxu1 %v8537_v55  ;;  %10427 = vmatpush3.msra.mxu1 %v11988_v2  ;;  %v8546_v55 = vld [vmem:[%s13179_s25 + $0x3f0] sm:$0xff] }
 0x473   :  { %10412 = vmatprep.subr.mxu1 %v11994_v11 }
 0x474   :  { %10428 = vmatpush3.msra.mxu1 %v12000_v12 }
 0x475   :  { %2315 = vmatmul.mubr.f32.gmra.mxu1 %v8536_v61  ;;  %10413 = vmatprep.subr.mxu1 %v12006_v15  ;;  %v2085_v61 = vld [vmem:[#allocation2 + $0x68] sm:$0xff] }
 0x476   :  { %2319 = vmatprep.mubr.f32.mxu1 %v8539_v46  ;;  %10429 = vmatpush3.msra.mxu1 %v12013_v16  ;;  %v2084_v46 = vld [vmem:[#allocation2 + $0x60] sm:$0xff] }
 0x477   :  { %10414 = vmatprep.subr.mxu1 %v12019_v19  ;;  %9715 = vmatprep.subr.mxu0 %v2085_v61 }
 0x478   :  { %10430 = vmatpush3.msra.mxu1 %v12025_v20  ;;  %9716 = vmatpush3.msra.mxu0 %v2085_v61 }
 0x479   :  { %2320 = vmatmul.mubr.f32.gmra.mxu1 %v8538_v14  ;;  %10415 = vmatprep.subr.mxu1 %v12031_v22  ;;  %v2347_v14 = vld [vmem:[#allocation2 + $0x78] sm:$0xff] }
 0x47a   :  { %2324 = vmatprep.mubr.f32.mxu1 %v8541_v18  ;;  %10431 = vmatpush3.msra.mxu1 %v12038_v24 }
 0x47b   :  { %10416 = vmatprep.subr.mxu1 %v12044_v27  ;;  %9717 = vmatprep.subr.mxu0 %v2084_v46 }
 0x47c   :  { %10432 = vmatpush3.msra.mxu1 %v12050_v28  ;;  %9718 = vmatpush3.msra.mxu0 %v2084_v46 }
 0x47d   :  { %2325 = vmatmul.mubr.f32.gmra.mxu1 %v8540_v25  ;;  %10417 = vmatprep.subr.mxu1 %v12056_v30 }
 0x47e   :  { %2329 = vmatprep.mubr.f32.mxu1 %v8543_v26  ;;  %10433 = vmatpush3.msra.mxu1 %v12063_v32 }
 0x47f   :  { %10418 = vmatprep.subr.mxu1 %v12069_v49  ;;  %9731 = vmatprep.subr.mxu0 %v2347_v14 }
 0x480   :  { %10434 = vmatpush3.msra.mxu1 %v12075_v50 }
 0x481   :  { %2330 = vmatmul.mubr.f32.gmra.mxu1 %v8542_v29  ;;  %10419 = vmatprep.subr.mxu1 %v12081_v53 }
 0x482   :  { %2334 = vmatprep.mubr.f32.mxu1 %v8545_v45  ;;  %10435 = vmatpush3.msra.mxu1 %v12088_v54 }
 0x483   :  { %10420 = vmatprep.subr.mxu1 %v12094_v57 }
 0x484   :  { %10436 = vmatpush3.msra.mxu1 %v12103_v59 }
 0x485   :  { %2335 = vmatmul.mubr.f32.gmra.mxu1 %v8544_v47  ;;  %10421 = vmatprep.subr.mxu1 %v12109_v63 }
 0x486   :  { %2339 = vmatprep.mubr.f32.mxu1 %v8547_v51  ;;  %10437 = vmatpush3.msra.mxu1 %v12116_v38 }
 0x487   :  { %10422 = vmatprep.subr.mxu1 %v12122_v33 }
 0x488   :  { %10438 = vmatpush3.msra.mxu1 %v12128_v43 }
 0x489   :  { %2340 = vmatmul.mubr.f32.gmra.mxu1 %v8546_v55  ;;  %10423 = vmatprep.subr.mxu1 %v12134_v5 }
 0x48a   :  { %10439 = vmatpush3.msra.mxu1 %v12140_v8  ;;  %2601 = vmatprep.mubr.f32.mxu1 %v8571_v39 }
 0x48b   :  { %10424 = vmatprep.subr.mxu1 %v12149_v17 }
 0x48c   :  { %10440 = vmatpush3.msra.mxu1 %v12158_v21 }
 0x4cd   :  { %v9689_v18 = vpop.f32.mrf.mxu1 }
 0x4ce   :  { %v1692_v25 = vadd.f32 %v9689_v18, %v11928_v0 }
 0x4cf   :  { %v12313_v26 = vpop.f32.mrf.mxu1 }
 0x4d0   :  { %13186 = vst [vmem:[#allocation51_spill] sm:$0xff] %v12313_v26 }
 0x4d5   :  { %v9692_v29 = vpop.f32.mrf.mxu1 }
 0x4d6   :  { %v1694_v45 = vadd.f32 %v9692_v29, %v11932_v3  ;;  %v8570_v3 = vld [vmem:[%s13179_s25 + $0x470] sm:$0xff] }
 0x4d7   :  { %v12316_v47 = vpop.f32.mrf.mxu1  ;;  %2602 = vmatmul.mubr.f32.vlgmr.msra.gmra.mxu1 %v8570_v3 }
 0x4d8   :  { %13187 = vst [vmem:[#allocation52_spill] sm:$0xff] %v12316_v47 }
 0x4dd   :  { %v9695_v51 = vpop.f32.mrf.mxu1 }
 0x4de   :  { %v1696_v55 = vadd.f32 %v9695_v51, %v11936_v6 }
 0x4df   :  { %v12319_v61 = vpop.f32.mrf.mxu1 }
 0x4e5   :  { %v9698_v4 = vpop.f32.mrf.mxu1 }
 0x4e6   :  { %v1698_v46 = vadd.f32 %v9698_v4, %v11940_v9 }
 0x4e7   :  { %v12325_v0 = vpop.f32.mrf.mxu1 }
 0x4ed   :  { %v9705_v18 = vpop.f32.mrf.mxu1 }
 0x4ee   :  { %v12330_v29 = vadd.f32 %v9705_v18, %v1692_v25 }
 0x4ef   :  { %v12332_v6 = vpop.f32.mrf.mxu1 }
 0x4f0   :  { %13188 = vst [vmem:[#allocation53_spill] sm:$0xff] %v12332_v6 }
 0x4f5   :  { %v9708_v51 = vpop.f32.mrf.mxu1 }
 0x4f6   :  { %v12334_v47 = vadd.f32 %v9708_v51, %v1694_v45 }
 0x4f7   :  { %v12336_v4 = vpop.f32.mrf.mxu1 }
 0x4f8   :  { %13189 = vst [vmem:[#allocation54_spill] sm:$0xff] %v12336_v4  ;;  %v2346_v4 = vld [vmem:[#allocation2 + $0x70] sm:$0xff] }
 0x4fd   :  { %v9711_v9 = vpop.f32.mrf.mxu1 }
 0x4fe   :  { %v12338_v52 = vadd.f32 %v9711_v9, %v1696_v55 }
 0x4ff   :  { %v12340_v26 = vpop.f32.mrf.mxu1 }
 0x505   :  { %v9714_v39 = vpop.f32.mrf.mxu1 }
 0x506   :  { %v12342_v13 = vadd.f32 %v9714_v39, %v1698_v46 }
 0x507   :  { %v12344_v1 = vpop.f32.mrf.mxu1 }
 0x50d   :  { %v9127_v3 = vpop.f32.mrf.mxu1 }
 0x50f   :  { %v9128_v25 = vpop.f32.mrf.mxu1 }
 0x510   :  { %v9129_v18 = vadd.f32 %v9128_v25, %v9127_v3 }
 0x511   :  { %v9130_v60 = vpop.f32.mrf.mxu1 }
 0x512   :  { %9719 = vmatprep.mubr.msk.f32.mxu0 %vm507_vm0, %v9129_v18 }
 0x513   :  { %v9131_v45 = vpop.f32.mrf.mxu1 }
 0x514   :  { %v9132_v51 = vadd.f32 %v9131_v45, %v9130_v60 }
 0x515   :  { %v9133_v6 = vpop.f32.mrf.mxu1 }
 0x516   :  { %9720 = vmatmul.mubr.msk.f32.vlgmr.msra.gmra.mxu0 %vm507_vm0, %v9132_v51 }
 0x517   :  { %v9134_v55 = vpop.f32.mrf.mxu1  ;;  %9732 = vmatpush3.msra.mxu0 %v2347_v14 }
 0x518   :  { %v9135_v9 = vadd.f32 %v9134_v55, %v9133_v6  ;;  %9733 = vmatprep.subr.mxu0 %v2346_v4 }
 0x519   :  { %v9136_v46 = vpop.f32.mrf.mxu1  ;;  %9734 = vmatpush3.msra.mxu0 %v2346_v4 }
 0x51a   :  { %9722 = vmatprep.mubr.msk.f32.mxu0 %vm507_vm0, %v9135_v9  ;;  %9227 = vmatprep.subr.mxu0 %v11950_v23 }
 0x51b   :  { %v9137_v39 = vpop.f32.mrf.mxu1 }
 0x51c   :  { %v9138_v3 = vadd.f32 %v9137_v39, %v9136_v46 }
 0x51d   :  { %v9139_v25 = vpop.f32.mrf.mxu1 }
 0x51e   :  { %9723 = vmatmul.mubr.msk.f32.gmra.mxu0 %vm507_vm0, %v9138_v3 }
 0x51f   :  { %v9140_v60 = vpop.f32.mrf.mxu1 }
 0x520   :  { %v9141_v18 = vadd.f32 %v9140_v60, %v9139_v25 }
 0x521   :  { %v9142_v45 = vpop.f32.mrf.mxu1 }
 0x522   :  { %9725 = vmatprep.mubr.msk.f32.mxu0 %vm507_vm0, %v9141_v18 }
 0x523   :  { %v9143_v51 = vpop.f32.mrf.mxu1 }
 0x524   :  { %v9144_v14 = vadd.f32 %v9143_v51, %v9142_v45 }
 0x525   :  { %v9145_v6 = vpop.f32.mrf.mxu1 }
 0x526   :  { %9726 = vmatmul.mubr.msk.f32.gmra.mxu0 %vm507_vm0, %v9144_v14 }
 0x527   :  { %v9146_v4 = vpop.f32.mrf.mxu1 }
 0x528   :  { %v9147_v55 = vadd.f32 %v9146_v4, %v9145_v6 }
 0x529   :  { %v9148_v9 = vpop.f32.mrf.mxu1 }
 0x52a   :  { %9728 = vmatprep.mubr.msk.f32.mxu0 %vm507_vm0, %v9147_v55 }
 0x52b   :  { %v9149_v23 = vpop.f32.mrf.mxu1 }
 0x52c   :  { %v9150_v46 = vadd.f32 %v9149_v23, %v9148_v9  ;;  %v647_v23 = vadd.f32 %v11902_v31, %v11712_v34 }
 0x52d   :  { %v9193_v39 = vpop.f32.mrf.mxu1 }
 0x52e   :  { %9729 = vmatmul.mubr.msk.f32.gmra.mxu0 %vm507_vm0, %v9150_v46 }
 0x52f   :  { %v9194_v3 = vpop.f32.mrf.mxu1 }
 0x530   :  { %v9195_v25 = vadd.f32 %v9194_v3, %v9193_v39  ;;  %v909_v39 = vadd.f32 %v11914_v56, %v647_v23 }
 0x531   :  { %v9196_v60 = vpop.f32.mrf.mxu1 }
 0x532   :  { %9735 = vmatprep.mubr.msk.f32.mxu0 %vm507_vm0, %v9195_v25  ;;  %v1171_v25 = vadd.f32 %v11924_v41, %v909_v39  ;;  %v643_v41 = vadd.f32 %v11902_v31, %v11704_v62 }
 0x533   :  { %v9197_v18 = vpop.f32.mrf.mxu1 }
 0x534   :  { %v9198_v45 = vadd.f32 %v9197_v18, %v9196_v60  ;;  %v1433_v60 = vadd.f32 %v11938_v7, %v1171_v25 }
 0x535   :  { %v9199_v51 = vpop.f32.mrf.mxu1 }
 0x536   :  { %9736 = vmatmul.mubr.msk.f32.vlgmr.msra.gmra.mxu0 %vm507_vm0, %v9198_v45  ;;  %v649_v45 = vadd.f32 %v11902_v31, %v11716_v36  ;;  %v905_v36 = vadd.f32 %v11906_v48, %v643_v41 }
 0x537   :  { %9228 = vmatpush3.msra.mxu0 %v11963_v37  ;;  %v9200_v14 = vpop.f32.mrf.mxu1 }
 0x538   :  { %v9201_v6 = vadd.f32 %v9200_v14, %v9199_v51  ;;  %9229 = vmatprep.subr.mxu0 %v11969_v40  ;;  %v1695_v51 = vadd.f32 %v12319_v61, %v1433_v60  ;;  %v911_v14 = vadd.f32 %v11918_v58, %v649_v45 }
 0x539   :  { %9230 = vmatpush3.msra.mxu0 %v11975_v42  ;;  %v9202_v4 = vpop.f32.mrf.mxu1 }
 0x53a   :  { %9231 = vmatprep.subr.mxu0 %v11981_v35  ;;  %9738 = vmatprep.mubr.msk.f32.mxu0 %vm507_vm0, %v9201_v6  ;;  %v1957_v34 = vadd.f32 %v12340_v26, %v1695_v51 }
 0x53b   :  { %9232 = vmatpush3.msra.mxu0 %v11988_v2  ;;  %v9203_v55 = vpop.f32.mrf.mxu1 }
 0x53c   :  { %v9204_v9 = vadd.f32 %v9203_v55, %v9202_v4  ;;  %9233 = vmatprep.subr.mxu0 %v11994_v11 }
 0x53d   :  { %9234 = vmatpush3.msra.mxu0 %v12000_v12  ;;  %v9205_v37 = vpop.f32.mrf.mxu1 }
 0x53e   :  { %9235 = vmatprep.subr.mxu0 %v12006_v15  ;;  %9739 = vmatmul.mubr.msk.f32.gmra.mxu0 %vm507_vm0, %v9204_v9  ;;  %v13190_v9 = vld [vmem:[#allocation47_spill] sm:$0xff] }
 0x53f   :  { %9236 = vmatpush3.msra.mxu0 %v12013_v16  ;;  %v9206_v40 = vpop.f32.mrf.mxu1  ;;  %v1167_v58 = vadd.f32 %v13190_v9, %v905_v36 }
 0x540   :  { %v9207_v42 = vadd.f32 %v9206_v40, %v9205_v37  ;;  %9237 = vmatprep.subr.mxu0 %v12019_v19  ;;  %v13191_v40 = vld [vmem:[#allocation49_spill] sm:$0xff] }
 0x541   :  { %9238 = vmatpush3.msra.mxu0 %v12025_v20  ;;  %v9208_v35 = vpop.f32.mrf.mxu1 }
 0x542   :  { %9239 = vmatprep.subr.mxu0 %v12031_v22  ;;  %9741 = vmatprep.mubr.msk.f32.mxu0 %vm507_vm0, %v9207_v42 }
 0x543   :  { %9240 = vmatpush3.msra.mxu0 %v12038_v24  ;;  %v9209_v2 = vpop.f32.mrf.mxu1  ;;  %v8557_v24 = vld [vmem:[%s13179_s25 + $0x408] sm:$0xff] }
 0x544   :  { %v9210_v11 = vadd.f32 %v9209_v2, %v9208_v35  ;;  %9241 = vmatprep.subr.mxu0 %v12044_v27  ;;  %v8556_v27 = vld [vmem:[%s13179_s25 + $0x400] sm:$0xff]  ;;  %v13193_v2 = vld [vmem:[#allocation51_spill] sm:$0xff] }
 0x545   :  { %9242 = vmatpush3.msra.mxu0 %v12050_v28  ;;  %v9211_v12 = vpop.f32.mrf.mxu1  ;;  %v8559_v28 = vld [vmem:[%s13179_s25 + $0x418] sm:$0xff]  ;;  %v13192_v35 = vld [vmem:[#allocation45_spill] sm:$0xff] }
 0x546   :  { %9243 = vmatprep.subr.mxu0 %v12056_v30  ;;  %9742 = vmatmul.mubr.msk.f32.gmra.mxu0 %vm507_vm0, %v9210_v11  ;;  %v8558_v30 = vld [vmem:[%s13179_s25 + $0x410] sm:$0xff]  ;;  %v645_v62 = vadd.f32 %v11902_v31, %v13192_v35 }
 0x547   :  { %9244 = vmatpush3.msra.mxu0 %v12063_v32  ;;  %v9212_v15 = vpop.f32.mrf.mxu1  ;;  %v8561_v32 = vld [vmem:[%s13179_s25 + $0x428] sm:$0xff] }
 0x548   :  { %v9213_v16 = vadd.f32 %v9212_v15, %v9211_v12  ;;  %9245 = vmatprep.subr.mxu0 %v12069_v49  ;;  %v8560_v49 = vld [vmem:[%s13179_s25 + $0x420] sm:$0xff]  ;;  %v13194_v11 = vld [vmem:[#allocation46_spill] sm:$0xff] }
 0x549   :  { %9246 = vmatpush3.msra.mxu0 %v12075_v50  ;;  %v9214_v19 = vpop.f32.mrf.mxu1  ;;  %v8563_v50 = vld [vmem:[%s13179_s25 + $0x438] sm:$0xff]  ;;  %v907_v48 = vadd.f32 %v13194_v11, %v645_v62  ;;  %v13195_v12 = vld [vmem:[#allocation53_spill] sm:$0xff]  ;;  %v13199_v31 = vld [vmem:[#allocation54_spill] sm:$0xff] }
 0x54a   :  { %9247 = vmatprep.subr.mxu0 %v12081_v53  ;;  %9744 = vmatprep.mubr.msk.f32.mxu0 %vm507_vm0, %v9213_v16  ;;  %v8562_v53 = vld [vmem:[%s13179_s25 + $0x430] sm:$0xff]  ;;  %v13196_v16 = vld [vmem:[#allocation48_spill] sm:$0xff] }
 0x54b   :  { %9248 = vmatpush3.msra.mxu0 %v12088_v54  ;;  %v9215_v20 = vpop.f32.mrf.mxu1  ;;  %v8565_v54 = vld [vmem:[%s13179_s25 + $0x448] sm:$0xff] }
 0x54c   :  { %v9216_v22 = vadd.f32 %v9215_v20, %v9214_v19  ;;  %9249 = vmatprep.subr.mxu0 %v12094_v57  ;;  %v8564_v57 = vld [vmem:[%s13179_s25 + $0x440] sm:$0xff]  ;;  %v1169_v19 = vadd.f32 %v13196_v16, %v907_v48 }
 0x54d   :  { %9250 = vmatpush3.msra.mxu0 %v12103_v59  ;;  %v8567_v59 = vld [vmem:[%s13179_s25 + $0x458] sm:$0xff] }
 0x54e   :  { %9251 = vmatprep.subr.mxu0 %v12109_v63  ;;  %9745 = vmatmul.mubr.msk.f32.gmra.mxu0 %vm507_vm0, %v9216_v22  ;;  %v8566_v63 = vld [vmem:[%s13179_s25 + $0x450] sm:$0xff] }
 0x54f   :  { %9252 = vmatpush3.msra.mxu0 %v12116_v38  ;;  %2566 = vmatprep.mubr.f32.mxu0 %v8557_v24  ;;  %v8569_v38 = vld [vmem:[%s13179_s25 + $0x468] sm:$0xff] }
 0x550   :  { %9253 = vmatprep.subr.mxu0 %v12122_v33  ;;  %v8568_v33 = vld [vmem:[%s13179_s25 + $0x460] sm:$0xff]  ;;  %v13197_v22 = vld [vmem:[#allocation50_spill] sm:$0xff] }
 0x551   :  { %9254 = vmatpush3.msra.mxu0 %v12128_v43  ;;  %v2609_v43 = vld [vmem:[#allocation2 + $0x88] sm:$0xff]  ;;  %v1431_v24 = vadd.f32 %v13197_v22, %v1169_v19 }
 0x552   :  { %9255 = vmatprep.subr.mxu0 %v12134_v5  ;;  %9747 = vmatprep.subr.mxu1 %v2609_v43  ;;  %v2608_v5 = vld [vmem:[#allocation2 + $0x80] sm:$0xff] }
 0x553   :  { %9256 = vmatpush3.msra.mxu0 %v12140_v8  ;;  %9748 = vmatpush3.msra.mxu1 %v2609_v43 }
 0x554   :  { %9257 = vmatprep.subr.mxu0 %v12149_v17  ;;  %9749 = vmatprep.subr.mxu1 %v2608_v5 }
 0x555   :  { %9258 = vmatpush3.msra.mxu0 %v12158_v21  ;;  %9750 = vmatpush3.msra.mxu1 %v2608_v5 }
 0x556   :  { %2567 = vmatmul.mubr.f32.vlgmr.msra.gmra.mxu0 %v8556_v27 }
 0x557   :  { %2571 = vmatprep.mubr.f32.mxu0 %v8559_v28  ;;  %v13198_v28 = vld [vmem:[#allocation52_spill] sm:$0xff] }
 0x55a   :  { %2572 = vmatmul.mubr.f32.gmra.mxu0 %v8558_v30  ;;  %v1693_v30 = vadd.f32 %v13198_v28, %v1431_v24 }
 0x55b   :  { %2576 = vmatprep.mubr.f32.mxu0 %v8561_v32 }
 0x55c   :  { %v1955_v32 = vadd.f32 %v13199_v31, %v1693_v30 }
 0x55e   :  { %2577 = vmatmul.mubr.f32.gmra.mxu0 %v8560_v49 }
 0x55f   :  { %2581 = vmatprep.mubr.f32.mxu0 %v8563_v50 }
 0x562   :  { %2582 = vmatmul.mubr.f32.gmra.mxu0 %v8562_v53 }
 0x563   :  { %2586 = vmatprep.mubr.f32.mxu0 %v8565_v54 }
 0x566   :  { %2587 = vmatmul.mubr.f32.gmra.mxu0 %v8564_v57 }
 0x567   :  { %2591 = vmatprep.mubr.f32.mxu0 %v8567_v59 }
 0x56a   :  { %2592 = vmatmul.mubr.f32.gmra.mxu0 %v8566_v63 }
 0x56b   :  { %2596 = vmatprep.mubr.f32.mxu0 %v8569_v38 }
 0x56e   :  { %2597 = vmatmul.mubr.f32.gmra.mxu0 %v8568_v33 }
 0x5d6   :  { %v9721_v8 = vpop.f32.mrf.mxu0 }
 0x5d7   :  { %v2216_v17 = vadd.f32 %v9721_v8, %v12330_v29 }
 0x5d8   :  { %v2176_v21 = vpop.f32.mrf.mxu0 }
 0x5de   :  { %v9724_v46 = vpop.f32.mrf.mxu0 }
 0x5df   :  { %v2218_v3 = vadd.f32 %v9724_v46, %v12334_v47  ;;  %v1173_v47 = vadd.f32 %v11926_v44, %v911_v14  ;;  %v1429_v44 = vadd.f32 %v13191_v40, %v1167_v58  ;;  %v2851_v40 = vld [vmem:[#allocation9] sm:$0x3] }
 0x5e0   :  { %v2186_v18 = vpop.f32.mrf.mxu0 }
 0x5e1   :  { %v1435_v7 = vadd.f32 %v11942_v10, %v1173_v47  ;;  %v1691_v10 = vadd.f32 %v13193_v2, %v1429_v44  ;;  %v2217_v50 = vadd.f32 %v2186_v18, %v1955_v32 }
 0x5e3   :  { %v1697_v61 = vadd.f32 %v12325_v0, %v1435_v7  ;;  %v1953_v0 = vadd.f32 %v13195_v12, %v1691_v10 }
 0x5e5   :  { %v1959_v26 = vadd.f32 %v12344_v1, %v1697_v61  ;;  %v2215_v20 = vadd.f32 %v2176_v21, %v1953_v0 }
 0x5e6   :  { %v9727_v29 = vpop.f32.mrf.mxu0 }
 0x5e7   :  { %v2220_v6 = vadd.f32 %v9727_v29, %v12338_v52 }
 0x5e8   :  { %v2196_v56 = vpop.f32.mrf.mxu0 }
 0x5e9   :  { %v2219_v4 = vadd.f32 %v2196_v56, %v1957_v34 }
 0x5ee   :  { %v9730_v55 = vpop.f32.mrf.mxu0 }
 0x5ef   :  { %v2222_v52 = vadd.f32 %v9730_v55, %v12342_v13 }
 0x5f0   :  { %v2206_v37 = vpop.f32.mrf.mxu0 }
 0x5f1   :  { %v2221_v42 = vadd.f32 %v2206_v37, %v1959_v26  ;;  %v10974_v26 = vmov 0.0   ;;  %v12498_v37 = vld [vmem:[#allocation7] sm:$0xff] }
 0x5f2   :  { %9763 = vmatprep.subr.mxu1 %v10974_v26  ;;  %9782 = vmatprep.subr.mxu0 %v10974_v26 }
 0x5f3   :  { %9784 = vmatprep.mubr.msk.f32.mxu0 %vm10975_vm1, %v10974_v26  ;;  %9783 = vmatpush3.msk.msra.mxu0 %vm2856_vm2, %v2851_v40 }
 0x5f6   :  { %v9737_v15 = vpop.f32.mrf.mxu0 }
 0x5f7   :  { %v12465_v1 = vadd.f32 %v9737_v15, %v2216_v17 }
 0x5f8   :  { %v2438_v13 = vpop.f32.mrf.mxu0 }
 0x5f9   :  { %v12468_v27 = vadd.f32 %v2438_v13, %v2215_v20 }
 0x5fe   :  { %v9740_v49 = vpop.f32.mrf.mxu0 }
 0x5ff   :  { %v12472_v53 = vadd.f32 %v9740_v49, %v2218_v3 }
 0x600   :  { %v2448_v54 = vpop.f32.mrf.mxu0 }
 0x601   :  { %v12474_v57 = vadd.f32 %v2448_v54, %v2217_v50 }
 0x606   :  { %v9743_v59 = vpop.f32.mrf.mxu0 }
 0x607   :  { %v12476_v63 = vadd.f32 %v9743_v59, %v2220_v6 }
 0x608   :  { %v2458_v38 = vpop.f32.mrf.mxu0 }
 0x609   :  { %v12478_v33 = vadd.f32 %v2458_v38, %v2219_v4  ;;  %v9280_v4 = vpop.f32.mrf.mxu1 }
 0x60b   :  { %v9281_v61 = vpop.f32.mrf.mxu1 }
 0x60c   :  { %v9282_v58 = vadd.f32 %v9281_v61, %v9280_v4 }
 0x60e   :  { %v9746_v43 = vpop.f32.mrf.mxu0 }
 0x60f   :  { %v12480_v5 = vadd.f32 %v9746_v43, %v2222_v52  ;;  %v12493_v52 = vld [vmem:[#allocation7 + $0x8] sm:$0xff] }
 0x610   :  { %v2468_v8 = vpop.f32.mrf.mxu0 }
 0x611   :  { %v12482_v17 = vadd.f32 %v2468_v8, %v2221_v42 }
 0x616   :  { %v9259_v21 = vpop.f32.mrf.mxu0 }
 0x618   :  { %v9260_v23 = vpop.f32.mrf.mxu0 }
 0x619   :  { %v9261_v46 = vadd.f32 %v9260_v23, %v9259_v21 }
 0x61a   :  { %v9262_v39 = vpop.f32.mrf.mxu0 }
 0x61b   :  { %9751 = vmatprep.mubr.msk.f32.mxu1 %vm507_vm0, %v9261_v46 }
 0x61c   :  { %v9263_v3 = vpop.f32.mrf.mxu0 }
 0x61d   :  { %v9264_v25 = vadd.f32 %v9263_v3, %v9262_v39 }
 0x61e   :  { %v9265_v60 = vpop.f32.mrf.mxu0 }
 0x61f   :  { %9752 = vmatmul.mubr.msk.f32.vlgmr.msra.gmra.mxu1 %vm507_vm0, %v9264_v25 }
 0x620   :  { %v9266_v18 = vpop.f32.mrf.mxu0  ;;  %9764 = vmatpush3.msra.mxu1 %v12493_v52 }
 0x621   :  { %v9267_v45 = vadd.f32 %v9266_v18, %v9265_v60  ;;  %9765 = vmatprep.subr.mxu1 %v10974_v26 }
 0x622   :  { %v9268_v51 = vpop.f32.mrf.mxu0  ;;  %9766 = vmatpush3.msra.mxu1 %v12498_v37 }
 0x623   :  { %9754 = vmatprep.mubr.msk.f32.mxu1 %vm507_vm0, %v9267_v45  ;;  %9770 = vmatprep.subr.mxu1 %v10974_v26 }
 0x624   :  { %v9269_v29 = vpop.f32.mrf.mxu0 }
 0x625   :  { %v9270_v14 = vadd.f32 %v9269_v29, %v9268_v51 }
 0x626   :  { %v9271_v34 = vpop.f32.mrf.mxu0 }
 0x627   :  { %9755 = vmatmul.mubr.msk.f32.gmra.mxu1 %vm507_vm0, %v9270_v14  ;;  %v2930_v14 = vlaneseq }
 0x628   :  { %v9272_v6 = vpop.f32.mrf.mxu0 }
 0x629   :  { %v9273_v56 = vadd.f32 %v9272_v6, %v9271_v34  ;;  %v2931_v34 = vshrl.u32 %v2930_v14, 7  ;;  %v3134_v14 = vld [vmem:[#allocation6 + $0x20] sm:$0xff] }
 0x62a   :  { %v9274_v47 = vpop.f32.mrf.mxu0 }
 0x62b   :  { %9757 = vmatprep.mubr.msk.f32.mxu1 %vm507_vm0, %v9273_v56  ;;  %v12534_v6 = vsub.s32 0, %v2931_v34  ;;  %v3152_v34 = vld [vmem:[%s13200_s27 + $0x30] sm:$0xff] }
 0x62c   :  { %v9275_v41 = vpop.f32.mrf.mxu0 }
 0x62d   :  { %v9276_v7 = vadd.f32 %v9275_v41, %v9274_v47 }
 0x62e   :  { %v9277_v36 = vpop.f32.mrf.mxu0 }
 0x62f   :  { %9758 = vmatmul.mubr.msk.f32.gmra.mxu1 %vm507_vm0, %v9276_v7 }
 0x630   :  { %v9278_v55 = vpop.f32.mrf.mxu0 }
 0x631   :  { %v9279_v9 = vadd.f32 %v9278_v55, %v9277_v36 }
 0x633   :  { %9760 = vmatprep.mubr.msk.f32.mxu1 %vm507_vm0, %v9279_v9 }
 0x634   :  { %9761 = vmatmul.mubr.msk.f32.gmra.mxu1 %vm507_vm0, %v9282_v58 }
 0x635   :  { %9767 = vmatprep.mubr.msk.f32.mxu1 %vm10975_vm1, %v10974_v26 }
 0x6df   :  { %v9753_v44 = vpop.f32.mrf.mxu1 }
 0x6e0   :  { %v2740_v62 = vadd.f32 %v9753_v44, %v12465_v1 }
 0x6e1   :  { %v2700_v42 = vpop.f32.mrf.mxu1 }
 0x6e2   :  { %v2739_v35 = vadd.f32 %v2700_v42, %v12468_v27  ;;  %v2748_v48 = vmax.f32 %v2740_v62, 0.0 }
 0x6e4   :  { %v2747_v10 = vmax.f32 %v2739_v35, 0.0  ;;  %v2756_v19 = vsel %vm507_vm0, %v2748_v48, 0.0 }
 0x6e6   :  { %v2755_v0 = vsel %vm507_vm0, %v2747_v10, 0.0 }
 0x6e7   :  { %v9756_v2 = vpop.f32.mrf.mxu1  ;;  %v2757_v13 = vadd.f32 %v2756_v19, %v2755_v0 }
 0x6e8   :  { %v2742_v15 = vadd.f32 %v9756_v2, %v12472_v53 }
 0x6e9   :  { %v2710_v11 = vpop.f32.mrf.mxu1 }
 0x6ea   :  { %v2741_v12 = vadd.f32 %v2710_v11, %v12474_v57  ;;  %v2750_v24 = vmax.f32 %v2742_v15, 0.0 }
 0x6ec   :  { %v2749_v16 = vmax.f32 %v2741_v12, 0.0  ;;  %v2760_v31 = vsel %vm507_vm0, %v2750_v24, 0.0 }
 0x6ee   :  { %v2758_v20 = vsel %vm507_vm0, %v2749_v16, 0.0 }
 0x6ef   :  { %v9759_v22 = vpop.f32.mrf.mxu1  ;;  %v2759_v27 = vadd.f32 %v2758_v20, %v2757_v13 }
 0x6f0   :  { %v2744_v1 = vadd.f32 %v9759_v22, %v12476_v63 }
 0x6f1   :  { %v2720_v28 = vpop.f32.mrf.mxu1  ;;  %v2761_v53 = vadd.f32 %v2760_v31, %v2759_v27 }
 0x6f2   :  { %v2743_v30 = vadd.f32 %v2720_v28, %v12478_v33  ;;  %v2752_v32 = vmax.f32 %v2744_v1, 0.0 }
 0x6f4   :  { %v2751_v49 = vmax.f32 %v2743_v30, 0.0  ;;  %v9762_v50 = vpop.f32.mrf.mxu1  ;;  %v2764_v63 = vsel %vm507_vm0, %v2752_v32, 0.0 }
 0x6f5   :  { %v2746_v54 = vadd.f32 %v9762_v50, %v12480_v5 }
 0x6f6   :  { %v2762_v57 = vsel %vm507_vm0, %v2751_v49, 0.0  ;;  %v2730_v59 = vpop.f32.mrf.mxu1 }
 0x6f7   :  { %v2763_v38 = vadd.f32 %v2762_v57, %v2761_v53  ;;  %v2745_v43 = vadd.f32 %v2730_v59, %v12482_v17  ;;  %v2754_v8 = vmax.f32 %v2746_v54, 0.0 }
 0x6f9   :  { %v2753_v21 = vmax.f32 %v2745_v43, 0.0  ;;  %v2765_v23 = vadd.f32 %v2764_v63, %v2763_v38  ;;  %v2768_v39 = vsel %vm507_vm0, %v2754_v8, 0.0  ;;  %v3248_v38 = vld [vmem:[#allocation12 + $0x8] sm:$0xff]  ;;  %v3247_v43 = vld [vmem:[#allocation12] sm:$0xff]  ;;  %v3163_v63 = vld [vmem:[#allocation10] sm:$0xff] }
 0x6fa   :  { %9806 = vmatprep.subr.mxu0 %v3248_v38 }
 0x6fb   :  { %v2766_v33 = vsel %vm507_vm0, %v2753_v21, 0.0 }
 0x6fc   :  { %v2767_v46 = vadd.f32 %v2766_v33, %v2765_v23 }
 0x6fe   :  { %v2769_v3 = vadd.f32 %v2768_v39, %v2767_v46  ;;  %v3136_v39 = vld [vmem:[#allocation6 + $0x30] sm:$0xff] }
 0x700   :  { %v2770_v25 = vrot.slane %v2769_v3, 4 }
 0x702   :  { %v2771_v60 = vadd.f32 %v2770_v25, %v2769_v3  ;;  %v3137_v3 = vld [vmem:[#allocation6 + $0x38] sm:$0xff] }
 0x704   :  { %v2772_v5 = vrot.slane %v2771_v60, 2 }
 0x706   :  { %v2773_v18 = vadd.f32 %v2772_v5, %v2771_v60 }
 0x708   :  { %v2774_v45 = vrot.slane %v2773_v18, 1 }
 0x70a   :  { %v2775_v51 = vadd.f32 %v2774_v45, %v2773_v18  ;;  %v3135_v18 = vld [vmem:[#allocation6 + $0x28] sm:$0xff] }
 0x70b   :  { %v3153_v45 = vld [vmem:[%s13200_s27 + $0x38] sm:$0xff] }
 0x70c   :  { %9768 = vmatmul.mubr.msk.f32.vlgmr.msra.gmra.mxu1 %vm507_vm0, %v2775_v51 }
 0x70d   :  { %9771 = vmatpush3.msk.msra.mxu1 %vm2856_vm2, %v2851_v40  ;;  %9772 = vmatprep.mubr.msk.f32.mxu1 %vm10975_vm1, %v10974_v26 }
 0x70e   :  { %9775 = vmatprep.subr.mxu1 %v10974_v26 }
 0x7cc   :  { %v2847_v17 = vpop.f32.mrf.mxu1 }
 0x7cd   :  { %9773 = vmatmul.mubr.msk.f32.vlgmr.msra.gmra.mxu1 %vm2852_vm3, %v2847_v17 }
 0x7ce   :  { %v9769_v29 = vpop.f32.mrf.mxu1  ;;  %9776 = vmatpush3.msra.mxu1 %v12493_v52  ;;  %9779 = vmatprep.mubr.msk.f32.mxu1 %vm10975_vm1, %v10974_v26 }
 0x7cf   :  { %9777 = vmatprep.subr.mxu1 %v10974_v26 }
 0x7d0   :  { %9778 = vmatpush3.msra.mxu1 %v12498_v37 }
 0x88d   :  { %v2926_v56 = vpop.f32.mrf.mxu1 }
 0x88e   :  { %v2933_v47 = vrot.slane %v2926_v56, %v12534_v6 }
 0x88f   :  { %v9774_v4 = vpop.f32.mrf.mxu1 }
 0x890   :  { %v12537_v41 = vsub.f32 %v2747_v10, %v2933_v47  ;;  %v12539_v7 = vsub.f32 %v2748_v48, %v2933_v47  ;;  %v12541_v36 = vsub.f32 %v2749_v16, %v2933_v47  ;;  %v12543_v61 = vsub.f32 %v2750_v24, %v2933_v47 }
 0x891   :  { %v2938_v55 = vsub.f32 %v2751_v49, %v2933_v47  ;;  %v2939_v37 = vsub.f32 %v2752_v32, %v2933_v47  ;;  %v2940_v62 = vsub.f32 %v2753_v21, %v2933_v47  ;;  %v2941_v48 = vsub.f32 %v2754_v8, %v2933_v47 }
 0x892   :  { %v2942_v9 = vmul.f32 %v12537_v41, %v12537_v41  ;;  %v2943_v58 = vmul.f32 %v12539_v7, %v12539_v7  ;;  %v2944_v52 = vmul.f32 %v12541_v36, %v12541_v36  ;;  %v2945_v40 = vmul.f32 %v12543_v61, %v12543_v61 }
 0x893   :  { %v2946_v2 = vmul.f32 %v2938_v55, %v2938_v55  ;;  %v2947_v12 = vmul.f32 %v2939_v37, %v2939_v37  ;;  %v2948_v16 = vmul.f32 %v2940_v62, %v2940_v62  ;;  %v2949_v13 = vmul.f32 %v2941_v48, %v2941_v48 }
 0x894   :  { %v2950_v44 = vsel %vm507_vm0, %v2942_v9, 0.0  ;;  %v2951_v42 = vsel %vm507_vm0, %v2943_v58, 0.0  ;;  %v2953_v10 = vsel %vm507_vm0, %v2944_v52, 0.0  ;;  %v2955_v0 = vsel %vm507_vm0, %v2945_v40, 0.0  ;;  %v3133_v9 = vld [vmem:[#allocation6 + $0x18] sm:$0xff]  ;;  %v3132_v40 = vld [vmem:[#allocation6 + $0x10] sm:$0xff] }
 0x895   :  { %v2952_v35 = vadd.f32 %v2951_v42, %v2950_v44  ;;  %v2957_v19 = vsel %vm507_vm0, %v2946_v2, 0.0  ;;  %v2959_v22 = vsel %vm507_vm0, %v2947_v12, 0.0  ;;  %v2961_v1 = vsel %vm507_vm0, %v2948_v16, 0.0  ;;  %v3151_v58 = vld [vmem:[%s13200_s27 + $0x28] sm:$0xff] }
 0x896   :  { %v2963_v28 = vsel %vm507_vm0, %v2949_v13, 0.0 }
 0x897   :  { %v2954_v11 = vadd.f32 %v2953_v10, %v2952_v35 }
 0x899   :  { %v2956_v15 = vadd.f32 %v2955_v0, %v2954_v11 }
 0x89b   :  { %v2958_v20 = vadd.f32 %v2957_v19, %v2956_v15  ;;  %v3146_v19 = vld [vmem:[%s13200_s27] sm:$0xff] }
 0x89d   :  { %v2960_v24 = vadd.f32 %v2959_v22, %v2958_v20  ;;  %v3164_v22 = vld [vmem:[#allocation10 + $0x8] sm:$0xff] }
 0x89f   :  { %v2962_v27 = vadd.f32 %v2961_v1, %v2960_v24  ;;  %v3424_v24 = vld [vmem:[#allocation12 + $0x18] sm:$0xff]  ;;  %v3423_v1 = vld [vmem:[#allocation12 + $0x10] sm:$0xff] }
 0x8a1   :  { %v2964_v30 = vadd.f32 %v2963_v28, %v2962_v27 }
 0x8a3   :  { %v2965_v31 = vrot.slane %v2964_v30, 4 }
 0x8a5   :  { %v2966_v32 = vadd.f32 %v2965_v31, %v2964_v30  ;;  %v3339_v30 = vld [vmem:[#allocation10 + $0x10] sm:$0xff]  ;;  %v3340_v31 = vld [vmem:[#allocation10 + $0x18] sm:$0xff] }
 0x8a7   :  { %v2967_v49 = vrot.slane %v2966_v32, 2 }
 0x8a9   :  { %v2968_v50 = vadd.f32 %v2967_v49, %v2966_v32  ;;  %v3594_v32 = vld [vmem:[#allocation12 + $0x28] sm:$0xff]  ;;  %v3593_v49 = vld [vmem:[#allocation12 + $0x20] sm:$0xff] }
 0x8ab   :  { %v2969_v53 = vrot.slane %v2968_v50, 1 }
 0x8ad   :  { %v2970_v54 = vadd.f32 %v2969_v53, %v2968_v50 }
 0x8af   :  { %9780 = vmatmul.mubr.msk.f32.vlgmr.msra.gmra.mxu1 %vm507_vm0, %v2970_v54 }
 0x8b0   :  { %9803 = vmatprep.mubr.msk.f32.mxu1 %vm3165_vm4, %v3163_v63  ;;  %v3763_v63 = vld [vmem:[#allocation12 + $0x30] sm:$0xff] }
 0x96f   :  { %v3040_v57 = vpop.f32.mrf.mxu1 }
 0x970   :  { %9785 = vmatmul.mubr.msk.f32.vlgmr.msra.gmra.mxu0 %vm2852_vm3, %v3040_v57 }
 0x971   :  { %v9781_v59 = vpop.f32.mrf.mxu1  ;;  %9807 = vmatpush3.msra.mxu0 %v3248_v38  ;;  %v3510_v38 = vld [vmem:[#allocation10 + $0x28] sm:$0xff] }
 0x972   :  { %9808 = vmatprep.subr.mxu0 %v3247_v43  ;;  %v3509_v59 = vld [vmem:[#allocation10 + $0x20] sm:$0xff] }
 0x973   :  { %9809 = vmatpush3.msra.mxu0 %v3247_v43  ;;  %v3764_v43 = vld [vmem:[#allocation12 + $0x38] sm:$0xff] }
 0xa30   :  { %v3113_v8 = vpop.f32.mrf.mxu0 }
 0xa31   :  { %v3114_v21 = vadd.f32 1e-05, %v3113_v8  ;;  %v8590_v8 = vld [vmem:[#allocation13] ss:$0 sm:$0xff] }
 0xa32   :  { %v9786_v23 = vpop.f32.mrf.mxu0 }
 0xa33   :  { %10467 = vrsqrt.f32 %v3114_v21 }
 0xa40   :  { %v10468_v33 = vpop.eup %10467 }
 0xa41   :  { %v3121_v46 = vrot.slane %v10468_v33, %v12534_v6 }
 0xa43   :  { %v3127_v25 = vmul.f32 %v3121_v46, %v2939_v37  ;;  %v3128_v60 = vmul.f32 %v3121_v46, %v2940_v62  ;;  %v3129_v5 = vmul.f32 %v3121_v46, %v2941_v48  ;;  %v3126_v51 = vmul.f32 %v3121_v46, %v2938_v55  ;;  %v3149_v62 = vld [vmem:[%s13200_s27 + $0x18] sm:$0xff]  ;;  %v3148_v48 = vld [vmem:[%s13200_s27 + $0x10] sm:$0xff] }
 0xa44   :  { %v3125_v56 = vmul.f32 %v3121_v46, %v12543_v61  ;;  %v3124_v52 = vmul.f32 %v3121_v46, %v12541_v36  ;;  %v3150_v61 = vld [vmem:[%s13200_s27 + $0x20] sm:$0xff]  ;;  %v3123_v44 = vmul.f32 %v3121_v46, %v12539_v7  ;;  %v3122_v2 = vmul.f32 %v3121_v46, %v12537_v41  ;;  %v3130_v7 = vld [vmem:[#allocation6] sm:$0xff]  ;;  %v3147_v41 = vld [vmem:[%s13200_s27 + $0x8] sm:$0xff] }
 0xa45   :  { %v3144_v17 = vmul.f32 %v3136_v39, %v3128_v60  ;;  %v3145_v29 = vmul.f32 %v3137_v3, %v3129_v5  ;;  %v3143_v47 = vmul.f32 %v3135_v18, %v3127_v25  ;;  %v3142_v55 = vmul.f32 %v3134_v14, %v3126_v51  ;;  %v3131_v36 = vld [vmem:[#allocation6 + $0x8] sm:$0xff] }
 0xa46   :  { %v3141_v42 = vmul.f32 %v3133_v9, %v3125_v56  ;;  %v3140_v10 = vmul.f32 %v3132_v40, %v3124_v52  ;;  %v3139_v12 = vmul.f32 %v3131_v36, %v3123_v44  ;;  %v3138_v15 = vmul.f32 %v3130_v7, %v3122_v2  ;;  %v3679_v5 = vld [vmem:[#allocation10 + $0x30] sm:$0xff]  ;;  %v3680_v18 = vld [vmem:[#allocation10 + $0x38] sm:$0xff]  ;;  %v3849_v9 = vld [vmem:[#allocation10 + $0x40] sm:$0xff] }
 0xa47   :  { %v12572_v4 = vadd.f32 %v3153_v45, %v3145_v29  ;;  %v12578_v37 = vadd.f32 %v3152_v34, %v3144_v17  ;;  %v12587_v35 = vadd.f32 %v3151_v58, %v3143_v47  ;;  %v12595_v11 = vadd.f32 %v3150_v61, %v3142_v55  ;;  %v3934_v45 = vld [vmem:[#allocation12 + $0x48] sm:$0xff]  ;;  %v3933_v51 = vld [vmem:[#allocation12 + $0x40] sm:$0xff]  ;;  %v3850_v58 = vld [vmem:[#allocation10 + $0x48] sm:$0xff] }
 0xa48   :  { %v12602_v0 = vadd.f32 %v3149_v62, %v3141_v42  ;;  %v12609_v16 = vadd.f32 %v3148_v48, %v3140_v10  ;;  %v12616_v20 = vadd.f32 %v3147_v41, %v3139_v12  ;;  %v12620_v13 = vadd.f32 %v3146_v19, %v3138_v15  ;;  %v4104_v52 = vld [vmem:[#allocation12 + $0x58] sm:$0xff]  ;;  %v4103_v55 = vld [vmem:[#allocation12 + $0x50] sm:$0xff]  ;;  %v4019_v2 = vld [vmem:[#allocation10 + $0x50] sm:$0xff] }
 0xa49   :  { %9787 = vmatprep.subr.mxu1 %v12572_v4  ;;  %9813 = vmatprep.subr.mxu0 %v12572_v4  ;;  %v4020_v10 = vld [vmem:[#allocation10 + $0x58] sm:$0xff]  ;;  %v4273_v48 = vld [vmem:[#allocation12 + $0x60] sm:$0xff] }
 0xa4a   :  { %9788 = vmatpush3.msra.mxu1 %v12572_v4  ;;  %v4274_v7 = vld [vmem:[#allocation12 + $0x68] sm:$0xff] }
 0xa4b   :  { %9789 = vmatprep.subr.mxu1 %v12578_v37 }
 0xa4c   :  { %9790 = vmatpush3.msra.mxu1 %v12578_v37 }
 0xa4d   :  { %9791 = vmatprep.subr.mxu1 %v12587_v35 }
 0xa4e   :  { %9792 = vmatpush3.msra.mxu1 %v12587_v35 }
 0xa4f   :  { %9793 = vmatprep.subr.mxu1 %v12595_v11 }
 0xa50   :  { %9794 = vmatpush3.msra.mxu1 %v12595_v11 }
 0xa51   :  { %9795 = vmatprep.subr.mxu1 %v12602_v0 }
 0xa52   :  { %9796 = vmatpush3.msra.mxu1 %v12602_v0 }
 0xa53   :  { %9797 = vmatprep.subr.mxu1 %v12609_v16 }
 0xa54   :  { %9798 = vmatpush3.msra.mxu1 %v12609_v16 }
 0xa55   :  { %9799 = vmatprep.subr.mxu1 %v12616_v20 }
 0xa56   :  { %9800 = vmatpush3.msra.mxu1 %v12616_v20 }
 0xa57   :  { %9801 = vmatprep.subr.mxu1 %v12620_v13 }
 0xa58   :  { %9802 = vmatpush3.msra.mxu1 %v12620_v13 }
 0xa59   :  { %9804 = vmatmul.mubr.msk.f32.vlgmr.msra.gmra.mxu1 %vm3165_vm4, %v3164_v22  ;;  %9832 = vmatprep.subr.mxu1 %v3424_v24 }
 0xa5a   :  { %9833 = vmatpush3.msra.mxu1 %v3424_v24 }
 0xa5b   :  { %9834 = vmatprep.subr.mxu1 %v3423_v1 }
 0xa5c   :  { %9835 = vmatpush3.msra.mxu1 %v3423_v1  ;;  %v4189_v1 = vld [vmem:[#allocation10 + $0x60] sm:$0xff] }
 0xa5d   :  { %9839 = vmatprep.subr.mxu1 %v12572_v4 }
 0xb19   :  { %v9805_v27 = vpop.f32.mrf.mxu1 }
 0xb1b   :  { %v3238_v28 = vpop.f32.mrf.mxu1 }
 0xb1c   :  { %9810 = vmatprep.mubr.msk.f32.mxu0 %vm507_vm0, %v3238_v28  ;;  %v4444_v28 = vld [vmem:[#allocation12 + $0x78] sm:$0xff] }
 0xb1d   :  { %9811 = vmatmul.mubr.msk.f32.vlgmr.msra.gmra.mxu0 %vm507_vm0, %v9805_v27  ;;  %v4190_v27 = vld [vmem:[#allocation10 + $0x68] sm:$0xff] }
 0xb1e   :  { %9814 = vmatpush3.msra.mxu0 %v12572_v4  ;;  %9829 = vmatprep.mubr.msk.f32.mxu0 %vm3165_vm4, %v3339_v30  ;;  %v4443_v30 = vld [vmem:[#allocation12 + $0x70] sm:$0xff] }
 0xb1f   :  { %9815 = vmatprep.subr.mxu0 %v12578_v37 }
 0xb20   :  { %9816 = vmatpush3.msra.mxu0 %v12578_v37 }
 0xb21   :  { %9817 = vmatprep.subr.mxu0 %v12587_v35 }
 0xb22   :  { %9818 = vmatpush3.msra.mxu0 %v12587_v35 }
 0xb23   :  { %9819 = vmatprep.subr.mxu0 %v12595_v11 }
 0xb24   :  { %9820 = vmatpush3.msra.mxu0 %v12595_v11 }
 0xb25   :  { %9821 = vmatprep.subr.mxu0 %v12602_v0 }
 0xb26   :  { %9822 = vmatpush3.msra.mxu0 %v12602_v0 }
 0xb27   :  { %9823 = vmatprep.subr.mxu0 %v12609_v16 }
 0xb28   :  { %9824 = vmatpush3.msra.mxu0 %v12609_v16 }
 0xb29   :  { %9825 = vmatprep.subr.mxu0 %v12616_v20 }
 0xb2a   :  { %9826 = vmatpush3.msra.mxu0 %v12616_v20 }
 0xb2b   :  { %9827 = vmatprep.subr.mxu0 %v12620_v13 }
 0xb2c   :  { %9828 = vmatpush3.msra.mxu0 %v12620_v13 }
 0xb2d   :  { %9830 = vmatmul.mubr.msk.f32.vlgmr.msra.gmra.mxu0 %vm3165_vm4, %v3340_v31  ;;  %9858 = vmatprep.subr.mxu0 %v3594_v32 }
 0xb2e   :  { %9859 = vmatpush3.msra.mxu0 %v3594_v32 }
 0xb2f   :  { %9860 = vmatprep.subr.mxu0 %v3593_v49 }
 0xb30   :  { %9861 = vmatpush3.msra.mxu0 %v3593_v49 }
 0xb31   :  { %9865 = vmatprep.subr.mxu0 %v12572_v4 }
 0xbdd   :  { %v9812_v50 = vpop.f32.mrf.mxu0 }
 0xbde   :  { %v3337_v21 = vadd.f32 %v9812_v50, %v8590_v8 }
 0xbdf   :  { %v3321_v53 = vpop.f32.mrf.mxu0 }
 0xbe0   :  { %v3336_v33 = vadd.f32 %v8590_v8, %v3321_v53 }
 0xbed   :  { %v9831_v54 = vpop.f32.mrf.mxu0 }
 0xbef   :  { %v3413_v57 = vpop.f32.mrf.mxu0 }
 0xbf0   :  { %9836 = vmatprep.mubr.msk.f32.mxu1 %vm507_vm0, %v3413_v57  ;;  %v4359_v57 = vld [vmem:[#allocation10 + $0x70] sm:$0xff] }
 0xbf1   :  { %9837 = vmatmul.mubr.msk.f32.vlgmr.msra.gmra.mxu1 %vm507_vm0, %v9831_v54 }
 0xbf2   :  { %9840 = vmatpush3.msra.mxu1 %v12572_v4  ;;  %9855 = vmatprep.mubr.msk.f32.mxu1 %vm3165_vm4, %v3509_v59  ;;  %v4360_v59 = vld [vmem:[#allocation10 + $0x78] sm:$0xff] }
 0xbf3   :  { %9841 = vmatprep.subr.mxu1 %v12578_v37 }
 0xbf4   :  { %9842 = vmatpush3.msra.mxu1 %v12578_v37 }
 0xbf5   :  { %9843 = vmatprep.subr.mxu1 %v12587_v35 }
 0xbf6   :  { %9844 = vmatpush3.msra.mxu1 %v12587_v35 }
 0xbf7   :  { %9845 = vmatprep.subr.mxu1 %v12595_v11 }
 0xbf8   :  { %9846 = vmatpush3.msra.mxu1 %v12595_v11 }
 0xbf9   :  { %9847 = vmatprep.subr.mxu1 %v12602_v0 }
 0xbfa   :  { %9848 = vmatpush3.msra.mxu1 %v12602_v0 }
 0xbfb   :  { %9849 = vmatprep.subr.mxu1 %v12609_v16 }
 0xbfc   :  { %9850 = vmatpush3.msra.mxu1 %v12609_v16 }
 0xbfd   :  { %9851 = vmatprep.subr.mxu1 %v12616_v20 }
 0xbfe   :  { %9852 = vmatpush3.msra.mxu1 %v12616_v20 }
 0xbff   :  { %9853 = vmatprep.subr.mxu1 %v12620_v13 }
 0xc00   :  { %9854 = vmatpush3.msra.mxu1 %v12620_v13 }
 0xc01   :  { %9856 = vmatmul.mubr.msk.f32.vlgmr.msra.gmra.mxu1 %vm3165_vm4, %v3510_v38  ;;  %9884 = vmatprep.subr.mxu1 %v3764_v43 }
 0xc02   :  { %9885 = vmatpush3.msra.mxu1 %v3764_v43 }
 0xc03   :  { %9886 = vmatprep.subr.mxu1 %v3763_v63 }
 0xc04   :  { %9887 = vmatpush3.msra.mxu1 %v3763_v63 }
 0xc05   :  { %9891 = vmatprep.subr.mxu1 %v12572_v4 }
 0xcb1   :  { %v9838_v23 = vpop.f32.mrf.mxu1 }
 0xcb2   :  { %v3507_v46 = vadd.f32 %v9838_v23, %v3337_v21 }
 0xcb3   :  { %v3497_v39 = vpop.f32.mrf.mxu1 }
 0xcb4   :  { %v3506_v3 = vadd.f32 %v3497_v39, %v3336_v33  ;;  %v4529_v33 = vld [vmem:[#allocation10 + $0x80] sm:$0xff] }
 0xcb5   :  { %v12794_v39 = vld [vmem:[#allocation18 + $0x18] sm:$0xff] }
 0xcc1   :  { %v9857_v25 = vpop.f32.mrf.mxu1 }
 0xcc3   :  { %v3583_v60 = vpop.f32.mrf.mxu1 }
 0xcc4   :  { %9862 = vmatprep.mubr.msk.f32.mxu0 %vm507_vm0, %v3583_v60  ;;  %v12811_v60 = vld [vmem:[#allocation18] sm:$0xff] }
 0xcc5   :  { %9863 = vmatmul.mubr.msk.f32.vlgmr.msra.gmra.mxu0 %vm507_vm0, %v9857_v25  ;;  %v12805_v25 = vld [vmem:[#allocation18 + $0x8] sm:$0xff] }
 0xcc6   :  { %9866 = vmatpush3.msra.mxu0 %v12572_v4  ;;  %9881 = vmatprep.mubr.msk.f32.mxu0 %vm3165_vm4, %v3679_v5 }
 0xcc7   :  { %9867 = vmatprep.subr.mxu0 %v12578_v37 }
 0xcc8   :  { %9868 = vmatpush3.msra.mxu0 %v12578_v37 }
 0xcc9   :  { %9869 = vmatprep.subr.mxu0 %v12587_v35 }
 0xcca   :  { %9870 = vmatpush3.msra.mxu0 %v12587_v35 }
 0xccb   :  { %9871 = vmatprep.subr.mxu0 %v12595_v11 }
 0xccc   :  { %9872 = vmatpush3.msra.mxu0 %v12595_v11 }
 0xccd   :  { %9873 = vmatprep.subr.mxu0 %v12602_v0 }
 0xcce   :  { %9874 = vmatpush3.msra.mxu0 %v12602_v0 }
 0xccf   :  { %9875 = vmatprep.subr.mxu0 %v12609_v16 }
 0xcd0   :  { %9876 = vmatpush3.msra.mxu0 %v12609_v16 }
 0xcd1   :  { %9877 = vmatprep.subr.mxu0 %v12616_v20 }
 0xcd2   :  { %9878 = vmatpush3.msra.mxu0 %v12616_v20 }
 0xcd3   :  { %9879 = vmatprep.subr.mxu0 %v12620_v13 }
 0xcd4   :  { %9880 = vmatpush3.msra.mxu0 %v12620_v13 }
 0xcd5   :  { %9882 = vmatmul.mubr.msk.f32.vlgmr.msra.gmra.mxu0 %vm3165_vm4, %v3680_v18  ;;  %9910 = vmatprep.subr.mxu0 %v3934_v45 }
 0xcd6   :  { %9911 = vmatpush3.msra.mxu0 %v3934_v45 }
 0xcd7   :  { %9912 = vmatprep.subr.mxu0 %v3933_v51 }
 0xcd8   :  { %9913 = vmatpush3.msra.mxu0 %v3933_v51 }
 0xcd9   :  { %9917 = vmatprep.subr.mxu0 %v12572_v4 }
 0xd85   :  { %v9864_v17 = vpop.f32.mrf.mxu0 }
 0xd86   :  { %v3677_v29 = vadd.f32 %v9864_v17, %v3507_v46 }
 0xd87   :  { %v3667_v14 = vpop.f32.mrf.mxu0 }
 0xd88   :  { %v3676_v34 = vadd.f32 %v3667_v14, %v3506_v3  ;;  %v12799_v3 = vld [vmem:[#allocation18 + $0x10] sm:$0xff] }
 0xd95   :  { %v9883_v56 = vpop.f32.mrf.mxu0 }
 0xd97   :  { %v3753_v47 = vpop.f32.mrf.mxu0 }
 0xd98   :  { %9888 = vmatprep.mubr.msk.f32.mxu1 %vm507_vm0, %v3753_v47 }
 0xd99   :  { %9889 = vmatmul.mubr.msk.f32.vlgmr.msra.gmra.mxu1 %vm507_vm0, %v9883_v56 }
 0xd9a   :  { %9892 = vmatpush3.msra.mxu1 %v12572_v4  ;;  %9907 = vmatprep.mubr.msk.f32.mxu1 %vm3165_vm4, %v3849_v9 }
 0xd9b   :  { %9893 = vmatprep.subr.mxu1 %v12578_v37 }
 0xd9c   :  { %9894 = vmatpush3.msra.mxu1 %v12578_v37 }
 0xd9d   :  { %9895 = vmatprep.subr.mxu1 %v12587_v35 }
 0xd9e   :  { %9896 = vmatpush3.msra.mxu1 %v12587_v35 }
 0xd9f   :  { %9897 = vmatprep.subr.mxu1 %v12595_v11 }
 0xda0   :  { %9898 = vmatpush3.msra.mxu1 %v12595_v11 }
 0xda1   :  { %9899 = vmatprep.subr.mxu1 %v12602_v0 }
 0xda2   :  { %9900 = vmatpush3.msra.mxu1 %v12602_v0 }
 0xda3   :  { %9901 = vmatprep.subr.mxu1 %v12609_v16 }
 0xda4   :  { %9902 = vmatpush3.msra.mxu1 %v12609_v16 }
 0xda5   :  { %9903 = vmatprep.subr.mxu1 %v12616_v20 }
 0xda6   :  { %9904 = vmatpush3.msra.mxu1 %v12616_v20 }
 0xda7   :  { %9905 = vmatprep.subr.mxu1 %v12620_v13 }
 0xda8   :  { %9906 = vmatpush3.msra.mxu1 %v12620_v13 }
 0xda9   :  { %9908 = vmatmul.mubr.msk.f32.vlgmr.msra.gmra.mxu1 %vm3165_vm4, %v3850_v58  ;;  %9936 = vmatprep.subr.mxu1 %v4104_v52 }
 0xdaa   :  { %9937 = vmatpush3.msra.mxu1 %v4104_v52 }
 0xdab   :  { %9938 = vmatprep.subr.mxu1 %v4103_v55 }
 0xdac   :  { %9939 = vmatpush3.msra.mxu1 %v4103_v55 }
 0xdad   :  { %9943 = vmatprep.subr.mxu1 %v12572_v4 }
 0xe59   :  { %v9890_v40 = vpop.f32.mrf.mxu1 }
 0xe5a   :  { %v3847_v61 = vadd.f32 %v9890_v40, %v3677_v29 }
 0xe5b   :  { %v3837_v44 = vpop.f32.mrf.mxu1 }
 0xe5c   :  { %v3846_v42 = vadd.f32 %v3837_v44, %v3676_v34 }
 0xe69   :  { %v9909_v36 = vpop.f32.mrf.mxu1 }
 0xe6b   :  { %v3923_v62 = vpop.f32.mrf.mxu1 }
 0xe6c   :  { %9914 = vmatprep.mubr.msk.f32.mxu0 %vm507_vm0, %v3923_v62 }
 0xe6d   :  { %9915 = vmatmul.mubr.msk.f32.vlgmr.msra.gmra.mxu0 %vm507_vm0, %v9909_v36 }
 0xe6e   :  { %9918 = vmatpush3.msra.mxu0 %v12572_v4  ;;  %9933 = vmatprep.mubr.msk.f32.mxu0 %vm3165_vm4, %v4019_v2 }
 0xe6f   :  { %9919 = vmatprep.subr.mxu0 %v12578_v37 }
 0xe70   :  { %9920 = vmatpush3.msra.mxu0 %v12578_v37 }
 0xe71   :  { %9921 = vmatprep.subr.mxu0 %v12587_v35 }
 0xe72   :  { %9922 = vmatpush3.msra.mxu0 %v12587_v35 }
 0xe73   :  { %9923 = vmatprep.subr.mxu0 %v12595_v11 }
 0xe74   :  { %9924 = vmatpush3.msra.mxu0 %v12595_v11 }
 0xe75   :  { %9925 = vmatprep.subr.mxu0 %v12602_v0 }
 0xe76   :  { %9926 = vmatpush3.msra.mxu0 %v12602_v0 }
 0xe77   :  { %9927 = vmatprep.subr.mxu0 %v12609_v16 }
 0xe78   :  { %9928 = vmatpush3.msra.mxu0 %v12609_v16 }
 0xe79   :  { %9929 = vmatprep.subr.mxu0 %v12616_v20 }
 0xe7a   :  { %9930 = vmatpush3.msra.mxu0 %v12616_v20 }
 0xe7b   :  { %9931 = vmatprep.subr.mxu0 %v12620_v13 }
 0xe7c   :  { %9932 = vmatpush3.msra.mxu0 %v12620_v13 }
 0xe7d   :  { %9934 = vmatmul.mubr.msk.f32.vlgmr.msra.gmra.mxu0 %vm3165_vm4, %v4020_v10  ;;  %9962 = vmatprep.subr.mxu0 %v4274_v7 }
 0xe7e   :  { %9963 = vmatpush3.msra.mxu0 %v4274_v7 }
 0xe7f   :  { %9964 = vmatprep.subr.mxu0 %v4273_v48 }
 0xe80   :  { %9965 = vmatpush3.msra.mxu0 %v4273_v48 }
 0xe81   :  { %9969 = vmatprep.subr.mxu0 %v12572_v4 }
 0xf2d   :  { %v9916_v12 = vpop.f32.mrf.mxu0 }
 0xf2e   :  { %v4017_v41 = vadd.f32 %v9916_v12, %v3847_v61  ;;  %v12819_v61 = vld [vmem:[#allocation19] sm:$0x3] }
 0xf2f   :  { %v4007_v15 = vpop.f32.mrf.mxu0 }
 0xf30   :  { %v4016_v19 = vadd.f32 %v4007_v15, %v3846_v42 }
 0xf3d   :  { %v9935_v22 = vpop.f32.mrf.mxu0 }
 0xf3f   :  { %v4093_v24 = vpop.f32.mrf.mxu0 }
 0xf40   :  { %9940 = vmatprep.mubr.msk.f32.mxu1 %vm507_vm0, %v4093_v24 }
 0xf41   :  { %9941 = vmatmul.mubr.msk.f32.vlgmr.msra.gmra.mxu1 %vm507_vm0, %v9935_v22 }
 0xf42   :  { %9944 = vmatpush3.msra.mxu1 %v12572_v4  ;;  %9959 = vmatprep.mubr.msk.f32.mxu1 %vm3165_vm4, %v4189_v1 }
 0xf43   :  { %9945 = vmatprep.subr.mxu1 %v12578_v37 }
 0xf44   :  { %9946 = vmatpush3.msra.mxu1 %v12578_v37 }
 0xf45   :  { %9947 = vmatprep.subr.mxu1 %v12587_v35 }
 0xf46   :  { %9948 = vmatpush3.msra.mxu1 %v12587_v35 }
 0xf47   :  { %9949 = vmatprep.subr.mxu1 %v12595_v11 }
 0xf48   :  { %9950 = vmatpush3.msra.mxu1 %v12595_v11 }
 0xf49   :  { %9951 = vmatprep.subr.mxu1 %v12602_v0 }
 0xf4a   :  { %9952 = vmatpush3.msra.mxu1 %v12602_v0 }
 0xf4b   :  { %9953 = vmatprep.subr.mxu1 %v12609_v16 }
 0xf4c   :  { %9954 = vmatpush3.msra.mxu1 %v12609_v16 }
 0xf4d   :  { %9955 = vmatprep.subr.mxu1 %v12616_v20 }
 0xf4e   :  { %9956 = vmatpush3.msra.mxu1 %v12616_v20 }
 0xf4f   :  { %9957 = vmatprep.subr.mxu1 %v12620_v13 }
 0xf50   :  { %9958 = vmatpush3.msra.mxu1 %v12620_v13 }
 0xf51   :  { %9960 = vmatmul.mubr.msk.f32.vlgmr.msra.gmra.mxu1 %vm3165_vm4, %v4190_v27  ;;  %9988 = vmatprep.subr.mxu1 %v4444_v28 }
 0xf52   :  { %9989 = vmatpush3.msra.mxu1 %v4444_v28 }
 0xf53   :  { %9990 = vmatprep.subr.mxu1 %v4443_v30 }
 0xf54   :  { %9991 = vmatpush3.msra.mxu1 %v4443_v30 }
 0xf55   :  { %9995 = vmatprep.subr.mxu1 %v12572_v4 }
0x1001   :  { %v9942_v31 = vpop.f32.mrf.mxu1 }
0x1002   :  { %v4187_v32 = vadd.f32 %v9942_v31, %v4017_v41 }
0x1003   :  { %v4177_v49 = vpop.f32.mrf.mxu1 }
0x1004   :  { %v4186_v50 = vadd.f32 %v4177_v49, %v4016_v19  ;;  %v5129_v49 = vld [vmem:[#allocation22 + $0x18] sm:$0xff] }
0x1011   :  { %v9961_v53 = vpop.f32.mrf.mxu1 }
0x1013   :  { %v4263_v54 = vpop.f32.mrf.mxu1 }
0x1014   :  { %9966 = vmatprep.mubr.msk.f32.mxu0 %vm507_vm0, %v4263_v54  ;;  %v5126_v54 = vld [vmem:[#allocation22] sm:$0xff] }
0x1015   :  { %9967 = vmatmul.mubr.msk.f32.vlgmr.msra.gmra.mxu0 %vm507_vm0, %v9961_v53  ;;  %v5127_v53 = vld [vmem:[#allocation22 + $0x8] sm:$0xff] }
0x1016   :  { %9970 = vmatpush3.msra.mxu0 %v12572_v4  ;;  %9985 = vmatprep.mubr.msk.f32.mxu0 %vm3165_vm4, %v4359_v57  ;;  %v5043_v57 = vld [vmem:[#allocation21] sm:$0xff] }
0x1017   :  { %9971 = vmatprep.subr.mxu0 %v12578_v37 }
0x1018   :  { %9972 = vmatpush3.msra.mxu0 %v12578_v37 }
0x1019   :  { %9973 = vmatprep.subr.mxu0 %v12587_v35 }
0x101a   :  { %9974 = vmatpush3.msra.mxu0 %v12587_v35 }
0x101b   :  { %9975 = vmatprep.subr.mxu0 %v12595_v11 }
0x101c   :  { %9976 = vmatpush3.msra.mxu0 %v12595_v11 }
0x101d   :  { %9977 = vmatprep.subr.mxu0 %v12602_v0 }
0x101e   :  { %9978 = vmatpush3.msra.mxu0 %v12602_v0 }
0x101f   :  { %9979 = vmatprep.subr.mxu0 %v12609_v16 }
0x1020   :  { %9980 = vmatpush3.msra.mxu0 %v12609_v16 }
0x1021   :  { %9981 = vmatprep.subr.mxu0 %v12616_v20 }
0x1022   :  { %9982 = vmatpush3.msra.mxu0 %v12616_v20 }
0x1023   :  { %9983 = vmatprep.subr.mxu0 %v12620_v13 }
0x1024   :  { %9984 = vmatpush3.msra.mxu0 %v12620_v13 }
0x1025   :  { %9986 = vmatmul.mubr.msk.f32.vlgmr.msra.gmra.mxu0 %vm3165_vm4, %v4360_v59 }
0x10d5   :  { %v9968_v38 = vpop.f32.mrf.mxu0 }
0x10d6   :  { %v4357_v43 = vadd.f32 %v9968_v38, %v4187_v32 }
0x10d7   :  { %v4347_v63 = vpop.f32.mrf.mxu0 }
0x10d8   :  { %v4356_v8 = vadd.f32 %v4347_v63, %v4186_v50  ;;  %v5128_v50 = vld [vmem:[#allocation22 + $0x10] sm:$0xff] }
0x10e5   :  { %v9987_v21 = vpop.f32.mrf.mxu0 }
0x10e7   :  { %v4433_v23 = vpop.f32.mrf.mxu0 }
0x10e8   :  { %9992 = vmatprep.mubr.msk.f32.mxu1 %vm507_vm0, %v4433_v23  ;;  %v5035_v23 = vld [vmem:[#allocation15 + $0x8] sm:$0xff] }
0x10e9   :  { %9993 = vmatmul.mubr.msk.f32.vlgmr.msra.gmra.mxu1 %vm507_vm0, %v9987_v21  ;;  %v5034_v21 = vld [vmem:[#allocation15] sm:$0xff] }
0x10ea   :  { %9996 = vmatpush3.msra.mxu1 %v12572_v4  ;;  %10011 = vmatprep.mubr.msk.f32.mxu1 %vm3165_vm4, %v4529_v33  ;;  %v4530_v4 = vld [vmem:[#allocation10 + $0x88] sm:$0xff] }
0x10eb   :  { %9997 = vmatprep.subr.mxu1 %v12578_v37 }
0x10ec   :  { %9998 = vmatpush3.msra.mxu1 %v12578_v37  ;;  %v4614_v37 = vld [vmem:[#allocation12 + $0x88] sm:$0xff] }
0x10ed   :  { %9999 = vmatprep.subr.mxu1 %v12587_v35  ;;  %10014 = vmatprep.subr.mxu0 %v4614_v37 }
0x10ee   :  { %10000 = vmatpush3.msra.mxu1 %v12587_v35  ;;  %10015 = vmatpush3.msra.mxu0 %v4614_v37  ;;  %v4613_v35 = vld [vmem:[#allocation12 + $0x80] sm:$0xff]  ;;  %v5039_v37 = vld [vmem:[#allocation16 + $0x8] sm:$0xff] }
0x10ef   :  { %10001 = vmatprep.subr.mxu1 %v12595_v11  ;;  %10016 = vmatprep.subr.mxu0 %v4613_v35 }
0x10f0   :  { %10002 = vmatpush3.msra.mxu1 %v12595_v11  ;;  %10017 = vmatpush3.msra.mxu0 %v4613_v35 }
0x10f1   :  { %10003 = vmatprep.subr.mxu1 %v12602_v0  ;;  %10021 = vmatprep.subr.mxu0 %v10974_v26 }
0x10f2   :  { %10004 = vmatpush3.msra.mxu1 %v12602_v0 }
0x10f3   :  { %10005 = vmatprep.subr.mxu1 %v12609_v16 }
0x10f4   :  { %10006 = vmatpush3.msra.mxu1 %v12609_v16 }
0x10f5   :  { %10007 = vmatprep.subr.mxu1 %v12616_v20 }
0x10f6   :  { %10008 = vmatpush3.msra.mxu1 %v12616_v20 }
0x10f7   :  { %10009 = vmatprep.subr.mxu1 %v12620_v13 }
0x10f8   :  { %10010 = vmatpush3.msra.mxu1 %v12620_v13 }
0x10f9   :  { %10012 = vmatmul.mubr.msk.f32.vlgmr.msra.gmra.mxu1 %vm3165_vm4, %v4530_v4  ;;  %10037 = vmatprep.subr.mxu1 %v10974_v26 }
0x10fa   :  { %10045 = vmatprep.mubr.msk.f32.mxu1 %vm10975_vm1, %v10974_v26  ;;  %10038 = vmatpush3.msra.mxu1 %v12794_v39 }
0x10fb   :  { %10039 = vmatprep.subr.mxu1 %v10974_v26 }
0x10fc   :  { %10040 = vmatpush3.msra.mxu1 %v12799_v3 }
0x10fd   :  { %10041 = vmatprep.subr.mxu1 %v10974_v26 }
0x10fe   :  { %10042 = vmatpush3.msra.mxu1 %v12805_v25 }
0x10ff   :  { %10043 = vmatprep.subr.mxu1 %v10974_v26 }
0x1100   :  { %10044 = vmatpush3.msra.mxu1 %v12811_v60 }
0x1101   :  { %10060 = vmatprep.subr.mxu1 %v5129_v49 }
0x11a9   :  { %v9994_v11 = vpop.f32.mrf.mxu1 }
0x11aa   :  { %v4527_v0 = vadd.f32 %v9994_v11, %v4357_v43 }
0x11ab   :  { %v4517_v16 = vpop.f32.mrf.mxu1 }
0x11ac   :  { %v4526_v20 = vadd.f32 %v4517_v16, %v4356_v8 }
0x11b9   :  { %v10013_v13 = vpop.f32.mrf.mxu1 }
0x11bb   :  { %v4603_v46 = vpop.f32.mrf.mxu1 }
0x11bc   :  { %10018 = vmatprep.mubr.msk.f32.mxu0 %vm507_vm0, %v4603_v46  ;;  %v5220_v46 = vld [vmem:[#allocation21 + $0x10] sm:$0xff] }
0x11bd   :  { %10019 = vmatmul.mubr.msk.f32.vlgmr.msra.gmra.mxu0 %vm507_vm0, %v10013_v13  ;;  %v5044_v13 = vld [vmem:[#allocation21 + $0x8] sm:$0xff] }
0x11be   :  { %10029 = vmatprep.mubr.msk.f32.mxu0 %vm10975_vm1, %v10974_v26  ;;  %10022 = vmatpush3.msra.mxu0 %v12794_v39 }
0x11bf   :  { %10023 = vmatprep.subr.mxu0 %v10974_v26 }
0x11c0   :  { %10024 = vmatpush3.msra.mxu0 %v12799_v3 }
0x11c1   :  { %10025 = vmatprep.subr.mxu0 %v10974_v26 }
0x11c2   :  { %10026 = vmatpush3.msra.mxu0 %v12805_v25 }
0x11c3   :  { %10027 = vmatprep.subr.mxu0 %v10974_v26 }
0x11c4   :  { %10028 = vmatpush3.msra.mxu0 %v12811_v60 }
0x11c5   :  { %10032 = vmatprep.subr.mxu0 %v10974_v26 }
0x127d   :  { %v10020_v5 = vpop.f32.mrf.mxu0 }
0x127e   :  { %v4697_v18 = vadd.f32 %v10020_v5, %v4527_v0  ;;  %v5038_v0 = vld [vmem:[#allocation16] sm:$0xff]  ;;  %v5221_v5 = vld [vmem:[#allocation21 + $0x18] sm:$0xff] }
0x127f   :  { %v4687_v45 = vpop.f32.mrf.mxu0 }
0x1280   :  { %v4699_v51 = vmax.f32 %v4697_v18, 0.0  ;;  %v4696_v17 = vadd.f32 %v4687_v45, %v4526_v20  ;;  %v5307_v18 = vld [vmem:[#allocation22 + $0x38] sm:$0xff]  ;;  %v5306_v45 = vld [vmem:[#allocation22 + $0x30] sm:$0xff] }
0x1282   :  { %v4698_v29 = vmax.f32 %v4696_v17, 0.0  ;;  %v4702_v14 = vsel %vm4700_vm5, %v4699_v51, 0.0  ;;  %v5304_v17 = vld [vmem:[#allocation22 + $0x20] sm:$0xff] }
0x1284   :  { %v4701_v34 = vsel %vm4700_vm5, %v4698_v29, 0.0 }
0x1285   :  { %v4703_v56 = vadd.f32 %v4702_v14, %v4701_v34  ;;  %v5392_v34 = vld [vmem:[#allocation21 + $0x20] sm:$0xff] }
0x1287   :  { %v4704_v47 = vrot.slane %v4703_v56, 4 }
0x1289   :  { %v4705_v9 = vadd.f32 %v4704_v47, %v4703_v56  ;;  %v5479_v47 = vld [vmem:[#allocation22 + $0x58] sm:$0xff] }
0x128b   :  { %v4706_v58 = vrot.slane %v4705_v9, 2 }
0x128d   :  { %v4707_v52 = vadd.f32 %v4706_v58, %v4705_v9  ;;  %v5393_v58 = vld [vmem:[#allocation21 + $0x28] sm:$0xff] }
0x128f   :  { %v4708_v55 = vrot.slane %v4707_v52, 1 }
0x1291   :  { %v4709_v40 = vadd.f32 %v4708_v55, %v4707_v52  ;;  %v5478_v52 = vld [vmem:[#allocation22 + $0x50] sm:$0xff]  ;;  %v5564_v55 = vld [vmem:[#allocation21 + $0x30] sm:$0xff] }
0x1293   :  { %10030 = vmatmul.mubr.msk.f32.vlgmr.msra.gmra.mxu0 %vm4700_vm5, %v4709_v40  ;;  %v5477_v40 = vld [vmem:[#allocation22 + $0x48] sm:$0xff] }
0x1294   :  { %10033 = vmatpush3.msk.msra.mxu0 %vm2856_vm2, %v12819_v61  ;;  %10034 = vmatprep.mubr.msk.f32.mxu0 %vm10975_vm1, %v10974_v26 }
0x1295   :  { %10048 = vmatprep.subr.mxu0 %v10974_v26 }
0x1353   :  { %v4783_v44 = vpop.f32.mrf.mxu0 }
0x1354   :  { %10035 = vmatmul.mubr.msk.f32.vlgmr.msra.gmra.mxu0 %vm2852_vm3, %v4783_v44  ;;  %v5651_v44 = vld [vmem:[#allocation22 + $0x78] sm:$0xff] }
0x1355   :  { %v10031_v42 = vpop.f32.mrf.mxu0  ;;  %10049 = vmatpush3.msk.msra.mxu0 %vm2856_vm2, %v12819_v61  ;;  %10050 = vmatprep.mubr.msk.f32.mxu0 %vm10975_vm1, %v10974_v26 }
0x1356   :  { %v5565_v42 = vld [vmem:[#allocation21 + $0x38] sm:$0xff] }
0x1414   :  { %v4860_v36 = vpop.f32.mrf.mxu0 }
0x1415   :  { %v4867_v62 = vrot.slane %v4860_v36, %v12534_v6  ;;  %v5476_v36 = vld [vmem:[#allocation22 + $0x40] sm:$0xff] }
0x1416   :  { %v10036_v2 = vpop.f32.mrf.mxu0 }
0x1417   :  { %v4868_v10 = vsub.f32 %v4698_v29, %v4867_v62  ;;  %v4869_v7 = vsub.f32 %v4699_v51, %v4867_v62  ;;  %v5305_v51 = vld [vmem:[#allocation22 + $0x28] sm:$0xff]  ;;  %v5650_v62 = vld [vmem:[#allocation22 + $0x70] sm:$0xff] }
0x1418   :  { %v5649_v2 = vld [vmem:[#allocation22 + $0x68] sm:$0xff] }
0x1419   :  { %v4870_v48 = vmul.f32 %v4868_v10, %v4868_v10  ;;  %v4871_v12 = vmul.f32 %v4869_v7, %v4869_v7 }
0x141b   :  { %v4872_v41 = vsel %vm4700_vm5, %v4870_v48, 0.0  ;;  %v4873_v15 = vsel %vm4700_vm5, %v4871_v12, 0.0 }
0x141c   :  { %v4874_v19 = vadd.f32 %v4873_v15, %v4872_v41 }
0x141e   :  { %v4875_v22 = vrot.slane %v4874_v19, 4 }
0x1420   :  { %v4876_v24 = vadd.f32 %v4875_v22, %v4874_v19 }
0x1422   :  { %v4877_v1 = vrot.slane %v4876_v24, 2 }
0x1424   :  { %v4878_v27 = vadd.f32 %v4877_v1, %v4876_v24 }
0x1426   :  { %v4879_v28 = vrot.slane %v4878_v27, 1 }
0x1428   :  { %v4880_v30 = vadd.f32 %v4879_v28, %v4878_v27 }
0x142a   :  { %10046 = vmatmul.mubr.msk.f32.vlgmr.msra.gmra.mxu1 %vm4700_vm5, %v4880_v30  ;;  %v5736_v30 = vld [vmem:[#allocation21 + $0x40] sm:$0xff] }
0x142b   :  { %10061 = vmatpush3.msra.mxu1 %v5129_v49  ;;  %v5737_v49 = vld [vmem:[#allocation21 + $0x48] sm:$0xff] }
0x142c   :  { %10062 = vmatprep.subr.mxu1 %v5128_v50 }
0x142d   :  { %10063 = vmatpush3.msra.mxu1 %v5128_v50 }
0x142e   :  { %10064 = vmatprep.subr.mxu1 %v5127_v53 }
0x142f   :  { %10065 = vmatpush3.msra.mxu1 %v5127_v53  ;;  %v5822_v53 = vld [vmem:[#allocation22 + $0x90] sm:$0xff] }
0x1430   :  { %10066 = vmatprep.subr.mxu1 %v5126_v54 }
0x1431   :  { %10067 = vmatpush3.msra.mxu1 %v5126_v54  ;;  %v5821_v54 = vld [vmem:[#allocation22 + $0x88] sm:$0xff] }
0x14ea   :  { %v4950_v31 = vpop.f32.mrf.mxu1 }
0x14eb   :  { %10051 = vmatmul.mubr.msk.f32.vlgmr.msra.gmra.mxu0 %vm2852_vm3, %v4950_v31 }
0x14ec   :  { %v10047_v32 = vpop.f32.mrf.mxu1  ;;  %10057 = vmatprep.mubr.msk.f32.mxu0 %vm507_vm0, %v5043_v57  ;;  %v5908_v57 = vld [vmem:[#allocation21 + $0x50] sm:$0xff] }
0x14ed   :  { %v5823_v32 = vld [vmem:[#allocation22 + $0x98] sm:$0xff] }
0x15ab   :  { %v5023_v59 = vpop.f32.mrf.mxu0 }
0x15ac   :  { %v5024_v38 = vadd.f32 1e-05, %v5023_v59  ;;  %v5995_v59 = vld [vmem:[#allocation22 + $0xb8] sm:$0xff] }
0x15ad   :  { %v10052_v43 = vpop.f32.mrf.mxu0 }
0x15ae   :  { %10469 = vrsqrt.f32 %v5024_v38  ;;  %v5909_v38 = vld [vmem:[#allocation21 + $0x58] sm:$0xff]  ;;  %v5820_v43 = vld [vmem:[#allocation22 + $0x80] sm:$0xff] }
0x15bb   :  { %v10470_v63 = vpop.eup %10469 }
0x15bc   :  { %v5031_v8 = vrot.slane %v10470_v63, %v12534_v6  ;;  %v5994_v63 = vld [vmem:[#allocation22 + $0xb0] sm:$0xff] }
0x15be   :  { %v5032_v33 = vmul.f32 %v5031_v8, %v4868_v10  ;;  %v5033_v4 = vmul.f32 %v5031_v8, %v4869_v7  ;;  %v5648_v10 = vld [vmem:[#allocation22 + $0x60] sm:$0xff]  ;;  %v5993_v8 = vld [vmem:[#allocation22 + $0xa8] sm:$0xff] }
0x15bf   :  { %v8633_v7 = vld [vmem:[#allocation24] ss:$0 sm:$0xff] }
0x15c0   :  { %v5036_v35 = vmul.f32 %v5034_v21, %v5032_v33  ;;  %v5037_v11 = vmul.f32 %v5035_v23, %v5033_v4  ;;  %v5992_v21 = vld [vmem:[#allocation22 + $0xa0] sm:$0xff] }
0x15c2   :  { %v12839_v16 = vadd.f32 %v5039_v37, %v5037_v11  ;;  %v12841_v20 = vadd.f32 %v5038_v0, %v5036_v35 }
0x15c4   :  { %10053 = vmatprep.subr.mxu0 %v12839_v16  ;;  %10089 = vmatprep.subr.mxu1 %v12839_v16 }
0x15c5   :  { %10054 = vmatpush3.msra.mxu0 %v12839_v16 }
0x15c6   :  { %10055 = vmatprep.subr.mxu0 %v12841_v20 }
0x15c7   :  { %10056 = vmatpush3.msra.mxu0 %v12841_v20 }
0x15c8   :  { %10058 = vmatmul.mubr.msk.f32.vlgmr.msra.gmra.mxu0 %vm507_vm0, %v5044_v13  ;;  %10071 = vmatprep.subr.mxu0 %v12839_v16 }
0x15c9   :  { %10072 = vmatpush3.msra.mxu0 %v12839_v16  ;;  %10075 = vmatprep.mubr.msk.f32.mxu0 %vm507_vm0, %v5220_v46 }
0x15ca   :  { %10073 = vmatprep.subr.mxu0 %v12841_v20 }
0x15cb   :  { %10074 = vmatpush3.msra.mxu0 %v12841_v20 }
0x15cc   :  { %10076 = vmatmul.mubr.msk.f32.vlgmr.msra.gmra.mxu0 %vm507_vm0, %v5221_v5  ;;  %10078 = vmatprep.subr.mxu0 %v5307_v18  ;;  %v6080_v5 = vld [vmem:[#allocation21 + $0x60] sm:$0xff] }
0x15cd   :  { %10079 = vmatpush3.msra.mxu0 %v5307_v18 }
0x15ce   :  { %10080 = vmatprep.subr.mxu0 %v5306_v45 }
0x15cf   :  { %10081 = vmatpush3.msra.mxu0 %v5306_v45  ;;  %v6167_v45 = vld [vmem:[#allocation22 + $0xd8] sm:$0xff] }
0x15d0   :  { %10082 = vmatprep.subr.mxu0 %v5305_v51 }
0x15d1   :  { %10083 = vmatpush3.msra.mxu0 %v5305_v51  ;;  %v6081_v51 = vld [vmem:[#allocation21 + $0x68] sm:$0xff] }
0x15d2   :  { %10084 = vmatprep.subr.mxu0 %v5304_v17 }
0x15d3   :  { %10085 = vmatpush3.msra.mxu0 %v5304_v17 }
0x15d4   :  { %10107 = vmatprep.subr.mxu0 %v12839_v16 }
0x1688   :  { %v10059_v29 = vpop.f32.mrf.mxu0 }
0x168a   :  { %v5117_v14 = vpop.f32.mrf.mxu0 }
0x168b   :  { %10068 = vmatprep.mubr.msk.f32.mxu1 %vm4700_vm5, %v5117_v14 }
0x168c   :  { %10069 = vmatmul.mubr.msk.f32.vlgmr.msra.gmra.mxu1 %vm4700_vm5, %v10059_v29  ;;  %v10077_v56 = vpop.f32.mrf.mxu0  ;;  %v6166_v29 = vld [vmem:[#allocation22 + $0xd0] sm:$0xff] }
0x168d   :  { %10090 = vmatpush3.msra.mxu1 %v12839_v16  ;;  %10093 = vmatprep.mubr.msk.f32.mxu1 %vm507_vm0, %v5392_v34  ;;  %v6165_v34 = vld [vmem:[#allocation22 + $0xc8] sm:$0xff] }
0x168e   :  { %10091 = vmatprep.subr.mxu1 %v12841_v20  ;;  %v5294_v9 = vpop.f32.mrf.mxu0 }
0x168f   :  { %10092 = vmatpush3.msra.mxu1 %v12841_v20  ;;  %10086 = vmatprep.mubr.msk.f32.mxu0 %vm4700_vm5, %v5294_v9  ;;  %v6164_v9 = vld [vmem:[#allocation22 + $0xc0] sm:$0xff] }
0x1690   :  { %10096 = vmatprep.subr.mxu1 %v5479_v47  ;;  %10087 = vmatmul.mubr.msk.f32.vlgmr.msra.gmra.mxu0 %vm4700_vm5, %v10077_v56  ;;  %v6252_v56 = vld [vmem:[#allocation21 + $0x70] sm:$0xff] }
0x1691   :  { %10094 = vmatmul.mubr.msk.f32.vlgmr.msra.gmra.mxu1 %vm507_vm0, %v5393_v58  ;;  %10108 = vmatpush3.msra.mxu0 %v12839_v16  ;;  %v6339_v58 = vld [vmem:[#allocation22 + $0xf8] sm:$0xff] }
0x1692   :  { %10097 = vmatpush3.msra.mxu1 %v5479_v47  ;;  %10109 = vmatprep.subr.mxu0 %v12841_v20  ;;  %v6253_v47 = vld [vmem:[#allocation21 + $0x78] sm:$0xff] }
0x1693   :  { %10098 = vmatprep.subr.mxu1 %v5478_v52  ;;  %10110 = vmatpush3.msra.mxu0 %v12841_v20 }
0x1694   :  { %10099 = vmatpush3.msra.mxu1 %v5478_v52  ;;  %10111 = vmatprep.mubr.msk.f32.mxu0 %vm507_vm0, %v5564_v55  ;;  %v6338_v52 = vld [vmem:[#allocation22 + $0xf0] sm:$0xff]  ;;  %v6337_v55 = vld [vmem:[#allocation22 + $0xe8] sm:$0xff] }
0x1695   :  { %10100 = vmatprep.subr.mxu1 %v5477_v40  ;;  %10114 = vmatprep.subr.mxu0 %v5651_v44 }
0x1696   :  { %10101 = vmatpush3.msra.mxu1 %v5477_v40  ;;  %10112 = vmatmul.mubr.msk.f32.vlgmr.msra.gmra.mxu0 %vm507_vm0, %v5565_v42  ;;  %v6336_v40 = vld [vmem:[#allocation22 + $0xe0] sm:$0xff] }
0x1697   :  { %10115 = vmatpush3.msra.mxu0 %v5651_v44  ;;  %10102 = vmatprep.subr.mxu1 %v5476_v36 }
0x1698   :  { %10116 = vmatprep.subr.mxu0 %v5650_v62  ;;  %10103 = vmatpush3.msra.mxu1 %v5476_v36 }
0x1699   :  { %10117 = vmatpush3.msra.mxu0 %v5650_v62  ;;  %10125 = vmatprep.subr.mxu1 %v12839_v16 }
0x169a   :  { %10118 = vmatprep.subr.mxu0 %v5649_v2 }
0x169b   :  { %10119 = vmatpush3.msra.mxu0 %v5649_v2 }
0x169c   :  { %10120 = vmatprep.subr.mxu0 %v5648_v10 }
0x169d   :  { %10121 = vmatpush3.msra.mxu0 %v5648_v10 }
0x169e   :  { %10143 = vmatprep.subr.mxu0 %v12839_v16 }
0x174c   :  { %v10070_v48 = vpop.f32.mrf.mxu1 }
0x174d   :  { %v5218_v41 = vadd.f32 %v10070_v48, %v8633_v7  ;;  %v6424_v48 = vld [vmem:[#allocation21 + $0x80] sm:$0xff] }
0x174e   :  { %v5202_v12 = vpop.f32.mrf.mxu1 }
0x174f   :  { %v5217_v19 = vadd.f32 %v8633_v7, %v5202_v12 }
0x1750   :  { %v10088_v15 = vpop.f32.mrf.mxu0 }
0x1751   :  { %v5390_v22 = vadd.f32 %v10088_v15, %v5218_v41  ;;  %v10095_v24 = vpop.f32.mrf.mxu1 }
0x1752   :  { %v5380_v1 = vpop.f32.mrf.mxu0 }
0x1753   :  { %v5389_v27 = vadd.f32 %v5380_v1, %v5217_v19  ;;  %v5466_v28 = vpop.f32.mrf.mxu1  ;;  %v6425_v19 = vld [vmem:[#allocation21 + $0x88] sm:$0xff]  ;;  %v6509_v1 = vld [vmem:[#allocation22 + $0x108] sm:$0xff] }
0x1754   :  { %10104 = vmatprep.mubr.msk.f32.mxu1 %vm4700_vm5, %v5466_v28 }
0x1755   :  { %10105 = vmatmul.mubr.msk.f32.vlgmr.msra.gmra.mxu1 %vm4700_vm5, %v10095_v24 }
0x1756   :  { %v10113_v31 = vpop.f32.mrf.mxu0  ;;  %10126 = vmatpush3.msra.mxu1 %v12839_v16  ;;  %10129 = vmatprep.mubr.msk.f32.mxu1 %vm507_vm0, %v5736_v30 }
0x1757   :  { %10127 = vmatprep.subr.mxu1 %v12841_v20 }
0x1758   :  { %v5638_v50 = vpop.f32.mrf.mxu0  ;;  %10128 = vmatpush3.msra.mxu1 %v12841_v20 }
0x1759   :  { %10122 = vmatprep.mubr.msk.f32.mxu0 %vm4700_vm5, %v5638_v50  ;;  %10132 = vmatprep.subr.mxu1 %v5823_v32 }
0x175a   :  { %10123 = vmatmul.mubr.msk.f32.vlgmr.msra.gmra.mxu0 %vm4700_vm5, %v10113_v31  ;;  %10130 = vmatmul.mubr.msk.f32.vlgmr.msra.gmra.mxu1 %vm507_vm0, %v5737_v49 }
0x175b   :  { %10133 = vmatpush3.msra.mxu1 %v5823_v32  ;;  %10144 = vmatpush3.msra.mxu0 %v12839_v16 }
0x175c   :  { %10134 = vmatprep.subr.mxu1 %v5822_v53  ;;  %10145 = vmatprep.subr.mxu0 %v12841_v20 }
0x175d   :  { %10135 = vmatpush3.msra.mxu1 %v5822_v53  ;;  %10146 = vmatpush3.msra.mxu0 %v12841_v20 }
0x175e   :  { %10136 = vmatprep.subr.mxu1 %v5821_v54  ;;  %10147 = vmatprep.mubr.msk.f32.mxu0 %vm507_vm0, %v5908_v57 }
0x175f   :  { %10150 = vmatprep.subr.mxu0 %v5995_v59  ;;  %10137 = vmatpush3.msra.mxu1 %v5821_v54 }
0x1760   :  { %10148 = vmatmul.mubr.msk.f32.vlgmr.msra.gmra.mxu0 %vm507_vm0, %v5909_v38  ;;  %10138 = vmatprep.subr.mxu1 %v5820_v43 }
0x1761   :  { %10151 = vmatpush3.msra.mxu0 %v5995_v59  ;;  %10139 = vmatpush3.msra.mxu1 %v5820_v43 }
0x1762   :  { %10152 = vmatprep.subr.mxu0 %v5994_v63  ;;  %10161 = vmatprep.subr.mxu1 %v12839_v16 }
0x1763   :  { %10153 = vmatpush3.msra.mxu0 %v5994_v63 }
0x1764   :  { %10154 = vmatprep.subr.mxu0 %v5993_v8 }
0x1765   :  { %10155 = vmatpush3.msra.mxu0 %v5993_v8 }
0x1766   :  { %10156 = vmatprep.subr.mxu0 %v5992_v21 }
0x1767   :  { %10157 = vmatpush3.msra.mxu0 %v5992_v21 }
0x1768   :  { %10179 = vmatprep.subr.mxu0 %v12839_v16 }
0x1815   :  { %v10106_v23 = vpop.f32.mrf.mxu1 }
0x1816   :  { %v5562_v33 = vadd.f32 %v10106_v23, %v5390_v22 }
0x1817   :  { %v5552_v4 = vpop.f32.mrf.mxu1 }
0x1818   :  { %v5561_v37 = vadd.f32 %v5552_v4, %v5389_v27  ;;  %v6508_v27 = vld [vmem:[#allocation22 + $0x100] sm:$0xff] }
0x181a   :  { %v10124_v35 = vpop.f32.mrf.mxu0  ;;  %v10131_v11 = vpop.f32.mrf.mxu1 }
0x181b   :  { %v5734_v0 = vadd.f32 %v10124_v35, %v5562_v33 }
0x181c   :  { %v5724_v13 = vpop.f32.mrf.mxu0  ;;  %v5810_v46 = vpop.f32.mrf.mxu1 }
0x181d   :  { %v5733_v18 = vadd.f32 %v5724_v13, %v5561_v37  ;;  %10140 = vmatprep.mubr.msk.f32.mxu1 %vm4700_vm5, %v5810_v46 }
0x181e   :  { %10141 = vmatmul.mubr.msk.f32.vlgmr.msra.gmra.mxu1 %vm4700_vm5, %v10131_v11 }
0x181f   :  { %10162 = vmatpush3.msra.mxu1 %v12839_v16  ;;  %10165 = vmatprep.mubr.msk.f32.mxu1 %vm507_vm0, %v6080_v5 }
0x1820   :  { %v10149_v17 = vpop.f32.mrf.mxu0  ;;  %10163 = vmatprep.subr.mxu1 %v12841_v20 }
0x1821   :  { %10164 = vmatpush3.msra.mxu1 %v12841_v20 }
0x1822   :  { %v5982_v14 = vpop.f32.mrf.mxu0  ;;  %10168 = vmatprep.subr.mxu1 %v6167_v45  ;;  %10166 = vmatmul.mubr.msk.f32.vlgmr.msra.gmra.mxu1 %vm507_vm0, %v6081_v51 }
0x1823   :  { %10158 = vmatprep.mubr.msk.f32.mxu0 %vm4700_vm5, %v5982_v14  ;;  %10169 = vmatpush3.msra.mxu1 %v6167_v45 }
0x1824   :  { %10159 = vmatmul.mubr.msk.f32.vlgmr.msra.gmra.mxu0 %vm4700_vm5, %v10149_v17  ;;  %10170 = vmatprep.subr.mxu1 %v6166_v29 }
0x1825   :  { %10180 = vmatpush3.msra.mxu0 %v12839_v16  ;;  %10171 = vmatpush3.msra.mxu1 %v6166_v29 }
0x1826   :  { %10181 = vmatprep.subr.mxu0 %v12841_v20  ;;  %10172 = vmatprep.subr.mxu1 %v6165_v34 }
0x1827   :  { %10182 = vmatpush3.msra.mxu0 %v12841_v20  ;;  %10183 = vmatprep.mubr.msk.f32.mxu0 %vm507_vm0, %v6252_v56 }
0x1828   :  { %10173 = vmatpush3.msra.mxu1 %v6165_v34  ;;  %10184 = vmatmul.mubr.msk.f32.vlgmr.msra.gmra.mxu0 %vm507_vm0, %v6253_v47 }
0x1829   :  { %10174 = vmatprep.subr.mxu1 %v6164_v9  ;;  %10186 = vmatprep.subr.mxu0 %v6339_v58 }
0x182a   :  { %10175 = vmatpush3.msra.mxu1 %v6164_v9  ;;  %10187 = vmatpush3.msra.mxu0 %v6339_v58 }
0x182b   :  { %10197 = vmatprep.subr.mxu1 %v12839_v16  ;;  %10188 = vmatprep.subr.mxu0 %v6338_v52 }
0x182c   :  { %10189 = vmatpush3.msra.mxu0 %v6338_v52 }
0x182d   :  { %10190 = vmatprep.subr.mxu0 %v6337_v55 }
0x182e   :  { %10191 = vmatpush3.msra.mxu0 %v6337_v55 }
0x182f   :  { %10192 = vmatprep.subr.mxu0 %v6336_v40 }
0x1830   :  { %10193 = vmatpush3.msra.mxu0 %v6336_v40 }
0x1831   :  { %10215 = vmatprep.subr.mxu0 %v10974_v26 }
0x18de   :  { %v10142_v44 = vpop.f32.mrf.mxu1 }
0x18df   :  { %v5906_v42 = vadd.f32 %v10142_v44, %v5734_v0 }
0x18e0   :  { %v5896_v36 = vpop.f32.mrf.mxu1 }
0x18e1   :  { %v5905_v62 = vadd.f32 %v5896_v36, %v5733_v18  ;;  %v7007_v36 = vld [vmem:[#allocation28 + $0x10] sm:$0xff] }
0x18e2   :  { %v10167_v2 = vpop.f32.mrf.mxu1 }
0x18e4   :  { %v10160_v10 = vpop.f32.mrf.mxu0  ;;  %v6154_v7 = vpop.f32.mrf.mxu1 }
0x18e5   :  { %v6078_v12 = vadd.f32 %v10160_v10, %v5906_v42  ;;  %10176 = vmatprep.mubr.msk.f32.mxu1 %vm4700_vm5, %v6154_v7  ;;  %v7008_v42 = vld [vmem:[#allocation28 + $0x18] sm:$0xff] }
0x18e6   :  { %v6068_v41 = vpop.f32.mrf.mxu0  ;;  %10177 = vmatmul.mubr.msk.f32.vlgmr.msra.gmra.mxu1 %vm4700_vm5, %v10167_v2  ;;  %v7005_v2 = vld [vmem:[#allocation28] sm:$0xff] }
0x18e7   :  { %v6077_v15 = vadd.f32 %v6068_v41, %v5905_v62  ;;  %10198 = vmatpush3.msra.mxu1 %v12839_v16  ;;  %10201 = vmatprep.mubr.msk.f32.mxu1 %vm507_vm0, %v6424_v48  ;;  %v6511_v16 = vld [vmem:[#allocation22 + $0x118] sm:$0xff]  ;;  %v7006_v62 = vld [vmem:[#allocation28 + $0x8] sm:$0xff] }
0x18e8   :  { %v10185_v22 = vpop.f32.mrf.mxu0  ;;  %10199 = vmatprep.subr.mxu1 %v12841_v20 }
0x18e9   :  { %10200 = vmatpush3.msra.mxu1 %v12841_v20  ;;  %v6510_v20 = vld [vmem:[#allocation22 + $0x110] sm:$0xff] }
0x18ea   :  { %v6326_v24 = vpop.f32.mrf.mxu0  ;;  %10202 = vmatmul.mubr.msk.f32.vlgmr.msra.gmra.mxu1 %vm507_vm0, %v6425_v19  ;;  %10204 = vmatprep.subr.mxu1 %v6511_v16  ;;  %v6923_v19 = vld [vmem:[#allocation25 + $0x8] sm:$0xff] }
0x18eb   :  { %10194 = vmatprep.mubr.msk.f32.mxu0 %vm4700_vm5, %v6326_v24  ;;  %10205 = vmatpush3.msra.mxu1 %v6511_v16  ;;  %v6927_v16 = vld [vmem:[#allocation27 + $0x8] sm:$0xff] }
0x18ec   :  { %10195 = vmatmul.mubr.msk.f32.vlgmr.msra.gmra.mxu0 %vm4700_vm5, %v10185_v22  ;;  %10206 = vmatprep.subr.mxu1 %v6510_v20 }
0x18ed   :  { %10216 = vmatpush3.msra.mxu0 %v12794_v39  ;;  %10223 = vmatprep.mubr.msk.f32.mxu0 %vm10975_vm1, %v10974_v26 }
0x18ee   :  { %10217 = vmatprep.subr.mxu0 %v10974_v26  ;;  %10207 = vmatpush3.msra.mxu1 %v6510_v20 }
0x18ef   :  { %10218 = vmatpush3.msra.mxu0 %v12799_v3  ;;  %10208 = vmatprep.subr.mxu1 %v6509_v1 }
0x18f0   :  { %10219 = vmatprep.subr.mxu0 %v10974_v26  ;;  %10209 = vmatpush3.msra.mxu1 %v6509_v1 }
0x18f1   :  { %10220 = vmatpush3.msra.mxu0 %v12805_v25  ;;  %10210 = vmatprep.subr.mxu1 %v6508_v27 }
0x18f2   :  { %10221 = vmatprep.subr.mxu0 %v10974_v26  ;;  %10211 = vmatpush3.msra.mxu1 %v6508_v27  ;;  %v6926_v27 = vld [vmem:[#allocation27] sm:$0xff] }
0x18f3   :  { %10222 = vmatpush3.msra.mxu0 %v12811_v60  ;;  %10226 = vmatprep.subr.mxu1 %v10974_v26 }
0x18f4   :  { %10231 = vmatprep.subr.mxu0 %v10974_v26 }
0x19a6   :  { %v10178_v28 = vpop.f32.mrf.mxu1 }
0x19a7   :  { %v6250_v30 = vadd.f32 %v10178_v28, %v6078_v12 }
0x19a8   :  { %v6240_v31 = vpop.f32.mrf.mxu1 }
0x19a9   :  { %v6249_v32 = vadd.f32 %v6240_v31, %v6077_v15  ;;  %v6922_v15 = vld [vmem:[#allocation25] sm:$0xff] }
0x19aa   :  { %v10203_v49 = vpop.f32.mrf.mxu1  ;;  %v6931_v31 = vld [vmem:[%s13149_s20] sm:$0xf] }
0x19ac   :  { %v6498_v50 = vpop.f32.mrf.mxu1  ;;  %v10196_v53 = vpop.f32.mrf.mxu0 }
0x19ad   :  { %10212 = vmatprep.mubr.msk.f32.mxu1 %vm4700_vm5, %v6498_v50  ;;  %v6422_v57 = vadd.f32 %v10196_v53, %v6250_v30  ;;  %v7167_v50 = vld [vmem:[#allocation28 + $0x30] sm:$0xff]  ;;  %v7166_v53 = vld [vmem:[#allocation28 + $0x28] sm:$0xff] }
0x19ae   :  { %10213 = vmatmul.mubr.msk.f32.vlgmr.msra.gmra.mxu1 %vm4700_vm5, %v10203_v49  ;;  %v6412_v54 = vpop.f32.mrf.mxu0  ;;  %v7168_v49 = vld [vmem:[#allocation28 + $0x38] sm:$0xff] }
0x19af   :  { %10227 = vmatpush3.msk.msra.mxu1 %vm2856_vm2, %v12819_v61  ;;  %10228 = vmatprep.mubr.msk.f32.mxu1 %vm10975_vm1, %v10974_v26  ;;  %v6421_v38 = vadd.f32 %v6412_v54, %v6249_v32  ;;  %v8675_v32 = vld [vmem:[%s13149_s20 + $0x4] sm:$0xf]  ;;  %v7165_v54 = vld [vmem:[#allocation28 + $0x20] sm:$0xff] }
0x19b0   :  { %10242 = vmatprep.subr.mxu1 %v10974_v26 }
0x1a6e   :  { %v10214_v59 = vpop.f32.mrf.mxu1 }
0x1a6f   :  { %v6594_v43 = vadd.f32 %v10214_v59, %v6422_v57 }
0x1a70   :  { %v6584_v63 = vpop.f32.mrf.mxu1 }
0x1a71   :  { %v6596_v8 = vmax.f32 %v6594_v43, 0.0  ;;  %v6593_v21 = vadd.f32 %v6584_v63, %v6421_v38  ;;  %v8678_v38 = vld [vmem:[%s13149_s20 + $0x8] sm:$0xf]  ;;  %v7322_v63 = vld [vmem:[#allocation28 + $0x58] sm:$0xff] }
0x1a73   :  { %v6595_v23 = vmax.f32 %v6593_v21, 0.0  ;;  %v6598_v33 = vsel %vm4700_vm5, %v6596_v8, 0.0 }
0x1a75   :  { %v6597_v4 = vsel %vm4700_vm5, %v6595_v23, 0.0 }
0x1a76   :  { %v6599_v37 = vadd.f32 %v6598_v33, %v6597_v4  ;;  %v7320_v33 = vld [vmem:[#allocation28 + $0x48] sm:$0xff]  ;;  %v7476_v4 = vld [vmem:[#allocation28 + $0x78] sm:$0xff] }
0x1a78   :  { %v6600_v35 = vrot.slane %v6599_v37, 4 }
0x1a7a   :  { %v6601_v11 = vadd.f32 %v6600_v35, %v6599_v37  ;;  %v7319_v37 = vld [vmem:[#allocation28 + $0x40] sm:$0xff]  ;;  %v7475_v35 = vld [vmem:[#allocation28 + $0x70] sm:$0xff] }
0x1a7c   :  { %v6602_v0 = vrot.slane %v6601_v11, 2 }
0x1a7e   :  { %v6603_v13 = vadd.f32 %v6602_v0, %v6601_v11  ;;  %v7474_v11 = vld [vmem:[#allocation28 + $0x68] sm:$0xff]  ;;  %v7473_v0 = vld [vmem:[#allocation28 + $0x60] sm:$0xff] }
0x1a80   :  { %v6604_v46 = vrot.slane %v6603_v13, 1 }
0x1a82   :  { %v6605_v5 = vadd.f32 %v6604_v46, %v6603_v13  ;;  %v8674_v13 = vld [vmem:[#allocation30] ss:$0 sm:$0xff] }
0x1a84   :  { %10224 = vmatmul.mubr.msk.f32.vlgmr.msra.gmra.mxu0 %vm4700_vm5, %v6605_v5 }
0x1a85   :  { %10232 = vmatpush3.msra.mxu0 %v12794_v39  ;;  %10239 = vmatprep.mubr.msk.f32.mxu0 %vm10975_vm1, %v10974_v26 }
0x1a86   :  { %10233 = vmatprep.subr.mxu0 %v10974_v26 }
0x1a87   :  { %10234 = vmatpush3.msra.mxu0 %v12799_v3 }
0x1a88   :  { %10235 = vmatprep.subr.mxu0 %v10974_v26 }
0x1a89   :  { %10236 = vmatpush3.msra.mxu0 %v12805_v25 }
0x1a8a   :  { %10237 = vmatprep.subr.mxu0 %v10974_v26 }
0x1a8b   :  { %10238 = vmatpush3.msra.mxu0 %v12811_v60 }
0x1a8c   :  { %10254 = vmatprep.subr.mxu0 %v10974_v26 }
0x1b44   :  { %v6675_v18 = vpop.f32.mrf.mxu0 }
0x1b45   :  { %10229 = vmatmul.mubr.msk.f32.vlgmr.msra.gmra.mxu1 %vm2852_vm3, %v6675_v18 }
0x1b46   :  { %v10225_v39 = vpop.f32.mrf.mxu0  ;;  %10243 = vmatpush3.msk.msra.mxu1 %vm2856_vm2, %v12819_v61  ;;  %10244 = vmatprep.mubr.msk.f32.mxu1 %vm10975_vm1, %v10974_v26 }
0x1b47   :  { %10247 = vmatprep.subr.mxu1 %v10974_v26 }
0x1c05   :  { %v6748_v3 = vpop.f32.mrf.mxu1 }
0x1c06   :  { %v6755_v25 = vrot.slane %v6748_v3, %v12534_v6 }
0x1c07   :  { %v10230_v45 = vpop.f32.mrf.mxu1 }
0x1c08   :  { %v6756_v51 = vsub.f32 %v6595_v23, %v6755_v25  ;;  %v6757_v60 = vsub.f32 %v6596_v8, %v6755_v25  ;;  %v8681_v8 = vld [vmem:[%s13149_s20 + $0xc] sm:$0xf] }
0x1c09   :  { %v7321_v23 = vld [vmem:[#allocation28 + $0x50] sm:$0xff] }
0x1c0a   :  { %v6758_v17 = vmul.f32 %v6756_v51, %v6756_v51  ;;  %v6759_v29 = vmul.f32 %v6757_v60, %v6757_v60 }
0x1c0c   :  { %v6760_v14 = vsel %vm4700_vm5, %v6758_v17, 0.0  ;;  %v6761_v34 = vsel %vm4700_vm5, %v6759_v29, 0.0  ;;  %v7630_v29 = vld [vmem:[#allocation28 + $0x98] sm:$0xff] }
0x1c0d   :  { %v6762_v56 = vadd.f32 %v6761_v34, %v6760_v14  ;;  %v8687_v14 = vld [vmem:[%s13149_s20 + $0x14] sm:$0xf] }
0x1c0f   :  { %v6763_v47 = vrot.slane %v6762_v56, 4 }
0x1c11   :  { %v6764_v61 = vadd.f32 %v6763_v47, %v6762_v56  ;;  %v7629_v56 = vld [vmem:[#allocation28 + $0x90] sm:$0xff]  ;;  %v7628_v47 = vld [vmem:[#allocation28 + $0x88] sm:$0xff] }
0x1c13   :  { %v6765_v9 = vrot.slane %v6764_v61, 2 }
0x1c15   :  { %v6766_v58 = vadd.f32 %v6765_v9, %v6764_v61  ;;  %v7784_v61 = vld [vmem:[#allocation28 + $0xb8] sm:$0xff]  ;;  %v7627_v9 = vld [vmem:[#allocation28 + $0x80] sm:$0xff] }
0x1c17   :  { %v6767_v52 = vrot.slane %v6766_v58, 1 }
0x1c19   :  { %v6768_v55 = vadd.f32 %v6767_v52, %v6766_v58  ;;  %v7783_v58 = vld [vmem:[#allocation28 + $0xb0] sm:$0xff]  ;;  %v7782_v52 = vld [vmem:[#allocation28 + $0xa8] sm:$0xff] }
0x1c1b   :  { %10240 = vmatmul.mubr.msk.f32.vlgmr.msra.gmra.mxu0 %vm4700_vm5, %v6768_v55  ;;  %v7781_v55 = vld [vmem:[#allocation28 + $0xa0] sm:$0xff] }
0x1c1c   :  { %10262 = vmatprep.mubr.msk.f32.mxu0 %vm10975_vm1, %v10974_v26  ;;  %10255 = vmatpush3.msra.mxu0 %v7008_v42 }
0x1c1d   :  { %10256 = vmatprep.subr.mxu0 %v10974_v26 }
0x1c1e   :  { %10257 = vmatpush3.msra.mxu0 %v7007_v36 }
0x1c1f   :  { %10258 = vmatprep.subr.mxu0 %v10974_v26 }
0x1c20   :  { %10259 = vmatpush3.msra.mxu0 %v7006_v62 }
0x1c21   :  { %10260 = vmatprep.subr.mxu0 %v10974_v26 }
0x1c22   :  { %10261 = vmatpush3.msra.mxu0 %v7005_v2 }
0x1c23   :  { %10283 = vmatprep.subr.mxu0 %v10974_v26 }
0x1cdb   :  { %v6838_v40 = vpop.f32.mrf.mxu0 }
0x1cdc   :  { %10245 = vmatmul.mubr.msk.f32.vlgmr.msra.gmra.mxu1 %vm2852_vm3, %v6838_v40 }
0x1cdd   :  { %v10241_v44 = vpop.f32.mrf.mxu0  ;;  %10251 = vmatprep.mubr.msk.f32.mxu1 %vm10975_vm1, %v10974_v26 }
0x1d9c   :  { %v6911_v10 = vpop.f32.mrf.mxu1 }
0x1d9d   :  { %v6912_v7 = vadd.f32 1e-05, %v6911_v10 }
0x1d9e   :  { %v10246_v48 = vpop.f32.mrf.mxu1 }
0x1d9f   :  { %10471 = vrsqrt.f32 %v6912_v7  ;;  %v8690_v48 = vld [vmem:[%s13149_s20 + $0x18] sm:$0xf] }
0x1dac   :  { %v10472_v12 = vpop.eup %10471 }
0x1dad   :  { %v6919_v41 = vrot.slane %v10472_v12, %v12534_v6 }
0x1daf   :  { %v6920_v22 = vmul.f32 %v6919_v41, %v6756_v51  ;;  %v6921_v24 = vmul.f32 %v6919_v41, %v6757_v60  ;;  %v8684_v60 = vld [vmem:[%s13149_s20 + $0x10] sm:$0xf] }
0x1db0   :  { %v7938_v41 = vld [vmem:[#allocation28 + $0xd8] sm:$0xff] }
0x1db1   :  { %v6924_v20 = vmul.f32 %v6922_v15, %v6920_v22  ;;  %v6925_v1 = vmul.f32 %v6923_v19, %v6921_v24  ;;  %v8693_v15 = vld [vmem:[%s13149_s20 + $0x1c] sm:$0xf]  ;;  %v7937_v22 = vld [vmem:[#allocation28 + $0xd0] sm:$0xff]  ;;  %v7936_v24 = vld [vmem:[#allocation28 + $0xc8] sm:$0xff] }
0x1db3   :  { %v12964_v28 = vadd.f32 %v6927_v16, %v6925_v1  ;;  %v12966_v30 = vadd.f32 %v6926_v27, %v6924_v20  ;;  %v8092_v16 = vld [vmem:[#allocation28 + $0xf8] sm:$0xff]  ;;  %v7935_v20 = vld [vmem:[#allocation28 + $0xc0] sm:$0xff]  ;;  %v8091_v1 = vld [vmem:[#allocation28 + $0xf0] sm:$0xff] }
0x1db4   :  { %v8090_v27 = vld [vmem:[#allocation28 + $0xe8] sm:$0xff] }
0x1db5   :  { %10248 = vmatpush3.msra.mxu1 %v12964_v28 }
0x1db6   :  { %10249 = vmatprep.subr.mxu1 %v10974_v26 }
0x1db7   :  { %10250 = vmatpush3.msra.mxu1 %v12966_v30 }
0x1db8   :  { %10252 = vmatmul.mubr.msk.f32.vlgmr.msra.gmra.mxu1 %vm507_vm0, %v6931_v31  ;;  %10265 = vmatprep.subr.mxu1 %v10974_v26  ;;  %v8089_v31 = vld [vmem:[#allocation28 + $0xe0] sm:$0xff] }
0x1db9   :  { %10266 = vmatpush3.msra.mxu1 %v12964_v28  ;;  %10269 = vmatprep.mubr.msk.f32.mxu1 %vm10975_vm1, %v10974_v26 }
0x1dba   :  { %10267 = vmatprep.subr.mxu1 %v10974_v26 }
0x1dbb   :  { %10268 = vmatpush3.msra.mxu1 %v12966_v30 }
0x1dbc   :  { %10270 = vmatmul.mubr.msk.f32.vlgmr.msra.gmra.mxu1 %vm507_vm0, %v8675_v32  ;;  %10272 = vmatprep.subr.mxu1 %v10974_v26 }
0x1dbd   :  { %10273 = vmatpush3.msra.mxu1 %v7168_v49  ;;  %10280 = vmatprep.mubr.msk.f32.mxu1 %vm10975_vm1, %v10974_v26 }
0x1dbe   :  { %10274 = vmatprep.subr.mxu1 %v10974_v26 }
0x1dbf   :  { %10275 = vmatpush3.msra.mxu1 %v7167_v50 }
0x1dc0   :  { %10276 = vmatprep.subr.mxu1 %v10974_v26 }
0x1dc1   :  { %10277 = vmatpush3.msra.mxu1 %v7166_v53 }
0x1dc2   :  { %10278 = vmatprep.subr.mxu1 %v10974_v26 }
0x1dc3   :  { %10279 = vmatpush3.msra.mxu1 %v7165_v54 }
0x1dc4   :  { %10301 = vmatprep.subr.mxu1 %v10974_v26 }
0x1e78   :  { %v7001_v57 = vpop.f32.mrf.mxu1 }
0x1e79   :  { %10263 = vmatmul.mubr.msk.f32.vlgmr.msra.gmra.mxu0 %vm4700_vm5, %v7001_v57 }
0x1e7a   :  { %10284 = vmatpush3.msra.mxu0 %v12964_v28  ;;  %v10253_v59 = vpop.f32.mrf.mxu1  ;;  %10287 = vmatprep.mubr.msk.f32.mxu0 %vm10975_vm1, %v10974_v26 }
0x1e7b   :  { %10285 = vmatprep.subr.mxu0 %v10974_v26 }
0x1e7c   :  { %10286 = vmatpush3.msra.mxu0 %v12966_v30  ;;  %v7160_v43 = vpop.f32.mrf.mxu1 }
0x1e7d   :  { %10281 = vmatmul.mubr.msk.f32.vlgmr.msra.gmra.mxu1 %vm4700_vm5, %v7160_v43  ;;  %10288 = vmatmul.mubr.msk.f32.vlgmr.msra.gmra.mxu0 %vm507_vm0, %v8678_v38  ;;  %v8696_v43 = vld [vmem:[%s13149_s20 + $0x20] sm:$0xf] }
0x1e7e   :  { %10302 = vmatpush3.msra.mxu1 %v12964_v28  ;;  %10305 = vmatprep.mubr.msk.f32.mxu1 %vm10975_vm1, %v10974_v26  ;;  %v10271_v21 = vpop.f32.mrf.mxu1 }
0x1e7f   :  { %10303 = vmatprep.subr.mxu1 %v10974_v26  ;;  %10290 = vmatprep.subr.mxu0 %v10974_v26  ;;  %v8245_v21 = vld [vmem:[#allocation28 + $0x110] sm:$0xff] }
0x1e80   :  { %10304 = vmatpush3.msra.mxu1 %v12966_v30  ;;  %10291 = vmatpush3.msra.mxu0 %v7322_v63 }
0x1e81   :  { %10306 = vmatmul.mubr.msk.f32.vlgmr.msra.gmra.mxu1 %vm507_vm0, %v8681_v8  ;;  %10292 = vmatprep.subr.mxu0 %v10974_v26  ;;  %v8246_v8 = vld [vmem:[#allocation28 + $0x118] sm:$0xff] }
0x1e82   :  { %10293 = vmatpush3.msra.mxu0 %v7321_v23  ;;  %10308 = vmatprep.subr.mxu1 %v10974_v26  ;;  %v8244_v23 = vld [vmem:[#allocation28 + $0x108] sm:$0xff] }
0x1e83   :  { %10294 = vmatprep.subr.mxu0 %v10974_v26  ;;  %10298 = vmatprep.mubr.msk.f32.mxu0 %vm10975_vm1, %v10974_v26 }
0x1e84   :  { %10316 = vmatprep.mubr.msk.f32.mxu1 %vm10975_vm1, %v10974_v26  ;;  %10295 = vmatpush3.msra.mxu0 %v7320_v33 }
0x1e85   :  { %10309 = vmatpush3.msra.mxu1 %v7476_v4  ;;  %10296 = vmatprep.subr.mxu0 %v10974_v26 }
0x1e86   :  { %10310 = vmatprep.subr.mxu1 %v10974_v26  ;;  %10297 = vmatpush3.msra.mxu0 %v7319_v37 }
0x1e87   :  { %10311 = vmatpush3.msra.mxu1 %v7475_v35  ;;  %10319 = vmatprep.subr.mxu0 %v10974_v26 }
0x1e88   :  { %10312 = vmatprep.subr.mxu1 %v10974_v26 }
0x1e89   :  { %10313 = vmatpush3.msra.mxu1 %v7474_v11 }
0x1e8a   :  { %10314 = vmatprep.subr.mxu1 %v10974_v26 }
0x1e8b   :  { %10315 = vmatpush3.msra.mxu1 %v7473_v0 }
0x1e8c   :  { %10337 = vmatprep.subr.mxu1 %v10974_v26 }
0x1f39   :  { %v7078_v46 = vpop.f32.mrf.mxu0 }
0x1f3a   :  { %v7088_v18 = vadd.f32 %v8674_v13, %v7078_v46 }
0x1f3b   :  { %v10264_v5 = vpop.f32.mrf.mxu0 }
0x1f3c   :  { %v8321_v5 = vld [vmem:[#allocation33] sm:$0x1] }
0x1f3d   :  { %v7238_v39 = vpop.f32.mrf.mxu1  ;;  %v7314_v3 = vpop.f32.mrf.mxu0  ;;  %vm8322_vm6 = vcmp.gt.f32.partialorder %v8321_v5, 0.5 }
0x1f3e   :  { %v7242_v25 = vadd.f32 %v7238_v39, %v7088_v18  ;;  %10299 = vmatmul.mubr.msk.f32.vlgmr.msra.gmra.mxu0 %vm4700_vm5, %v7314_v3  ;;  %v10976_v18 = vmov 0  }
0x1f3f   :  { %10320 = vmatpush3.msra.mxu0 %v12964_v28  ;;  %v10282_v45 = vpop.f32.mrf.mxu1  ;;  %v10289_v51 = vpop.f32.mrf.mxu0  ;;  %10323 = vmatprep.mubr.msk.f32.mxu0 %vm10975_vm1, %v10974_v26  ;;  %v8324_v39 = vsel %vm8322_vm6, 1, %v10976_v18 }
0x1f40   :  { %10321 = vmatprep.subr.mxu0 %v10974_v26  ;;  %v8328_v3 = vrot.slane %v8324_v39, %v12534_v6 }
0x1f41   :  { %10322 = vmatpush3.msra.mxu0 %v12966_v30  ;;  %v7468_v17 = vpop.f32.mrf.mxu1 }
0x1f42   :  { %10317 = vmatmul.mubr.msk.f32.vlgmr.msra.gmra.mxu1 %vm4700_vm5, %v7468_v17  ;;  %10324 = vmatmul.mubr.msk.f32.vlgmr.msra.gmra.mxu0 %vm507_vm0, %v8684_v60  ;;  %vm13112_vm7 = vcmp.eq.s32.totalorder %v8328_v3, 1 }
0x1f43   :  { %10338 = vmatpush3.msra.mxu1 %v12964_v28  ;;  %10341 = vmatprep.mubr.msk.f32.mxu1 %vm10975_vm1, %v10974_v26  ;;  %v10307_v34 = vpop.f32.mrf.mxu1 }
0x1f44   :  { %10339 = vmatprep.subr.mxu1 %v10974_v26  ;;  %10326 = vmatprep.subr.mxu0 %v10974_v26 }
0x1f45   :  { %10340 = vmatpush3.msra.mxu1 %v12966_v30  ;;  %10327 = vmatpush3.msra.mxu0 %v7630_v29 }
0x1f46   :  { %10342 = vmatmul.mubr.msk.f32.vlgmr.msra.gmra.mxu1 %vm507_vm0, %v8687_v14  ;;  %10328 = vmatprep.subr.mxu0 %v10974_v26 }
0x1f47   :  { %10329 = vmatpush3.msra.mxu0 %v7629_v56  ;;  %10344 = vmatprep.subr.mxu1 %v10974_v26 }
0x1f48   :  { %10330 = vmatprep.subr.mxu0 %v10974_v26  ;;  %10334 = vmatprep.mubr.msk.f32.mxu0 %vm10975_vm1, %v10974_v26 }
0x1f49   :  { %10352 = vmatprep.mubr.msk.f32.mxu1 %vm10975_vm1, %v10974_v26  ;;  %10331 = vmatpush3.msra.mxu0 %v7628_v47 }
0x1f4a   :  { %10345 = vmatpush3.msra.mxu1 %v7784_v61  ;;  %10332 = vmatprep.subr.mxu0 %v10974_v26 }
0x1f4b   :  { %10346 = vmatprep.subr.mxu1 %v10974_v26  ;;  %10333 = vmatpush3.msra.mxu0 %v7627_v9 }
0x1f4c   :  { %10347 = vmatpush3.msra.mxu1 %v7783_v58  ;;  %10355 = vmatprep.subr.mxu0 %v10974_v26 }
0x1f4d   :  { %10348 = vmatprep.subr.mxu1 %v10974_v26 }
0x1f4e   :  { %10349 = vmatpush3.msra.mxu1 %v7782_v52 }
0x1f4f   :  { %10350 = vmatprep.subr.mxu1 %v10974_v26 }
0x1f50   :  { %10351 = vmatpush3.msra.mxu1 %v7781_v55 }
0x1f51   :  { %10373 = vmatprep.subr.mxu1 %v10974_v26 }
0x1ffe   :  { %v7392_v40 = vpop.f32.mrf.mxu0 }
0x1fff   :  { %v7396_v44 = vadd.f32 %v7392_v40, %v7242_v25 }
0x2000   :  { %v10300_v42 = vpop.f32.mrf.mxu0 }
0x2002   :  { %v7546_v36 = vpop.f32.mrf.mxu1  ;;  %v7622_v62 = vpop.f32.mrf.mxu0 }
0x2003   :  { %v7550_v2 = vadd.f32 %v7546_v36, %v7396_v44  ;;  %10335 = vmatmul.mubr.msk.f32.vlgmr.msra.gmra.mxu0 %vm4700_vm5, %v7622_v62 }
0x2004   :  { %10356 = vmatpush3.msra.mxu0 %v12964_v28  ;;  %v10318_v10 = vpop.f32.mrf.mxu1  ;;  %v10325_v7 = vpop.f32.mrf.mxu0  ;;  %10359 = vmatprep.mubr.msk.f32.mxu0 %vm10975_vm1, %v10974_v26 }
0x2005   :  { %10357 = vmatprep.subr.mxu0 %v10974_v26 }
0x2006   :  { %10358 = vmatpush3.msra.mxu0 %v12966_v30  ;;  %v7776_v12 = vpop.f32.mrf.mxu1 }
0x2007   :  { %10353 = vmatmul.mubr.msk.f32.vlgmr.msra.gmra.mxu1 %vm4700_vm5, %v7776_v12  ;;  %10360 = vmatmul.mubr.msk.f32.vlgmr.msra.gmra.mxu0 %vm507_vm0, %v8690_v48  ;;  %v8354_v12 = vld [vmem:[#allocation31] sm:$0xf] }
0x2008   :  { %10374 = vmatpush3.msra.mxu1 %v12964_v28  ;;  %10377 = vmatprep.mubr.msk.f32.mxu1 %vm10975_vm1, %v10974_v26  ;;  %v10343_v19 = vpop.f32.mrf.mxu1 }
0x2009   :  { %10375 = vmatprep.subr.mxu1 %v10974_v26  ;;  %10362 = vmatprep.subr.mxu0 %v10974_v26 }
0x200a   :  { %10376 = vmatpush3.msra.mxu1 %v12966_v30  ;;  %10363 = vmatpush3.msra.mxu0 %v7938_v41 }
0x200b   :  { %10378 = vmatmul.mubr.msk.f32.vlgmr.msra.gmra.mxu1 %vm507_vm0, %v8693_v15  ;;  %10364 = vmatprep.subr.mxu0 %v10974_v26  ;;  %v8356_v15 = vld [vmem:[%s13153_s24] sm:$0xf] }
0x200c   :  { %10365 = vmatpush3.msra.mxu0 %v7937_v22  ;;  %10380 = vmatprep.subr.mxu1 %v10974_v26 }
0x200d   :  { %10366 = vmatprep.subr.mxu0 %v10974_v26  ;;  %10370 = vmatprep.mubr.msk.f32.mxu0 %vm10975_vm1, %v10974_v26 }
0x200e   :  { %10388 = vmatprep.mubr.msk.f32.mxu1 %vm10975_vm1, %v10974_v26  ;;  %10367 = vmatpush3.msra.mxu0 %v7936_v24 }
0x200f   :  { %10368 = vmatprep.subr.mxu0 %v10974_v26  ;;  %10381 = vmatpush3.msra.mxu1 %v8092_v16 }
0x2010   :  { %10369 = vmatpush3.msra.mxu0 %v7935_v20  ;;  %10382 = vmatprep.subr.mxu1 %v10974_v26 }
0x2011   :  { %10391 = vmatprep.subr.mxu0 %v10974_v26  ;;  %10383 = vmatpush3.msra.mxu1 %v8091_v1 }
0x2012   :  { %10384 = vmatprep.subr.mxu1 %v10974_v26 }
0x2013   :  { %10385 = vmatpush3.msra.mxu1 %v8090_v27 }
0x2014   :  { %10386 = vmatprep.subr.mxu1 %v10974_v26 }
0x2015   :  { %10387 = vmatpush3.msra.mxu1 %v8089_v31 }
0x20c3   :  { %v7700_v32 = vpop.f32.mrf.mxu0 }
0x20c4   :  { %v7704_v49 = vadd.f32 %v7700_v32, %v7550_v2 }
0x20c5   :  { %v10336_v50 = vpop.f32.mrf.mxu0 }
0x20c7   :  { %v7854_v53 = vpop.f32.mrf.mxu1  ;;  %v7930_v54 = vpop.f32.mrf.mxu0 }
0x20c8   :  { %v7858_v57 = vadd.f32 %v7854_v53, %v7704_v49  ;;  %10371 = vmatmul.mubr.msk.f32.vlgmr.msra.gmra.mxu0 %vm4700_vm5, %v7930_v54 }
0x20c9   :  { %10392 = vmatpush3.msra.mxu0 %v12964_v28  ;;  %v10354_v59 = vpop.f32.mrf.mxu1  ;;  %v10361_v38 = vpop.f32.mrf.mxu0  ;;  %10395 = vmatprep.mubr.msk.f32.mxu0 %vm10975_vm1, %v10974_v26 }
0x20ca   :  { %10393 = vmatprep.subr.mxu0 %v10974_v26 }
0x20cb   :  { %10394 = vmatpush3.msra.mxu0 %v12966_v30  ;;  %v8084_v63 = vpop.f32.mrf.mxu1  ;;  %v8243_v30 = vld [vmem:[#allocation28 + $0x100] sm:$0xff] }
0x20cc   :  { %10389 = vmatmul.mubr.msk.f32.vlgmr.msra.gmra.mxu1 %vm4700_vm5, %v8084_v63  ;;  %10396 = vmatmul.mubr.msk.f32.vlgmr.msra.gmra.mxu0 %vm507_vm0, %v8696_v43 }
0x20cd   :  { %10398 = vmatprep.subr.mxu0 %v10974_v26  ;;  %v10379_v28 = vpop.f32.mrf.mxu1  ;;  %10406 = vmatprep.mubr.msk.f32.mxu0 %vm10975_vm1, %v10974_v26 }
0x20ce   :  { %10399 = vmatpush3.msra.mxu0 %v8246_v8 }
0x20cf   :  { %10400 = vmatprep.subr.mxu0 %v10974_v26 }
0x20d0   :  { %10401 = vmatpush3.msra.mxu0 %v8245_v21 }
0x20d1   :  { %10402 = vmatprep.subr.mxu0 %v10974_v26 }
0x20d2   :  { %10403 = vmatpush3.msra.mxu0 %v8244_v23 }
0x20d3   :  { %10404 = vmatprep.subr.mxu0 %v10974_v26 }
0x20d4   :  { %10405 = vmatpush3.msra.mxu0 %v8243_v30 }
0x2188   :  { %v8008_v33 = vpop.f32.mrf.mxu0 }
0x2189   :  { %v8012_v4 = vadd.f32 %v8008_v33, %v7858_v57 }
0x218a   :  { %v10372_v37 = vpop.f32.mrf.mxu0 }
0x218c   :  { %v8162_v35 = vpop.f32.mrf.mxu1  ;;  %v8238_v11 = vpop.f32.mrf.mxu0 }
0x218d   :  { %v8166_v0 = vadd.f32 %v8162_v35, %v8012_v4  ;;  %10407 = vmatmul.mubr.msk.f32.vlgmr.msra.gmra.mxu0 %vm4700_vm5, %v8238_v11 }
0x218e   :  { %v10397_v13 = vpop.f32.mrf.mxu0  ;;  %v10390_v46 = vpop.f32.mrf.mxu1 }
0x224d   :  { %v8316_v25 = vpop.f32.mrf.mxu0 }
0x224e   :  { %v8320_v26 = vadd.f32 %v8316_v25, %v8166_v0 }
0x224f   :  { %v10408_v51 = vpop.f32.mrf.mxu0 }
0x2250   :  { %v8323_v60 = vmax.f32 %v8320_v26, 0.0 }
0x2252   :  { %v8330_v17 = vsel %vm13112_vm7, %v8323_v60, %v8320_v26 }
0x2253   :  { %v8332_v29 = vsel %vm8331_vm8, %v8330_v17, 0.0 }
0x2254   :  { %v8333_v14 = vrot.slane %v8332_v29, 4 }
0x2256   :  { %v8334_v34 = vadd.f32 %v8333_v14, %v8332_v29 }
0x2258   :  { %v8335_v56 = vrot.slane %v8334_v34, 2 }
0x225a   :  { %v8336_v47 = vadd.f32 %v8335_v56, %v8334_v34 }
0x225c   :  { %v8337_v61 = vrot.slane %v8336_v47, 1 }
0x225e   :  { %v8338_v6 = vadd.f32 %v8337_v61, %v8336_v47 }
0x2260   :  { %v8340_v9 = vmul.f32 0.25, %v8338_v6 }
0x2262   :  { %v8341_v58 = vsub.f32 %v8330_v17, %v8340_v9 }
0x2264   :  { %v8342_v52 = vmul.f32 %v8341_v58, %v8341_v58 }
0x2266   :  { %v8343_v55 = vsel %vm8331_vm8, %v8342_v52, 0.0 }
0x2267   :  { %v8344_v40 = vrot.slane %v8343_v55, 4 }
0x2269   :  { %v8345_v44 = vadd.f32 %v8344_v40, %v8343_v55 }
0x226b   :  { %v8346_v42 = vrot.slane %v8345_v44, 2 }
0x226d   :  { %v8347_v36 = vadd.f32 %v8346_v42, %v8345_v44 }
0x226f   :  { %v8348_v62 = vrot.slane %v8347_v36, 1 }
0x2271   :  { %v8349_v2 = vadd.f32 %v8348_v62, %v8347_v36 }
0x2273   :  { %v8350_v10 = vmul.f32 0.25, %v8349_v2 }
0x2275   :  { %v8351_v7 = vadd.f32 1e-05, %v8350_v10 }
0x2277   :  { %10473 = vrsqrt.f32 %v8351_v7 }
0x2284   :  { %v10474_v48 = vpop.eup %10473 }
0x2285   :  { %v8353_v41 = vmul.f32 %v10474_v48, %v8341_v58 }
0x2287   :  { %v8355_v19 = vmul.f32 %v8354_v12, %v8353_v41 }
0x2289   :  { %v8357_v22 = vadd.f32 %v8356_v15, %v8355_v19 }
0x228b   :  { %v8358_v24 = vadd.f32 -6.0, %v8357_v22 }
0x228d   :  { %v8359_v16 = vmul.f32 0.5, %v8358_v24 }
0x228f   :  { %v8360_v20 = vmul.f32 1.442695, %v8359_v16 }
0x2291   :  { %10475 = vpow2.f32 %v8360_v20 }
0x229e   :  { %v10476_v1 = vpop.eup %10475 }
0x229f   :  { %v8362_v27 = vsel %vm13112_vm7, %v10476_v1, %v8357_v22 }
0x22a0   :  { %8363 = vst.msk [vmem:[%s13155_s26] sm:$0xf] %vm8331_vm8, %v8362_v27 }
0x22a1   :  { %8368 = vsyncpa [#allocation3], 1 }
0x22a2   :  { %8369 = vsyncpa [#allocation5], 1 }
0x22a3   :  { %8370 = vsyncpa [#allocation8], 1 }
0x22a4   :  { %8371 = vsyncpa [#allocation11], 1 }
0x22a5   :  { %8372 = vsyncpa [#allocation14], 1 }
0x22a6   :  { %8373 = vsyncpa [#allocation17], 1 }
0x22a7   :  { %8374 = vsyncpa [#allocation20], 1 }
0x22a8   :  { %8375 = vsyncpa [#allocation23], 1 }
0x22a9   :  { %8376 = vsyncpa [#allocation26], 1 }
0x22aa   :  { %8377 = vsyncpa [#allocation29], 1 }
0x22ab   :  { %8378 = vsyncpa [#allocation32], 1 }

</bundles_post_ra>
